<compile_context>
chip_gen: v7x
topology: tpu7x:2x2x1
jax: 0.10.0
libtpu: 0.0.40
codegen_flags: <defaults>
</compile_context>

<pallas_src>
import functools

import jax
import jax.numpy as jnp
from jax.experimental import pallas as pl
from jax.experimental.pallas import tpu as pltpu

LANE = 128      # channel dims padded to a multiple of the TPU lane width
COL_OFF = 16    # aligned column offset of the image inside halo scratches
HALO = 2        # rows of x halo needed per tile (conv1 stacked with conv2)


def _ceil_to(x, m):
    return (x + m - 1) // m * m


def _wpad(W):
    # image lives in columns [COL_OFF, COL_OFF + W); one zero column on each side
    # is guaranteed (left: COL_OFF-1, right: COL_OFF+W), plus slack.
    return W + COL_OFF + 8


def _pick_th(H, W, target_rows=512):
    """Largest divisor TH of H with TH*W <= target_rows; TH >= 2 and >= 2 tiles
    preferred (the 2-row x halo requires TH >= 2 whenever there are >= 2 tiles)."""
    divs = [d for d in range(1, H + 1) if H % d == 0]
    multi = [d for d in divs if d >= HALO and H // d >= 2]
    cand = multi or [H]
    fitting = [d for d in cand if d * W <= target_rows]
    return max(fitting) if fitting else min(cand)


# ---------------------------------------------------------------------------
# In-kernel helpers
# ---------------------------------------------------------------------------
def _fill_x_halo(x_ref, xpad_ref, h, *, TH, H, W, n_h):
    """Copy x rows [h*TH-HALO, h*TH+TH+HALO) into xpad (zeros outside the image).

    x_ref:    (1, H, W, C)           full bf16 image for this batch element
    xpad_ref: (TH+2*HALO, Wpad, C)   VMEM halo scratch; image at cols COL_OFF..+W
    """
    xpad_ref[...] = jnp.zeros_like(xpad_ref)
    if n_h == 1:
        xpad_ref[HALO:HALO + H, COL_OFF:COL_OFF + W, :] = x_ref[0]
        return
    last = n_h - 1

    @pl.when(h == 0)
    def _():
        xpad_ref[HALO:TH + 2 * HALO, COL_OFF:COL_OFF + W, :] = (
            x_ref[0, 0:TH + HALO, :, :])

    @pl.when(h == last)
    def _():
        xpad_ref[0:TH + HALO, COL_OFF:COL_OFF + W, :] = (
            x_ref[0, pl.ds(h * TH - HALO, TH + HALO), :, :])

    @pl.when(jnp.logical_and(h > 0, h < last))
    def _():
        xpad_ref[0:TH + 2 * HALO, COL_OFF:COL_OFF + W, :] = (
            x_ref[0, pl.ds(h * TH - HALO, TH + 2 * HALO), :, :])


def _fill_patches(src_ref, patch_ref, *, rows, W, C):
    """im2col from a halo scratch: patch row (r*W + c), K-block t = kh*3 + kw holds
    src[r + kh, COL_OFF + c + kw - 1, :].  src_ref has rows+2 rows."""
    for kw in range(3):
        col = src_ref[:, COL_OFF + kw - 1:COL_OFF + kw - 1 + W, :]   # (rows+2, W, C)
        for kh in range(3):
            t = kh * 3 + kw
            patch_ref[:, t * C:(t + 1) * C] = col[kh:kh + rows].reshape(rows * W, C)


def _conv1_to_out1h(x_ref, w1_ref, s1_ref, b1_ref, xpad_ref, patch1_ref, out1h_ref,
                    h, *, TH, H, W, Cp, Coutp, n_h):
    """conv1 (3x3, pad=1) -> folded BN1 -> ReLU on a (TH+2)-row extended tile,
    written into a column-padded halo scratch ready for conv2's im2col."""
    _fill_x_halo(x_ref, xpad_ref, h, TH=TH, H=H, W=W, n_h=n_h)
    _fill_patches(xpad_ref, patch1_ref, rows=TH + 2, W=W, C=Cp)
    y1 = jnp.dot(patch1_ref[...], w1_ref[...], preferred_element_type=jnp.float32)
    y1 = jnp.maximum(y1 * s1_ref[...] + b1_ref[...], 0.0)

    out1h_ref[...] = jnp.zeros_like(out1h_ref)
    out1h_ref[:, COL_OFF:COL_OFF + W, :] = (
        y1.reshape(TH + 2, W, Coutp).astype(out1h_ref.dtype))

    # out1 halo rows that fall outside the image are conv2's zero padding.
    @pl.when(h == 0)
    def _():
        out1h_ref[0:1, COL_OFF:COL_OFF + W, :] = jnp.zeros((1, W, Coutp), jnp.bfloat16)

    @pl.when(h == n_h - 1)
    def _():
        out1h_ref[TH + 1:TH + 2, COL_OFF:COL_OFF + W, :] = (
            jnp.zeros((1, W, Coutp), jnp.bfloat16))


# ---------------------------------------------------------------------------
# Fused kernels (one per residual flavor)
# ---------------------------------------------------------------------------
def _block_ds_kernel(x_ref, w1_ref, s1_ref, b1_ref, w2_ref, s2_ref, b2_ref,
                     wd_ref, sd_ref, bd_ref, out_ref,
                     xpad_ref, patch1_ref, out1h_ref, patch2_ref,
                     *, TH, H, W, Cp, Coutp, n_h):
    """conv1->bn1->relu->conv2->bn2 (+ fused 3x3 downsample conv->bn residual) -> relu."""
    h = pl.program_id(1)
    _conv1_to_out1h(x_ref, w1_ref, s1_ref, b1_ref, xpad_ref, patch1_ref, out1h_ref,
                    h, TH=TH, H=H, W=W, Cp=Cp, Coutp=Coutp, n_h=n_h)

    _fill_patches(out1h_ref, patch2_ref, rows=TH, W=W, C=Coutp)
    y = jnp.dot(patch2_ref[...], w2_ref[...], preferred_element_type=jnp.float32)
    y = y * s2_ref[...] + b2_ref[...]

    # Downsample conv reuses conv1's im2col slab: its center TH rows are exactly
    # the SAME-padded 3x3 taps of x for this output tile.
    r = jnp.dot(patch1_ref[W:(TH + 1) * W, :], wd_ref[...],
                preferred_element_type=jnp.float32)
    r = r * sd_ref[...] + bd_ref[...]

    out_ref[...] = jnp.maximum(y + r, 0.0).reshape(1, TH, W, Coutp).astype(out_ref.dtype)


def _block_id_kernel(x_ref, w1_ref, s1_ref, b1_ref, w2_ref, s2_ref, b2_ref, out_ref,
                     xpad_ref, patch1_ref, out1h_ref, patch2_ref,
                     *, TH, H, W, Cp, Coutp, n_h):
    """conv1->bn1->relu->conv2->bn2, identity residual add, relu."""
    h = pl.program_id(1)
    _conv1_to_out1h(x_ref, w1_ref, s1_ref, b1_ref, xpad_ref, patch1_ref, out1h_ref,
                    h, TH=TH, H=H, W=W, Cp=Cp, Coutp=Coutp, n_h=n_h)

    _fill_patches(out1h_ref, patch2_ref, rows=TH, W=W, C=Coutp)
    y = jnp.dot(patch2_ref[...], w2_ref[...], preferred_element_type=jnp.float32)
    y = y * s2_ref[...] + b2_ref[...]

    res = xpad_ref[HALO:HALO + TH, COL_OFF:COL_OFF + W, :].astype(jnp.float32)
    y = y + res.reshape(TH * W, Coutp)
    out_ref[...] = jnp.maximum(y, 0.0).reshape(1, TH, W, Coutp).astype(out_ref.dtype)


# ---------------------------------------------------------------------------
# pallas_call wrapper
# ---------------------------------------------------------------------------
def _compiler_params(est_vmem_bytes):
    # Explicit VMEM budget with headroom; stays below v7x's 64 MiB physical VMEM.
    limit = int(min(max(2 * est_vmem_bytes, 16 * 1024 * 1024), 56 * 1024 * 1024))
    return pltpu.CompilerParams(
        dimension_semantics=("parallel", "parallel"),
        vmem_limit_bytes=limit)


def _block_call(x_p, conv1, conv2, down, *, TH, n_h, is_downsample):
    N, H, W, Cp = x_p.shape
    w1, s1, b1 = conv1
    w2, s2, b2 = conv2
    Coutp = w1.shape[1]
    Wp = _wpad(W)

    if not is_downsample:
        assert Cp == Coutp, "identity residual requires Cin == Cout"

    scratch = [
        pltpu.VMEM((TH + 2 * HALO, Wp, Cp), jnp.bfloat16),    # x halo
        pltpu.VMEM(((TH + 2) * W, 9 * Cp), jnp.bfloat16),     # im2col (conv1 + downsample)
        pltpu.VMEM((TH + 2, Wp, Coutp), jnp.bfloat16),        # out1 halo
        pltpu.VMEM((TH * W, 9 * Coutp), jnp.bfloat16),        # im2col (conv2)
    ]

    est = (2 * H * W * Cp * 2 + 2 * TH * W * Coutp * 4
           + 2 * 9 * (Cp + Coutp) * Coutp * 2
           + (TH + 2 * HALO) * Wp * Cp * 2 + (TH + 2) * W * 9 * Cp * 2
           + (TH + 2) * Wp * Coutp * 2 + TH * W * 9 * Coutp * 2
           + 12 * Coutp * 4)
    if is_downsample:
        est += 2 * 9 * Cp * Coutp * 2

    def wspec(shape):
        return pl.BlockSpec(shape, lambda n, h: (0, 0))   # fetched once

    in_specs = [
        pl.BlockSpec((1, H, W, Cp), lambda n, h: (n, 0, 0, 0)),   # re-DMA'd only per n
        wspec((9 * Cp, Coutp)), wspec((1, Coutp)), wspec((1, Coutp)),
        wspec((9 * Coutp, Coutp)), wspec((1, Coutp)), wspec((1, Coutp)),
    ]
    args = [x_p, w1, s1, b1, w2, s2, b2]
    if is_downsample:
        wd, sd, bd = down
        in_specs += [wspec((9 * Cp, Coutp)), wspec((1, Coutp)), wspec((1, Coutp))]
        args += [wd, sd, bd]
        kernel = functools.partial(_block_ds_kernel, TH=TH, H=H, W=W, Cp=Cp,
                                   Coutp=Coutp, n_h=n_h)
    else:
        kernel = functools.partial(_block_id_kernel, TH=TH, H=H, W=W, Cp=Cp,
                                   Coutp=Coutp, n_h=n_h)

    return pl.pallas_call(
        kernel,
        out_shape=jax.ShapeDtypeStruct((N, H, W, Coutp), jnp.float32),
        grid_spec=pltpu.PrefetchScalarGridSpec(
            num_scalar_prefetch=0,
            grid=(N, n_h),
            in_specs=in_specs,
            out_specs=pl.BlockSpec((1, TH, W, Coutp), lambda n, h: (n, h, 0, 0)),
            scratch_shapes=scratch),
        compiler_params=_compiler_params(est),
    )(*args)


def basic_block(x_nhwc, params):
    """Inference forward of BasicBlock (BN folded into scale/shift).

    x_nhwc: (N, H, W, Cin) float32 -> (N, H, W, Cout) float32.
    """
    N, H, W, Cin = x_nhwc.shape
    Cout = params["cout"]
    Cinp = _ceil_to(Cin, LANE)
    TH = _pick_th(H, W)
    n_h = H // TH

    # Lane-dense channel padding + MXU-native bf16 cast (single wrapper op; no
    # spatial pad -- the conv halo is handled inside the kernel).
    x_p = jnp.pad(x_nhwc, ((0, 0), (0, 0), (0, 0), (0, Cinp - Cin))).astype(jnp.bfloat16)

    out = _block_call(x_p, params["conv1"], params["conv2"], params.get("down"),
                      TH=TH, n_h=n_h, is_downsample=params["is_downsample"])
    return out[..., :Cout]


# ---------------------------------------------------------------------------
# Parameter preparation (weight layout, folded BN, channel padding)
# ---------------------------------------------------------------------------
def prep_conv_weight(w_oihw, cinp, coutp):
    """PyTorch (cout, cin, 3, 3) -> (9*cin_p, cout_p) bf16, tap-major along K."""
    cout, cin = w_oihw.shape[0], w_oihw.shape[1]
    w = jnp.transpose(w_oihw, (2, 3, 1, 0))                                 # (3,3,cin,cout)
    w = jnp.pad(w, ((0, 0), (0, 0), (0, cinp - cin), (0, coutp - cout)))
    return w.reshape(9 * cinp, coutp).astype(jnp.bfloat16)


def prep_bn(gamma, beta, mean, var, coutp, eps=1e-5):
    scale = gamma / jnp.sqrt(var + eps)
    shift = beta - mean * scale
    c = gamma.shape[0]
    scale = jnp.pad(scale, (0, coutp - c)).reshape(1, coutp).astype(jnp.float32)
    shift = jnp.pad(shift, (0, coutp - c)).reshape(1, coutp).astype(jnp.float32)
    return scale, shift


# ---------------------------------------------------------------------------
# Pure-JAX reference (mirrors the kernel's bf16 operand quantization)
# ---------------------------------------------------------------------------
def _ref_conv_bn(x, w_oihw, bn, relu, eps=1e-5):
    gamma, beta, mean, var = bn
    w = jnp.transpose(w_oihw, (2, 3, 1, 0)).astype(jnp.bfloat16)            # HWIO
    y = jax.lax.conv_general_dilated(
        x.astype(jnp.bfloat16), w, window_strides=(1, 1), padding="SAME",
        dimension_numbers=("NHWC", "HWIO", "NHWC"),
        preferred_element_type=jnp.float32)
    scale = gamma / jnp.sqrt(var + eps)
    shift = beta - mean * scale
    y = y * scale + shift
    return jnp.maximum(y, 0.0) if relu else y


def _ref_basic_block(x, raw):
    out1 = _ref_conv_bn(x, raw["w1"], raw["bn1"], relu=True)
    y = _ref_conv_bn(out1, raw["w2"], raw["bn2"], relu=False)
    if raw["is_downsample"]:
        res = _ref_conv_bn(x, raw["wd"], raw["bnd"], relu=False)
    else:
        res = x.astype(jnp.bfloat16).astype(jnp.float32)
    return jnp.maximum(y + res, 0.0)


# ---------------------------------------------------------------------------
# Deterministic test
# ---------------------------------------------------------------------------
def _rand_bn(keys, c):
    kg, kb, km, kv = keys
    gamma = 1.0 + 0.1 * jax.random.normal(kg, (c,), jnp.float32)
    beta = 0.1 * jax.random.normal(kb, (c,), jnp.float32)
    mean = 0.1 * jax.random.normal(km, (c,), jnp.float32)
    var = jnp.abs(jax.random.normal(kv, (c,), jnp.float32)) + 0.5
    return gamma, beta, mean, var


def _run_case(key, N, Cin, Cout, H, W):
    ks = jax.random.split(key, 16)
    x_nchw = jax.random.normal(ks[0], (N, Cin, H, W), jnp.float32)
    x = jnp.transpose(x_nchw, (0, 2, 3, 1))                 # NCHW -> NHWC (channels on lanes)

    raw = {
        "w1": 0.1 * jax.random.normal(ks[1], (Cout, Cin, 3, 3), jnp.float32),
        "bn1": _rand_bn(ks[2:6], Cout),
        "w2": 0.1 * jax.random.normal(ks[6], (Cout, Cout, 3, 3), jnp.float32),
        "bn2": _rand_bn(ks[7:11], Cout),
        "wd": 0.1 * jax.random.normal(ks[11], (Cout, Cin, 3, 3), jnp.float32),
        "bnd": _rand_bn(ks[12:16], Cout),
        "is_downsample": Cin != Cout,
    }

    Cinp, Coutp = _ceil_to(Cin, LANE), _ceil_to(Cout, LANE)
    params = {
        "cout": Cout,
        "is_downsample": raw["is_downsample"],
        "conv1": (prep_conv_weight(raw["w1"], Cinp, Coutp), *prep_bn(*raw["bn1"], Coutp)),
        "conv2": (prep_conv_weight(raw["w2"], Coutp, Coutp), *prep_bn(*raw["bn2"], Coutp)),
        "down": (prep_conv_weight(raw["wd"], Cinp, Coutp), *prep_bn(*raw["bnd"], Coutp)),
    }

    out = jax.block_until_ready(basic_block(x, params))
    ref = _ref_basic_block(x, raw)
    assert out.shape == (N, H, W, Cout), out.shape
    err = float(jnp.max(jnp.abs(out - ref)))
    assert err < 2e-2, f"mismatch vs JAX reference: max abs err = {err}"


if __name__ == "__main__":
    key = jax.random.PRNGKey(0)
    k1, k2, k3 = jax.random.split(key, 3)
    _run_case(k1, N=2, Cin=4, Cout=8, H=16, W=16)   # downsample residual, 2 H-tiles
    _run_case(k2, N=1, Cin=8, Cout=8, H=8, W=16)    # identity residual, batch 1
    _run_case(k3, N=1, Cin=4, Cout=8, H=32, W=64)   # downsample, 4 H-tiles (middle tiles)
    print("KERNEL_OK")
</pallas_src>

<mosaic_0001>
module attributes {stable_mosaic.version = 11 : i64} {
  func.func @_block_ds_kernel(%arg0: i32, %arg1: i32, %arg2: memref<1x16x16x128xbf16, #tpu.memory_space<vmem>>, %arg3: memref<1152x128xbf16, #tpu.memory_space<vmem>>, %arg4: memref<1x128xf32, #tpu.memory_space<vmem>>, %arg5: memref<1x128xf32, #tpu.memory_space<vmem>>, %arg6: memref<1152x128xbf16, #tpu.memory_space<vmem>>, %arg7: memref<1x128xf32, #tpu.memory_space<vmem>>, %arg8: memref<1x128xf32, #tpu.memory_space<vmem>>, %arg9: memref<1152x128xbf16, #tpu.memory_space<vmem>>, %arg10: memref<1x128xf32, #tpu.memory_space<vmem>>, %arg11: memref<1x128xf32, #tpu.memory_space<vmem>>, %arg12: memref<1x8x16x128xf32, #tpu.memory_space<vmem>>, %arg13: memref<12x40x128xbf16, #tpu.memory_space<vmem>>, %arg14: memref<160x1152xbf16, #tpu.memory_space<vmem>>, %arg15: memref<10x40x128xbf16, #tpu.memory_space<vmem>>, %arg16: memref<128x1152xbf16, #tpu.memory_space<vmem>>) attributes {dimension_semantics = [#tpu.dimension_semantics<parallel>, #tpu.dimension_semantics<parallel>], iteration_bounds = array<i64: 2, 2>, scalar_prefetch = 0 : i64, scratch_operands = 4 : i64, tpu.core_type = #tpu.core_type<tc>, window_params = [{transform_indices = @transform_0, window_bounds = array<i64: 1, 16, 16, 128>}, {pipeline_mode = #tpu.pipeline_mode<synchronous>, transform_indices = @transform_1, window_bounds = array<i64: 1152, 128>}, {pipeline_mode = #tpu.pipeline_mode<synchronous>, transform_indices = @transform_2, window_bounds = array<i64: 1, 128>}, {pipeline_mode = #tpu.pipeline_mode<synchronous>, transform_indices = @transform_3, window_bounds = array<i64: 1, 128>}, {pipeline_mode = #tpu.pipeline_mode<synchronous>, transform_indices = @transform_4, window_bounds = array<i64: 1152, 128>}, {pipeline_mode = #tpu.pipeline_mode<synchronous>, transform_indices = @transform_5, window_bounds = array<i64: 1, 128>}, {pipeline_mode = #tpu.pipeline_mode<synchronous>, transform_indices = @transform_6, window_bounds = array<i64: 1, 128>}, {pipeline_mode = #tpu.pipeline_mode<synchronous>, transform_indices = @transform_7, window_bounds = array<i64: 1152, 128>}, {pipeline_mode = #tpu.pipeline_mode<synchronous>, transform_indices = @transform_8, window_bounds = array<i64: 1, 128>}, {pipeline_mode = #tpu.pipeline_mode<synchronous>, transform_indices = @transform_9, window_bounds = array<i64: 1, 128>}, {transform_indices = @transform_10, window_bounds = array<i64: 1, 8, 16, 128>}]} {
    %cst = arith.constant 0.000000e+00 : bf16
    %0 = vector.broadcast %cst : bf16 to vector<12x40x128xbf16>
    %c0 = arith.constant 0 : index
    %c0_0 = arith.constant 0 : index
    %c0_1 = arith.constant 0 : index
    %1 = vector.load %arg13[%c0, %c0_0, %c0_1] : memref<12x40x128xbf16, #tpu.memory_space<vmem>>, vector<12x40x128xbf16>
    tpu.vector_store %arg13[%c0, %c0_0, %c0_1], %0 {strides = array<i32>} : memref<12x40x128xbf16, #tpu.memory_space<vmem>>, vector<12x40x128xbf16>,
    %c0_i32 = arith.constant 0 : i32
    %2 = arith.cmpi eq, %arg1, %c0_i32 : i32
    %3 = arith.extui %2 : i1 to i32
    %c0_i32_2 = arith.constant 0 : i32
    %4 = arith.cmpi ne, %3, %c0_i32_2 : i32
    scf.if %4 {
      %c0_94 = arith.constant 0 : index
      %c0_95 = arith.constant 0 : index
      %c0_96 = arith.constant 0 : index
      %c0_97 = arith.constant 0 : index
      %118 = vector.load %arg2[%c0_94, %c0_95, %c0_96, %c0_97] : memref<1x16x16x128xbf16, #tpu.memory_space<vmem>>, vector<1x10x16x128xbf16>
      %119 = vector.shape_cast %118 : vector<1x10x16x128xbf16> to vector<10x16x128xbf16>
      %c2 = arith.constant 2 : index
      %c16_98 = arith.constant 16 : index
      %c0_99 = arith.constant 0 : index
      %120 = vector.load %arg13[%c2, %c16_98, %c0_99] : memref<12x40x128xbf16, #tpu.memory_space<vmem>>, vector<10x16x128xbf16>
      tpu.vector_store %arg13[%c2, %c16_98, %c0_99], %119 {strides = array<i32>} : memref<12x40x128xbf16, #tpu.memory_space<vmem>>, vector<10x16x128xbf16>,
    } else {
    }
    %c1_i32 = arith.constant 1 : i32
    %5 = arith.cmpi eq, %arg1, %c1_i32 : i32
    %6 = arith.extui %5 : i1 to i32
    %c0_i32_3 = arith.constant 0 : i32
    %7 = arith.cmpi ne, %6, %c0_i32_3 : i32
    scf.if %7 {
      %c8_i32 = arith.constant 8 : i32
      %118 = arith.muli %arg1, %c8_i32 : i32
      %c2_i32 = arith.constant 2 : i32
      %119 = arith.subi %118, %c2_i32 : i32
      %c0_94 = arith.constant 0 : index
      %120 = arith.index_cast %119 : i32 to index
      %c0_95 = arith.constant 0 : index
      %c0_96 = arith.constant 0 : index
      %121 = vector.load %arg2[%c0_94, %120, %c0_95, %c0_96] : memref<1x16x16x128xbf16, #tpu.memory_space<vmem>>, vector<1x10x16x128xbf16>
      %122 = vector.shape_cast %121 : vector<1x10x16x128xbf16> to vector<10x16x128xbf16>
      %c0_97 = arith.constant 0 : index
      %c16_98 = arith.constant 16 : index
      %c0_99 = arith.constant 0 : index
      %123 = vector.load %arg13[%c0_97, %c16_98, %c0_99] : memref<12x40x128xbf16, #tpu.memory_space<vmem>>, vector<10x16x128xbf16>
      tpu.vector_store %arg13[%c0_97, %c16_98, %c0_99], %122 {strides = array<i32>} : memref<12x40x128xbf16, #tpu.memory_space<vmem>>, vector<10x16x128xbf16>,
    } else {
    }
    %c0_i32_4 = arith.constant 0 : i32
    %8 = arith.cmpi sgt, %arg1, %c0_i32_4 : i32
    %c1_i32_5 = arith.constant 1 : i32
    %9 = arith.cmpi slt, %arg1, %c1_i32_5 : i32
    %10 = arith.andi %8, %9 : i1
    %11 = arith.extui %10 : i1 to i32
    %c0_i32_6 = arith.constant 0 : i32
    %12 = arith.cmpi ne, %11, %c0_i32_6 : i32
    scf.if %12 {
      %c8_i32 = arith.constant 8 : i32
      %118 = arith.muli %arg1, %c8_i32 : i32
      %c2_i32 = arith.constant 2 : i32
      %119 = arith.subi %118, %c2_i32 : i32
      %c0_94 = arith.constant 0 : index
      %120 = arith.index_cast %119 : i32 to index
      %c0_95 = arith.constant 0 : index
      %c0_96 = arith.constant 0 : index
      %121 = vector.load %arg2[%c0_94, %120, %c0_95, %c0_96] : memref<1x16x16x128xbf16, #tpu.memory_space<vmem>>, vector<1x12x16x128xbf16>
      %122 = vector.shape_cast %121 : vector<1x12x16x128xbf16> to vector<12x16x128xbf16>
      %c0_97 = arith.constant 0 : index
      %c16_98 = arith.constant 16 : index
      %c0_99 = arith.constant 0 : index
      %123 = vector.load %arg13[%c0_97, %c16_98, %c0_99] : memref<12x40x128xbf16, #tpu.memory_space<vmem>>, vector<12x16x128xbf16>
      tpu.vector_store %arg13[%c0_97, %c16_98, %c0_99], %122 {strides = array<i32>} : memref<12x40x128xbf16, #tpu.memory_space<vmem>>, vector<12x16x128xbf16>,
    } else {
    }
    %c0_7 = arith.constant 0 : index
    %c15 = arith.constant 15 : index
    %c0_8 = arith.constant 0 : index
    %13 = vector.load %arg13[%c0_7, %c15, %c0_8] : memref<12x40x128xbf16, #tpu.memory_space<vmem>>, vector<12x16x128xbf16>
    %14 = vector.extract_strided_slice %13 {offsets = [0, 0, 0], sizes = [10, 16, 128], strides = [1, 1, 1]} : vector<12x16x128xbf16> to vector<10x16x128xbf16>
    %15 = vector.shape_cast %14 : vector<10x16x128xbf16> to vector<160x128xbf16>
    %c0_9 = arith.constant 0 : index
    %c0_10 = arith.constant 0 : index
    %16 = vector.load %arg14[%c0_9, %c0_10] : memref<160x1152xbf16, #tpu.memory_space<vmem>>, vector<160x128xbf16>
    tpu.vector_store %arg14[%c0_9, %c0_10], %15 {strides = array<i32>} : memref<160x1152xbf16, #tpu.memory_space<vmem>>, vector<160x128xbf16>,
    %17 = vector.extract_strided_slice %13 {offsets = [1, 0, 0], sizes = [10, 16, 128], strides = [1, 1, 1]} : vector<12x16x128xbf16> to vector<10x16x128xbf16>
    %18 = vector.shape_cast %17 : vector<10x16x128xbf16> to vector<160x128xbf16>
    %c0_11 = arith.constant 0 : index
    %c384 = arith.constant 384 : index
    %19 = vector.load %arg14[%c0_11, %c384] : memref<160x1152xbf16, #tpu.memory_space<vmem>>, vector<160x128xbf16>
    tpu.vector_store %arg14[%c0_11, %c384], %18 {strides = array<i32>} : memref<160x1152xbf16, #tpu.memory_space<vmem>>, vector<160x128xbf16>,
    %20 = vector.extract_strided_slice %13 {offsets = [2, 0, 0], sizes = [10, 16, 128], strides = [1, 1, 1]} : vector<12x16x128xbf16> to vector<10x16x128xbf16>
    %21 = vector.shape_cast %20 : vector<10x16x128xbf16> to vector<160x128xbf16>
    %c0_12 = arith.constant 0 : index
    %c768 = arith.constant 768 : index
    %22 = vector.load %arg14[%c0_12, %c768] : memref<160x1152xbf16, #tpu.memory_space<vmem>>, vector<160x128xbf16>
    tpu.vector_store %arg14[%c0_12, %c768], %21 {strides = array<i32>} : memref<160x1152xbf16, #tpu.memory_space<vmem>>, vector<160x128xbf16>,
    %c0_13 = arith.constant 0 : index
    %c16 = arith.constant 16 : index
    %c0_14 = arith.constant 0 : index
    %23 = vector.load %arg13[%c0_13, %c16, %c0_14] : memref<12x40x128xbf16, #tpu.memory_space<vmem>>, vector<12x16x128xbf16>
    %24 = vector.extract_strided_slice %23 {offsets = [0, 0, 0], sizes = [10, 16, 128], strides = [1, 1, 1]} : vector<12x16x128xbf16> to vector<10x16x128xbf16>
    %25 = vector.shape_cast %24 : vector<10x16x128xbf16> to vector<160x128xbf16>
    %c0_15 = arith.constant 0 : index
    %c128 = arith.constant 128 : index
    %26 = vector.load %arg14[%c0_15, %c128] : memref<160x1152xbf16, #tpu.memory_space<vmem>>, vector<160x128xbf16>
    tpu.vector_store %arg14[%c0_15, %c128], %25 {strides = array<i32>} : memref<160x1152xbf16, #tpu.memory_space<vmem>>, vector<160x128xbf16>,
    %27 = vector.extract_strided_slice %23 {offsets = [1, 0, 0], sizes = [10, 16, 128], strides = [1, 1, 1]} : vector<12x16x128xbf16> to vector<10x16x128xbf16>
    %28 = vector.shape_cast %27 : vector<10x16x128xbf16> to vector<160x128xbf16>
    %c0_16 = arith.constant 0 : index
    %c512 = arith.constant 512 : index
    %29 = vector.load %arg14[%c0_16, %c512] : memref<160x1152xbf16, #tpu.memory_space<vmem>>, vector<160x128xbf16>
    tpu.vector_store %arg14[%c0_16, %c512], %28 {strides = array<i32>} : memref<160x1152xbf16, #tpu.memory_space<vmem>>, vector<160x128xbf16>,
    %30 = vector.extract_strided_slice %23 {offsets = [2, 0, 0], sizes = [10, 16, 128], strides = [1, 1, 1]} : vector<12x16x128xbf16> to vector<10x16x128xbf16>
    %31 = vector.shape_cast %30 : vector<10x16x128xbf16> to vector<160x128xbf16>
    %c0_17 = arith.constant 0 : index
    %c896 = arith.constant 896 : index
    %32 = vector.load %arg14[%c0_17, %c896] : memref<160x1152xbf16, #tpu.memory_space<vmem>>, vector<160x128xbf16>
    tpu.vector_store %arg14[%c0_17, %c896], %31 {strides = array<i32>} : memref<160x1152xbf16, #tpu.memory_space<vmem>>, vector<160x128xbf16>,
    %c0_18 = arith.constant 0 : index
    %c17 = arith.constant 17 : index
    %c0_19 = arith.constant 0 : index
    %33 = vector.load %arg13[%c0_18, %c17, %c0_19] : memref<12x40x128xbf16, #tpu.memory_space<vmem>>, vector<12x16x128xbf16>
    %34 = vector.extract_strided_slice %33 {offsets = [0, 0, 0], sizes = [10, 16, 128], strides = [1, 1, 1]} : vector<12x16x128xbf16> to vector<10x16x128xbf16>
    %35 = vector.shape_cast %34 : vector<10x16x128xbf16> to vector<160x128xbf16>
    %c0_20 = arith.constant 0 : index
    %c256 = arith.constant 256 : index
    %36 = vector.load %arg14[%c0_20, %c256] : memref<160x1152xbf16, #tpu.memory_space<vmem>>, vector<160x128xbf16>
    tpu.vector_store %arg14[%c0_20, %c256], %35 {strides = array<i32>} : memref<160x1152xbf16, #tpu.memory_space<vmem>>, vector<160x128xbf16>,
    %37 = vector.extract_strided_slice %33 {offsets = [1, 0, 0], sizes = [10, 16, 128], strides = [1, 1, 1]} : vector<12x16x128xbf16> to vector<10x16x128xbf16>
    %38 = vector.shape_cast %37 : vector<10x16x128xbf16> to vector<160x128xbf16>
    %c0_21 = arith.constant 0 : index
    %c640 = arith.constant 640 : index
    %39 = vector.load %arg14[%c0_21, %c640] : memref<160x1152xbf16, #tpu.memory_space<vmem>>, vector<160x128xbf16>
    tpu.vector_store %arg14[%c0_21, %c640], %38 {strides = array<i32>} : memref<160x1152xbf16, #tpu.memory_space<vmem>>, vector<160x128xbf16>,
    %40 = vector.extract_strided_slice %33 {offsets = [2, 0, 0], sizes = [10, 16, 128], strides = [1, 1, 1]} : vector<12x16x128xbf16> to vector<10x16x128xbf16>
    %41 = vector.shape_cast %40 : vector<10x16x128xbf16> to vector<160x128xbf16>
    %c0_22 = arith.constant 0 : index
    %c1024 = arith.constant 1024 : index
    %42 = vector.load %arg14[%c0_22, %c1024] : memref<160x1152xbf16, #tpu.memory_space<vmem>>, vector<160x128xbf16>
    tpu.vector_store %arg14[%c0_22, %c1024], %41 {strides = array<i32>} : memref<160x1152xbf16, #tpu.memory_space<vmem>>, vector<160x128xbf16>,
    %c0_23 = arith.constant 0 : index
    %c0_24 = arith.constant 0 : index
    %43 = vector.load %arg14[%c0_23, %c0_24] : memref<160x1152xbf16, #tpu.memory_space<vmem>>, vector<160x1152xbf16>
    %c0_25 = arith.constant 0 : index
    %c0_26 = arith.constant 0 : index
    %44 = vector.load %arg3[%c0_25, %c0_26] : memref<1152x128xbf16, #tpu.memory_space<vmem>>, vector<1152x128xbf16>
    %cst_27 = arith.constant dense<0.000000e+00> : vector<160x128xf32>
    %45 = tpu.matmul %43, %44, %cst_27 {dimension_numbers = #tpu.dot_dimension_numbers<[1], [0], [0], [1], [0, 0, 1, 1], [], []>} : vector<160x1152xbf16>, vector<1152x128xbf16>, vector<160x128xf32> -> vector<160x128xf32>
    %c0_28 = arith.constant 0 : index
    %c0_29 = arith.constant 0 : index
    %46 = vector.load %arg4[%c0_28, %c0_29] : memref<1x128xf32, #tpu.memory_space<vmem>>, vector<1x128xf32>
    %47 = vector.broadcast %46 : vector<1x128xf32> to vector<160x128xf32>
    %48 = arith.mulf %45, %47 : vector<160x128xf32>
    %c0_30 = arith.constant 0 : index
    %c0_31 = arith.constant 0 : index
    %49 = vector.load %arg5[%c0_30, %c0_31] : memref<1x128xf32, #tpu.memory_space<vmem>>, vector<1x128xf32>
    %50 = vector.broadcast %49 : vector<1x128xf32> to vector<160x128xf32>
    %51 = arith.addf %48, %50 : vector<160x128xf32>
    %cst_32 = arith.constant 0.000000e+00 : f32
    %52 = vector.broadcast %cst_32 : f32 to vector<160x128xf32>
    %53 = arith.maximumf %51, %52 : vector<160x128xf32>
    %cst_33 = arith.constant 0.000000e+00 : bf16
    %54 = vector.broadcast %cst_33 : bf16 to vector<10x40x128xbf16>
    %c0_34 = arith.constant 0 : index
    %c0_35 = arith.constant 0 : index
    %c0_36 = arith.constant 0 : index
    %55 = vector.load %arg15[%c0_34, %c0_35, %c0_36] : memref<10x40x128xbf16, #tpu.memory_space<vmem>>, vector<10x40x128xbf16>
    tpu.vector_store %arg15[%c0_34, %c0_35, %c0_36], %54 {strides = array<i32>} : memref<10x40x128xbf16, #tpu.memory_space<vmem>>, vector<10x40x128xbf16>,
    %56 = vector.shape_cast %53 : vector<160x128xf32> to vector<10x16x128xf32>
    %57 = arith.truncf %56 : vector<10x16x128xf32> to vector<10x16x128xbf16>
    %c0_37 = arith.constant 0 : index
    %c16_38 = arith.constant 16 : index
    %c0_39 = arith.constant 0 : index
    %58 = vector.load %arg15[%c0_37, %c16_38, %c0_39] : memref<10x40x128xbf16, #tpu.memory_space<vmem>>, vector<10x16x128xbf16>
    tpu.vector_store %arg15[%c0_37, %c16_38, %c0_39], %57 {strides = array<i32>} : memref<10x40x128xbf16, #tpu.memory_space<vmem>>, vector<10x16x128xbf16>,
    %c0_i32_40 = arith.constant 0 : i32
    %59 = arith.cmpi eq, %arg1, %c0_i32_40 : i32
    %60 = arith.extui %59 : i1 to i32
    %c0_i32_41 = arith.constant 0 : i32
    %61 = arith.cmpi ne, %60, %c0_i32_41 : i32
    scf.if %61 {
      %cst_94 = arith.constant 0.000000e+00 : bf16
      %118 = vector.broadcast %cst_94 : bf16 to vector<1x16x128xbf16>
      %c0_95 = arith.constant 0 : index
      %c16_96 = arith.constant 16 : index
      %c0_97 = arith.constant 0 : index
      %119 = vector.load %arg15[%c0_95, %c16_96, %c0_97] : memref<10x40x128xbf16, #tpu.memory_space<vmem>>, vector<1x16x128xbf16>
      tpu.vector_store %arg15[%c0_95, %c16_96, %c0_97], %118 {strides = array<i32>} : memref<10x40x128xbf16, #tpu.memory_space<vmem>>, vector<1x16x128xbf16>,
    } else {
    }
    %c1_i32_42 = arith.constant 1 : i32
    %62 = arith.cmpi eq, %arg1, %c1_i32_42 : i32
    %63 = arith.extui %62 : i1 to i32
    %c0_i32_43 = arith.constant 0 : i32
    %64 = arith.cmpi ne, %63, %c0_i32_43 : i32
    scf.if %64 {
      %cst_94 = arith.constant 0.000000e+00 : bf16
      %118 = vector.broadcast %cst_94 : bf16 to vector<1x16x128xbf16>
      %c9 = arith.constant 9 : index
      %c16_95 = arith.constant 16 : index
      %c0_96 = arith.constant 0 : index
      %119 = vector.load %arg15[%c9, %c16_95, %c0_96] : memref<10x40x128xbf16, #tpu.memory_space<vmem>>, vector<1x16x128xbf16>
      tpu.vector_store %arg15[%c9, %c16_95, %c0_96], %118 {strides = array<i32>} : memref<10x40x128xbf16, #tpu.memory_space<vmem>>, vector<1x16x128xbf16>,
    } else {
    }
    %c0_44 = arith.constant 0 : index
    %c15_45 = arith.constant 15 : index
    %c0_46 = arith.constant 0 : index
    %65 = vector.load %arg15[%c0_44, %c15_45, %c0_46] : memref<10x40x128xbf16, #tpu.memory_space<vmem>>, vector<10x16x128xbf16>
    %66 = vector.extract_strided_slice %65 {offsets = [0, 0, 0], sizes = [8, 16, 128], strides = [1, 1, 1]} : vector<10x16x128xbf16> to vector<8x16x128xbf16>
    %67 = vector.shape_cast %66 : vector<8x16x128xbf16> to vector<128x128xbf16>
    %c0_47 = arith.constant 0 : index
    %c0_48 = arith.constant 0 : index
    %68 = vector.load %arg16[%c0_47, %c0_48] : memref<128x1152xbf16, #tpu.memory_space<vmem>>, vector<128x128xbf16>
    tpu.vector_store %arg16[%c0_47, %c0_48], %67 {strides = array<i32>} : memref<128x1152xbf16, #tpu.memory_space<vmem>>, vector<128x128xbf16>,
    %69 = vector.extract_strided_slice %65 {offsets = [1, 0, 0], sizes = [8, 16, 128], strides = [1, 1, 1]} : vector<10x16x128xbf16> to vector<8x16x128xbf16>
    %70 = vector.shape_cast %69 : vector<8x16x128xbf16> to vector<128x128xbf16>
    %c0_49 = arith.constant 0 : index
    %c384_50 = arith.constant 384 : index
    %71 = vector.load %arg16[%c0_49, %c384_50] : memref<128x1152xbf16, #tpu.memory_space<vmem>>, vector<128x128xbf16>
    tpu.vector_store %arg16[%c0_49, %c384_50], %70 {strides = array<i32>} : memref<128x1152xbf16, #tpu.memory_space<vmem>>, vector<128x128xbf16>,
    %72 = vector.extract_strided_slice %65 {offsets = [2, 0, 0], sizes = [8, 16, 128], strides = [1, 1, 1]} : vector<10x16x128xbf16> to vector<8x16x128xbf16>
    %73 = vector.shape_cast %72 : vector<8x16x128xbf16> to vector<128x128xbf16>
    %c0_51 = arith.constant 0 : index
    %c768_52 = arith.constant 768 : index
    %74 = vector.load %arg16[%c0_51, %c768_52] : memref<128x1152xbf16, #tpu.memory_space<vmem>>, vector<128x128xbf16>
    tpu.vector_store %arg16[%c0_51, %c768_52], %73 {strides = array<i32>} : memref<128x1152xbf16, #tpu.memory_space<vmem>>, vector<128x128xbf16>,
    %c0_53 = arith.constant 0 : index
    %c16_54 = arith.constant 16 : index
    %c0_55 = arith.constant 0 : index
    %75 = vector.load %arg15[%c0_53, %c16_54, %c0_55] : memref<10x40x128xbf16, #tpu.memory_space<vmem>>, vector<10x16x128xbf16>
    %76 = vector.extract_strided_slice %75 {offsets = [0, 0, 0], sizes = [8, 16, 128], strides = [1, 1, 1]} : vector<10x16x128xbf16> to vector<8x16x128xbf16>
    %77 = vector.shape_cast %76 : vector<8x16x128xbf16> to vector<128x128xbf16>
    %c0_56 = arith.constant 0 : index
    %c128_57 = arith.constant 128 : index
    %78 = vector.load %arg16[%c0_56, %c128_57] : memref<128x1152xbf16, #tpu.memory_space<vmem>>, vector<128x128xbf16>
    tpu.vector_store %arg16[%c0_56, %c128_57], %77 {strides = array<i32>} : memref<128x1152xbf16, #tpu.memory_space<vmem>>, vector<128x128xbf16>,
    %79 = vector.extract_strided_slice %75 {offsets = [1, 0, 0], sizes = [8, 16, 128], strides = [1, 1, 1]} : vector<10x16x128xbf16> to vector<8x16x128xbf16>
    %80 = vector.shape_cast %79 : vector<8x16x128xbf16> to vector<128x128xbf16>
    %c0_58 = arith.constant 0 : index
    %c512_59 = arith.constant 512 : index
    %81 = vector.load %arg16[%c0_58, %c512_59] : memref<128x1152xbf16, #tpu.memory_space<vmem>>, vector<128x128xbf16>
    tpu.vector_store %arg16[%c0_58, %c512_59], %80 {strides = array<i32>} : memref<128x1152xbf16, #tpu.memory_space<vmem>>, vector<128x128xbf16>,
    %82 = vector.extract_strided_slice %75 {offsets = [2, 0, 0], sizes = [8, 16, 128], strides = [1, 1, 1]} : vector<10x16x128xbf16> to vector<8x16x128xbf16>
    %83 = vector.shape_cast %82 : vector<8x16x128xbf16> to vector<128x128xbf16>
    %c0_60 = arith.constant 0 : index
    %c896_61 = arith.constant 896 : index
    %84 = vector.load %arg16[%c0_60, %c896_61] : memref<128x1152xbf16, #tpu.memory_space<vmem>>, vector<128x128xbf16>
    tpu.vector_store %arg16[%c0_60, %c896_61], %83 {strides = array<i32>} : memref<128x1152xbf16, #tpu.memory_space<vmem>>, vector<128x128xbf16>,
    %c0_62 = arith.constant 0 : index
    %c17_63 = arith.constant 17 : index
    %c0_64 = arith.constant 0 : index
    %85 = vector.load %arg15[%c0_62, %c17_63, %c0_64] : memref<10x40x128xbf16, #tpu.memory_space<vmem>>, vector<10x16x128xbf16>
    %86 = vector.extract_strided_slice %85 {offsets = [0, 0, 0], sizes = [8, 16, 128], strides = [1, 1, 1]} : vector<10x16x128xbf16> to vector<8x16x128xbf16>
    %87 = vector.shape_cast %86 : vector<8x16x128xbf16> to vector<128x128xbf16>
    %c0_65 = arith.constant 0 : index
    %c256_66 = arith.constant 256 : index
    %88 = vector.load %arg16[%c0_65, %c256_66] : memref<128x1152xbf16, #tpu.memory_space<vmem>>, vector<128x128xbf16>
    tpu.vector_store %arg16[%c0_65, %c256_66], %87 {strides = array<i32>} : memref<128x1152xbf16, #tpu.memory_space<vmem>>, vector<128x128xbf16>,
    %89 = vector.extract_strided_slice %85 {offsets = [1, 0, 0], sizes = [8, 16, 128], strides = [1, 1, 1]} : vector<10x16x128xbf16> to vector<8x16x128xbf16>
    %90 = vector.shape_cast %89 : vector<8x16x128xbf16> to vector<128x128xbf16>
    %c0_67 = arith.constant 0 : index
    %c640_68 = arith.constant 640 : index
    %91 = vector.load %arg16[%c0_67, %c640_68] : memref<128x1152xbf16, #tpu.memory_space<vmem>>, vector<128x128xbf16>
    tpu.vector_store %arg16[%c0_67, %c640_68], %90 {strides = array<i32>} : memref<128x1152xbf16, #tpu.memory_space<vmem>>, vector<128x128xbf16>,
    %92 = vector.extract_strided_slice %85 {offsets = [2, 0, 0], sizes = [8, 16, 128], strides = [1, 1, 1]} : vector<10x16x128xbf16> to vector<8x16x128xbf16>
    %93 = vector.shape_cast %92 : vector<8x16x128xbf16> to vector<128x128xbf16>
    %c0_69 = arith.constant 0 : index
    %c1024_70 = arith.constant 1024 : index
    %94 = vector.load %arg16[%c0_69, %c1024_70] : memref<128x1152xbf16, #tpu.memory_space<vmem>>, vector<128x128xbf16>
    tpu.vector_store %arg16[%c0_69, %c1024_70], %93 {strides = array<i32>} : memref<128x1152xbf16, #tpu.memory_space<vmem>>, vector<128x128xbf16>,
    %c0_71 = arith.constant 0 : index
    %c0_72 = arith.constant 0 : index
    %95 = vector.load %arg16[%c0_71, %c0_72] : memref<128x1152xbf16, #tpu.memory_space<vmem>>, vector<128x1152xbf16>
    %c0_73 = arith.constant 0 : index
    %c0_74 = arith.constant 0 : index
    %96 = vector.load %arg6[%c0_73, %c0_74] : memref<1152x128xbf16, #tpu.memory_space<vmem>>, vector<1152x128xbf16>
    %cst_75 = arith.constant dense<0.000000e+00> : vector<128x128xf32>
    %97 = tpu.matmul %95, %96, %cst_75 {dimension_numbers = #tpu.dot_dimension_numbers<[1], [0], [0], [1], [0, 0, 1, 1], [], []>} : vector<128x1152xbf16>, vector<1152x128xbf16>, vector<128x128xf32> -> vector<128x128xf32>
    %c0_76 = arith.constant 0 : index
    %c0_77 = arith.constant 0 : index
    %98 = vector.load %arg7[%c0_76, %c0_77] : memref<1x128xf32, #tpu.memory_space<vmem>>, vector<1x128xf32>
    %99 = vector.broadcast %98 : vector<1x128xf32> to vector<128x128xf32>
    %100 = arith.mulf %97, %99 : vector<128x128xf32>
    %c0_78 = arith.constant 0 : index
    %c0_79 = arith.constant 0 : index
    %101 = vector.load %arg8[%c0_78, %c0_79] : memref<1x128xf32, #tpu.memory_space<vmem>>, vector<1x128xf32>
    %102 = vector.broadcast %101 : vector<1x128xf32> to vector<128x128xf32>
    %103 = arith.addf %100, %102 : vector<128x128xf32>
    %c16_80 = arith.constant 16 : index
    %c0_81 = arith.constant 0 : index
    %104 = vector.load %arg14[%c16_80, %c0_81] : memref<160x1152xbf16, #tpu.memory_space<vmem>>, vector<128x1152xbf16>
    %c0_82 = arith.constant 0 : index
    %c0_83 = arith.constant 0 : index
    %105 = vector.load %arg9[%c0_82, %c0_83] : memref<1152x128xbf16, #tpu.memory_space<vmem>>, vector<1152x128xbf16>
    %cst_84 = arith.constant dense<0.000000e+00> : vector<128x128xf32>
    %106 = tpu.matmul %104, %105, %cst_84 {dimension_numbers = #tpu.dot_dimension_numbers<[1], [0], [0], [1], [0, 0, 1, 1], [], []>} : vector<128x1152xbf16>, vector<1152x128xbf16>, vector<128x128xf32> -> vector<128x128xf32>
    %c0_85 = arith.constant 0 : index
    %c0_86 = arith.constant 0 : index
    %107 = vector.load %arg10[%c0_85, %c0_86] : memref<1x128xf32, #tpu.memory_space<vmem>>, vector<1x128xf32>
    %108 = vector.broadcast %107 : vector<1x128xf32> to vector<128x128xf32>
    %109 = arith.mulf %106, %108 : vector<128x128xf32>
    %c0_87 = arith.constant 0 : index
    %c0_88 = arith.constant 0 : index
    %110 = vector.load %arg11[%c0_87, %c0_88] : memref<1x128xf32, #tpu.memory_space<vmem>>, vector<1x128xf32>
    %111 = vector.broadcast %110 : vector<1x128xf32> to vector<128x128xf32>
    %112 = arith.addf %109, %111 : vector<128x128xf32>
    %113 = arith.addf %103, %112 : vector<128x128xf32>
    %cst_89 = arith.constant 0.000000e+00 : f32
    %114 = vector.broadcast %cst_89 : f32 to vector<128x128xf32>
    %115 = arith.maximumf %113, %114 : vector<128x128xf32>
    %116 = vector.shape_cast %115 : vector<128x128xf32> to vector<1x8x16x128xf32>
    %c0_90 = arith.constant 0 : index
    %c0_91 = arith.constant 0 : index
    %c0_92 = arith.constant 0 : index
    %c0_93 = arith.constant 0 : index
    %117 = vector.load %arg12[%c0_90, %c0_91, %c0_92, %c0_93] : memref<1x8x16x128xf32, #tpu.memory_space<vmem>>, vector<1x8x16x128xf32>
    tpu.vector_store %arg12[%c0_90, %c0_91, %c0_92, %c0_93], %116 {strides = array<i32>} : memref<1x8x16x128xf32, #tpu.memory_space<vmem>>, vector<1x8x16x128xf32>,
    return
  }
  func.func @transform_0(%arg0: i32, %arg1: i32) -> (i32, i32, i32, i32) {
    %c0_i32 = arith.constant 0 : i32
    %c0_i32_0 = arith.constant 0 : i32
    %c0_i32_1 = arith.constant 0 : i32
    %c0_i32_2 = arith.constant 0 : i32
    return %arg0, %c0_i32, %c0_i32_0, %c0_i32_1 : i32, i32, i32, i32
  }
  func.func @transform_1(%arg0: i32, %arg1: i32) -> (i32, i32) {
    %c0_i32 = arith.constant 0 : i32
    %c0_i32_0 = arith.constant 0 : i32
    %c0_i32_1 = arith.constant 0 : i32
    return %c0_i32, %c0_i32_0 : i32, i32
  }
  func.func @transform_2(%arg0: i32, %arg1: i32) -> (i32, i32) {
    %c0_i32 = arith.constant 0 : i32
    %c0_i32_0 = arith.constant 0 : i32
    %c0_i32_1 = arith.constant 0 : i32
    return %c0_i32, %c0_i32_0 : i32, i32
  }
  func.func @transform_3(%arg0: i32, %arg1: i32) -> (i32, i32) {
    %c0_i32 = arith.constant 0 : i32
    %c0_i32_0 = arith.constant 0 : i32
    %c0_i32_1 = arith.constant 0 : i32
    return %c0_i32, %c0_i32_0 : i32, i32
  }
  func.func @transform_4(%arg0: i32, %arg1: i32) -> (i32, i32) {
    %c0_i32 = arith.constant 0 : i32
    %c0_i32_0 = arith.constant 0 : i32
    %c0_i32_1 = arith.constant 0 : i32
    return %c0_i32, %c0_i32_0 : i32, i32
  }
  func.func @transform_5(%arg0: i32, %arg1: i32) -> (i32, i32) {
    %c0_i32 = arith.constant 0 : i32
    %c0_i32_0 = arith.constant 0 : i32
    %c0_i32_1 = arith.constant 0 : i32
    return %c0_i32, %c0_i32_0 : i32, i32
  }
  func.func @transform_6(%arg0: i32, %arg1: i32) -> (i32, i32) {
    %c0_i32 = arith.constant 0 : i32
    %c0_i32_0 = arith.constant 0 : i32
    %c0_i32_1 = arith.constant 0 : i32
    return %c0_i32, %c0_i32_0 : i32, i32
  }
  func.func @transform_7(%arg0: i32, %arg1: i32) -> (i32, i32) {
    %c0_i32 = arith.constant 0 : i32
    %c0_i32_0 = arith.constant 0 : i32
    %c0_i32_1 = arith.constant 0 : i32
    return %c0_i32, %c0_i32_0 : i32, i32
  }
  func.func @transform_8(%arg0: i32, %arg1: i32) -> (i32, i32) {
    %c0_i32 = arith.constant 0 : i32
    %c0_i32_0 = arith.constant 0 : i32
    %c0_i32_1 = arith.constant 0 : i32
    return %c0_i32, %c0_i32_0 : i32, i32
  }
  func.func @transform_9(%arg0: i32, %arg1: i32) -> (i32, i32) {
    %c0_i32 = arith.constant 0 : i32
    %c0_i32_0 = arith.constant 0 : i32
    %c0_i32_1 = arith.constant 0 : i32
    return %c0_i32, %c0_i32_0 : i32, i32
  }
  func.func @transform_10(%arg0: i32, %arg1: i32) -> (i32, i32, i32, i32) {
    %c0_i32 = arith.constant 0 : i32
    %c0_i32_0 = arith.constant 0 : i32
    %c0_i32_1 = arith.constant 0 : i32
    return %arg0, %arg1, %c0_i32, %c0_i32_0 : i32, i32, i32, i32
  }
}

</mosaic_0001>

<bundles_post_ra>
// kernel: tpu_custom_call.1
= control target key start
LH: loop header
LB: loop body
LE: loop exit
PB: predicated region body
PF: predicated region fallthrough
CT: control target
= control target key end

     0   :  { %s9915_s0 = inlined_call_operand.hbm [shape: bf16[2,16,16,128], index: 0, kind: input, shape index: {}]   ;;  %s9916_s1 = inlined_call_operand.hbm [shape: bf16[1152,128], index: 1, kind: input, shape index: {}]   ;;  %s9917_s2 = inlined_call_operand.vmem [shape: f32[1,128], index: 2, kind: input, shape index: {}]   ;;  %s9918_s3 = inlined_call_operand.vmem [shape: f32[1,128], index: 3, kind: input, shape index: {}]   ;;  %s9919_s4 = inlined_call_operand.hbm [shape: bf16[1152,128], index: 4, kind: input, shape index: {}]   ;;  %s9920_s5 = inlined_call_operand.vmem [shape: f32[1,128], index: 5, kind: input, shape index: {}]   ;;  %s9921_s6 = inlined_call_operand.vmem [shape: f32[1,128], index: 6, kind: input, shape index: {}]   ;;  %s9922_s7 = inlined_call_operand.hbm [shape: bf16[1152,128], index: 7, kind: input, shape index: {}]   ;;  %s9923_s8 = inlined_call_operand.vmem [shape: f32[1,128], index: 8, kind: input, shape index: {}]   ;;  %s9924_s9 = inlined_call_operand.vmem [shape: f32[1,128], index: 9, kind: input, shape index: {}]   ;;  %s9925_s10 = inlined_call_operand.hbm [shape: f32[2,16,16,128], index: 10, kind: output, shape index: {}]  }
   0x1   :  { %9938 = sst [smem:[#allocation23_spill]] %s9916_s1 }
   0x2   :  { %9939 = sst [smem:[#allocation24_spill]] %s9917_s2 }
   0x3   :  { %9940 = sst [smem:[#allocation25_spill]] %s9918_s3 }
   0x4   :  { %9941 = sst [smem:[#allocation26_spill]] %s9919_s4 }
   0x5   :  { %9942 = sst [smem:[#allocation27_spill]] %s9920_s5 }
   0x6   :  { %9943 = sst [smem:[#allocation28_spill]] %s9921_s6 }
   0x7   :  { %9944 = sst [smem:[#allocation29_spill]] %s9923_s8 }
   0x8   :  { %9945 = sst [smem:[#allocation30_spill]] %s9924_s9 }
   0x9   :  { %9946 = sst [smem:[#allocation31_spill]] %s9925_s10 }
   0xa   :  { %15 = vsyncpa [#allocation7], 0 }
   0xb   :  { %17 = vsyncpa [#allocation7 + $0x1], 0 }
   0xc   :  { %18 = vsyncpa [#allocation10], 0 }
   0xd   :  { %19 = vsyncpa [#allocation13], 0 }
   0xe   :  { %20 = vsyncpa [#allocation8], 0 }
   0xf   :  { %22 = vsyncpa [#allocation8 + $0x1], 0  ;;  %s8419_s13 = smov 0   ;;  %s8421_s14 = smov 0  }
  0x10   :  { %s8423_s15 = smov 0   ;;  %s8425_s16 = smov 0  }
  0x11   :  { %s8427_s17 = smov 0   ;;  %s8429_s18 = smov 0  }
  0x12   :  { %s8431_s19 = smov 0   ;;  %s8433_s20 = smov 0  }
  0x13   :  { %s8435_s21 = smov 0   ;;  %s8437_s22 = smov 0  }
  0x14   :  { %s8439_s23 = smov 0  }
  0x15 LB: > { %9947 = sst [smem:[#allocation19_spill]] %s8310_s13  ;;  %s6324_s24 = sadd.s32 4294967295, %s8350_s23   ;;  %s8350_s23 = sphi %s8439_s23, %s28_s23   ;;  %s8346_s22 = sphi %s8437_s22, %s9994_s22   ;;  %s8342_s21 = sphi %s8435_s21, %s9993_s21   ;;  %s8338_s20 = sphi %s8433_s20, %s9992_s20   ;;  %s8334_s19 = sphi %s8431_s19, %s9991_s19   ;;  %s8330_s18 = sphi %s8429_s18, %s9990_s18   ;;  %s8326_s17 = sphi %s8427_s17, %s9989_s17   ;;  %s8322_s16 = sphi %s8425_s16, %s9988_s16   ;;  %s8318_s15 = sphi %s8423_s15, %s9987_s15   ;;  %s8314_s14 = sphi %s8421_s14, %s9986_s14   ;;  %s8310_s13 = sphi %s8419_s13, %s9985_s13  }
  0x16   : > { %9948 = sst [smem:[#allocation20_spill]] %s8338_s20  ;;  %s6325_s25 = sadd.s32 4294967294, %s8350_s23  }
  0x17   : > { %p60_p0 = scmp.ne.s32.totalorder %s8326_s17, %s8322_s16  ;;  %p8475_p1 = scmp.eq.s32.totalorder %s6324_s24, 0 }
  0x18   : > { %p274_p2 = scmp.ne.s32.totalorder %s8318_s15, %s8314_s14  ;;  %p275_p4 = scmp.eq.s32.totalorder %s6324_s24, 3 }
  0x19   : > { %s9949_s26 = scalar_select %p8475_p1, 1, 0 }
  0x1a   : > { %p8484_p3 = por %p8475_p1, %p60_p0  ;;  %p280_p5 = scmp.ne.s32.totalorder %s8314_s14, %s8310_s13 }
  0x1b   : > { %p281_p6 = scmp.eq.s32.totalorder %s6325_s25, 3  ;;  %p8490_p7 = por %p275_p4, %p274_p2 }
  0x1c   : > { %s9950_s28 = scalar_select %p8484_p3, 1, 0 }
  0x1d   : > { %s9951_s29 = scalar_select %p8490_p7, 1, 0 }
  0x1e   : > { %p6326_p8 = scmp.ge.s32.totalorder %s8350_s23, 1  ;;  %p8495_p9 = por %p281_p6, %p280_p5 }
  0x1f   : > { %9952 = sst [smem:[#allocation21_spill]] %s9951_s29  ;;  %p288_p10 = scmp.lt.s32.totalorder %s8350_s23, 5 }
  0x20   : > { %s9953_s30 = scalar_select %p8495_p9, 1, 0 }
  0x21   : > { %p8500_p11 = pnand %p6326_p8, %p288_p10  ;;  %s8352_s12 = smov [#allocation9]  }
  0x22   : > { %9954 = sst [smem:[#allocation22_spill]] %s9953_s30  ;;  %s300_s16 = sshll.u32 %s8352_s12, 4  ;;  %s8504_s16 = int_to_ptr.vmem [resolvable:$true] %s300_s16 }
  0x23   : > { %s9955_s11 = scalar_select %p8500_p11, 1, 0 }
  0x24   : > { %p7741_p12 = pneg %p8500_p11  ;;  %s8353_s25 = smov [#allocation11]  }
  0x25   : > { %s319_s27 = sshll.u32 %s8353_s25, 4  ;;  %s8354_s30 = smov [#allocation12]   ;;  %s8514_s27 = int_to_ptr.vmem [resolvable:$true] %s319_s27 }
  0x26   : > { %p8510_p13 = pnand %p7741_p12, %p8475_p1  ;;  %s8516_s13 = sshll.u32 %s8354_s30, 4  ;;  %s339_s13 = int_to_ptr.vmem [resolvable:$true] %s8516_s13 }
  0x27   : > { %s9957_s1 = sld [smem:[#allocation23_spill]] }
  0x28   : > { %p8526_p2 = pneg %p8510_p13 }
  0x2d   : > { %s8106_s12 = scalar_lea.hbm %s9957_s1, 9216 }
  0x2e   : > { %p8107_p0 = scmp.ne.s32.totalorder %s9957_s1, %s8106_s12  ;;  %p8113_p6 = scmp.lt.u32.totalorder %s8106_s12, %s9957_s1 }
  0x30   : > { %p8109_p4 = pnand %p8526_p2, %p8107_p0 }
  0x32   : > { %p8110_p5 = pneg %p8109_p4 }
  0x34   : > { %p8115_p8 = pnand %p8113_p6, %p8110_p5 }
  0x36   : > { %8118 = shalt.err (!%p8115_p8)
}
  0x37   : > { %s8119_s9 = scalar_lea.vmem %s8504_s16, 9216  ;;  %p8127_p7 = scmp.lt.s32.totalorder %s8504_s16, %s8504_s16 }
  0x38   : > { %p8120_p10 = scmp.ne.s32.totalorder %s8504_s16, %s8119_s9  ;;  %p8128_p1 = scmp.lt.s32.totalorder %s8119_s9, %s8119_s9 }
  0x3a   : > { %p8122_p12 = pnand %p8120_p10, %p8526_p2  ;;  %p8129_p0 = por %p8128_p1, %p8127_p7 }
  0x3c   : > { %p8123_p9 = pneg %p8122_p12 }
  0x3e   : > { %p8130_p4 = pnand %p8129_p0, %p8123_p9 }
  0x40   : > { %8133 = shalt.err (!%p8130_p4)
}
  0x41   : > { %s9936_s10 = smov 64   ;;  %s9937_s20 = smov 4  }
  0x42   : > { %7744 = dma.hbm_to_vmem [thread:$0]  (!%p8510_p13), %s9957_s1, 9216, %s8504_s16, [#allocation10], %s9936_s10, %s9936_s10, %s9937_s20  }
  0x43   : > { %s9959_s4 = sld [smem:[#allocation26_spill]] }
  0x49   : > { %s8134_s9 = scalar_lea.hbm %s9959_s4, 9216 }
  0x4a   : > { %p8135_p1 = scmp.ne.s32.totalorder %s9959_s4, %s8134_s9  ;;  %p8141_p5 = scmp.lt.u32.totalorder %s8134_s9, %s9959_s4 }
  0x4c   : > { %p8137_p7 = pnand %p8135_p1, %p8526_p2 }
  0x4e   : > { %p8138_p9 = pneg %p8137_p7 }
  0x50   : > { %p8143_p6 = pnand %p8141_p5, %p8138_p9 }
  0x52   : > { %8146 = shalt.err (!%p8143_p6)
}
  0x53   : > { %s8147_s16 = scalar_lea.vmem %s8514_s27, 9216  ;;  %p8155_p0 = scmp.lt.s32.totalorder %s8514_s27, %s8514_s27 }
  0x54   : > { %p8148_p8 = scmp.ne.s32.totalorder %s8514_s27, %s8147_s16  ;;  %p8156_p4 = scmp.lt.s32.totalorder %s8147_s16, %s8147_s16 }
  0x56   : > { %p8150_p10 = pnand %p8148_p8, %p8526_p2  ;;  %p8157_p1 = por %p8156_p4, %p8155_p0 }
  0x58   : > { %p8151_p12 = pneg %p8150_p10 }
  0x5a   : > { %p8158_p7 = pnand %p8157_p1, %p8151_p12 }
  0x5c   : > { %8161 = shalt.err (!%p8158_p7)
}
  0x5d   : > { %7747 = dma.hbm_to_vmem [thread:$0]  (!%p8510_p13), %s9959_s4, 9216, %s8514_s27, [#allocation10], %s9936_s10, %s9936_s10, %s9937_s20  }
  0x5e   : > { %s8162_s29 = scalar_lea.hbm %s9922_s7, 9216 }
  0x5f   : > { %p8163_p9 = scmp.ne.s32.totalorder %s9922_s7, %s8162_s29  ;;  %p8169_p8 = scmp.lt.u32.totalorder %s8162_s29, %s9922_s7 }
  0x61   : > { %p8165_p5 = pnand %p8163_p9, %p8526_p2 }
  0x63   : > { %p8166_p6 = pneg %p8165_p5 }
  0x65   : > { %p8171_p10 = pnand %p8169_p8, %p8166_p6 }
  0x67   : > { %8174 = shalt.err (!%p8171_p10)
}
  0x68   : > { %s8175_s16 = scalar_lea.vmem %s339_s13, 9216  ;;  %p8183_p1 = scmp.lt.s32.totalorder %s339_s13, %s339_s13 }
  0x69   : > { %p8176_p12 = scmp.ne.s32.totalorder %s339_s13, %s8175_s16  ;;  %p8184_p7 = scmp.lt.s32.totalorder %s8175_s16, %s8175_s16 }
  0x6b   : > { %p8178_p0 = pnand %p8176_p12, %p8526_p2  ;;  %p8185_p3 = por %p8184_p7, %p8183_p1 }
  0x6d   : > { %p8179_p4 = pneg %p8178_p0 }
  0x6f   : > { %p8186_p11 = pnand %p8185_p3, %p8179_p4 }
  0x71   : > { %8189 = shalt.err (!%p8186_p11)
}
  0x72   : > { %7750 = dma.hbm_to_vmem [thread:$0]  (!%p8510_p13), %s9922_s7, 9216, %s339_s13, [#allocation13], %s9936_s10, %s9936_s10, %s9937_s20  }
  0x73   : > { %s37_s6 = sadd.s32 1, %s8342_s21  ;;  %s40_s24 = sadd.s32 1, %s8346_s22 }
  0x74   : > { %p38_p3 = scmp.ge.s32.totalorder %s37_s6, 2  ;;  %s47_s3 = sadd.s32 1, %s8330_s18 }
  0x75   : > { %p54_p11 = scmp.ne.s32.totalorder %s8330_s18, %s8326_s17  ;;  %p55_p2 = scmp.eq.s32.totalorder %s8350_s23, 0 }
  0x76   : > { %s9996_s6 = smov (%p38_p3, %s37_s6), 0  ;;  %s9998_s24 = smov (!%p38_p3, %s40_s24), %s8346_s22 }
  0x77   : > { %s260_s5 = ssub.s32 %s8342_s21, %s9996_s6  ;;  %p42_p9 = scmp.ge.s32.totalorder %s9998_s24, 2 }
  0x78   : > { %p7762_p5 = scmp.lt.s32.totalorder %s8350_s23, 4  ;;  %p8610_p13 = por %p55_p2, %p54_p11 }
  0x79   : > { %s358_s8 = sand.u32 1, %s8330_s18   ;;  %s10000_s24 = smov (%p42_p9, %s9998_s24), 0 }
  0x7a   : > { %s6331_s29 = sshll.u32 %s358_s8, 7  ;;  %s44_s12 = ssub.s32 %s8346_s22, %s10000_s24 }
  0x7b   : > { %p45_p6 = scmp.eq.s32.totalorder %s44_s12, 0  ;;  %s261_s25 = sor.u32 %s260_s5, %s44_s12 }
  0x7c   : > { %p262_p8 = scmp.eq.s32.totalorder %s261_s25, 0  ;;  %s6689_s30 = sshll.u32 %s8346_s22, 11 }
  0x7d   : > { %s8621_s9 = scalar_select %p45_p6, %s8330_s18, %s47_s3  }
  0x7e   : > { %s9961_s16 = sadd.s32 1, %s8318_s15  ;;  %s8631_s20 = scalar_lea.hbm %s9915_s0, %s6689_s30 }
  0x7f   : > { %s8626_s27 = scalar_select %p262_p8, %s8318_s15, %s9961_s16  }
  0x80   : > { %s362_s1 = scalar_lea.vmem [#allocation6], %s6331_s29  ;;  %p8639_p10 = pnand %p7762_p5, %p8610_p13 }
  0x81   : > { %s369_s4 = sshll.u32 %s362_s1, 4  ;;  %s8643_s5 = scalar_lea.sflag [#allocation7], %s358_s8  ;;  %s8633_s4 = int_to_ptr.vmem [resolvable:$true] %s369_s4 }
  0x82   : > { %s8190_s10 = scalar_lea.hbm %s8631_s20, 2048  ;;  %p8192_p0 = pneg %p8639_p10 }
  0x83   : > { %p8191_p12 = scmp.ne.s32.totalorder %s8631_s20, %s8190_s10  ;;  %s8195_s13 = scalar_lea.hbm %s9915_s0, 4096 }
  0x84   : > { %p8196_p7 = scmp.lt.u32.totalorder %s8631_s20, %s9915_s0  ;;  %p8197_p3 = scmp.lt.u32.totalorder %s8195_s13, %s8190_s10 }
  0x85   : > { %p8193_p4 = pnand %p8192_p0, %p8191_p12  ;;  %p8199_p2 = scmp.lt.u32.totalorder %s8190_s10, %s8631_s20 }
  0x86   : > { %p8198_p11 = por %p8197_p3, %p8196_p7 }
  0x87   : > { %p8194_p1 = pneg %p8193_p4 }
  0x88   : > { %p8200_p9 = por %p8199_p2, %p8198_p11 }
  0x8a   : > { %p8201_p5 = pnand %p8200_p9, %p8194_p1 }
  0x8c   : > { %8204 = shalt.err (!%p8201_p5)
}
  0x8d   : > { %s8205_s8 = scalar_lea.vmem %s8633_s4, 2048  ;;  %s8357_s30 = smov [#allocation6]  }
  0x8e   : > { %p8206_p13 = scmp.ne.s32.totalorder %s8633_s4, %s8205_s8  ;;  %s8210_s16 = sshll.u32 %s8357_s30, 4  ;;  %s8211_s16 = int_to_ptr.vmem [resolvable:$false] %s8210_s16 }
  0x8f   : > { %s8212_s2 = scalar_lea.vmem %s8211_s16, 4096  ;;  %p8213_p12 = scmp.lt.s32.totalorder %s8633_s4, %s8211_s16 }
  0x90   : > { %p8208_p6 = pnand %p8206_p13, %p8192_p0  ;;  %p8214_p4 = scmp.lt.s32.totalorder %s8212_s2, %s8205_s8 }
  0x92   : > { %p8209_p8 = pneg %p8208_p6  ;;  %p8215_p7 = por %p8214_p4, %p8213_p12 }
  0x94   : > { %p8216_p3 = pnand %p8215_p7, %p8209_p8 }
  0x96   : > { %8219 = shalt.err (!%p8216_p3)
}
  0x97   : > { %s9963_s10 = smov 4   ;;  %s9964_s1 = smov 64  }
  0x98   : > { %7754 = dma.hbm_to_vmem [thread:$0]  (!%p8639_p10), %s8631_s20, 2048, %s8633_s4, %s8643_s5, %s9964_s1, %s9964_s1, %s9963_s10  }
  0x99   : > { %p9965_p0 = scmp.ne.s32.totalorder %s9955_s11, 0 }
  0x9a   : > { %s383_s29 = sand.u32 (!%p9965_p0), 1, %s8326_s17   ;;  %p9966_p1 = scmp.ne.s32.totalorder (!%p9965_p0), %s9950_s28, 0 }
  0x9b   : > { %381 = sbr.rel (%p9965_p0) target bundleno = 1260 (0x4ec), region = 60  ;;  %s6335_s13 = sshll.u32 (!%p9965_p0), %s383_s29, 7 }
  0x9c   : > { %s384_s12 = scalar_lea.sflag (!%p9965_p0), [#allocation7], %s383_s29  ;;  %s8677_s25 = scalar_lea.vmem (!%p9965_p0), [#allocation6], %s6335_s13 }
  0xa2   : > { %8293 = dma.done.wait (%p9966_p1), %s384_s12, 2048  }
  0xa3   : > { %8295 = vsyncadd (%p9966_p1), %s384_s12, 4294965248  ;;  %p9967_p11 = scmp.ne.s32.totalorder %s9949_s26, 0 }
  0xa5   : > { %8297 = dma.done.wait (%p9967_p11), [#allocation10], 18432  }
  0xa6   : > { %8299 = vsyncadd (%p9967_p11), [#allocation10], 4294948864 }
  0xa7   : > { %8301 = dma.done.wait (%p9967_p11), [#allocation13], 9216  }
  0xa8   : > { %8303 = vsyncadd (%p9967_p11), [#allocation13], 4294958080  ;;  %s433_s4 = sand.u32 1, %s8314_s14   ;;  %v8358_v0 = vmov 0   ;;  %p6340_p10 = scmp.ne.s32.totalorder %s8334_s19, 0 }
  0xa9   : > { %s8694_s11 = sshll.u32 %s433_s4, 7  ;;  %439 = vst [vmem:[#allocation2 + $0x4] sm:$0xf] %v8358_v0  ;;  %440 = vst [vmem:[#allocation2 + $0x8] sm:$0xf] %v8358_v0  ;;  %v502_v1 = vld [vmem:[%s8677_s25] sm:$0xff] (!%p6340_p10)  }
  0xaa   : > { %441 = vst [vmem:[#allocation2 + $0xc] sm:$0xf] %v8358_v0  ;;  %442 = vst [vmem:[#allocation2 + $0x10] sm:$0xf] %v8358_v0  ;;  %s8745_s26 = scalar_lea.vmem [#allocation14], %s8694_s11  ;;  %v504_v2 = vld [vmem:[%s8677_s25 + $0x8] sm:$0xff] (!%p6340_p10)  }
  0xab   : > { %444 = vst [vmem:[#allocation2 + $0x18] sm:$0xf] %v8358_v0  ;;  %445 = vst [vmem:[#allocation2 + $0x1c] sm:$0xf] %v8358_v0  ;;  %v506_v3 = vld [vmem:[%s8677_s25 + $0x10] sm:$0xff] (!%p6340_p10)   ;;  %v508_v4 = vld [vmem:[%s8677_s25 + $0x18] sm:$0xff] (!%p6340_p10)  }
  0xac   : > { %446 = vst [vmem:[#allocation2 + $0x20] sm:$0xf] %v8358_v0  ;;  %447 = vst [vmem:[#allocation2 + $0x24] sm:$0xf] %v8358_v0  ;;  %v510_v5 = vld [vmem:[%s8677_s25 + $0x20] sm:$0xff] (!%p6340_p10)   ;;  %v512_v6 = vld [vmem:[%s8677_s25 + $0x28] sm:$0xff] (!%p6340_p10)  }
  0xad   : > { %449 = vst [vmem:[#allocation2 + $0x2c] sm:$0xf] %v8358_v0  ;;  %450 = vst [vmem:[#allocation2 + $0x30] sm:$0xf] %v8358_v0  ;;  %v514_v7 = vld [vmem:[%s8677_s25 + $0x30] sm:$0xff] (!%p6340_p10)   ;;  %v516_v8 = vld [vmem:[%s8677_s25 + $0x38] sm:$0xff] (!%p6340_p10)  }
  0xae   : > { %451 = vst [vmem:[#allocation2 + $0x34] sm:$0xf] %v8358_v0  ;;  %452 = vst [vmem:[#allocation2 + $0x38] sm:$0xf] %v8358_v0  ;;  %v518_v9 = vld [vmem:[%s8677_s25 + $0x40] sm:$0xff] (!%p6340_p10)   ;;  %v520_v10 = vld [vmem:[%s8677_s25 + $0x48] sm:$0xff] (!%p6340_p10)  }
  0xaf   : > { %454 = vst [vmem:[#allocation2 + $0x40] sm:$0xf] %v8358_v0  ;;  %455 = vst [vmem:[#allocation2 + $0x44] sm:$0xf] %v8358_v0 }
  0xb0   : > { %456 = vst [vmem:[#allocation2 + $0x48] sm:$0xf] %v8358_v0  ;;  %457 = vst [vmem:[#allocation2 + $0x4c] sm:$0xf] %v8358_v0 }
  0xb1   : > { %459 = vst [vmem:[#allocation2 + $0x54] sm:$0xf] %v8358_v0  ;;  %460 = vst [vmem:[#allocation2 + $0x58] sm:$0xf] %v8358_v0 }
  0xb2   : > { %461 = vst [vmem:[#allocation2 + $0x5c] sm:$0xf] %v8358_v0  ;;  %462 = vst [vmem:[#allocation2 + $0x60] sm:$0xf] %v8358_v0 }
  0xb3   : > { %464 = vst [vmem:[#allocation2 + $0x68] sm:$0xf] %v8358_v0  ;;  %465 = vst [vmem:[#allocation2 + $0x6c] sm:$0xf] %v8358_v0 }
  0xb4   : > { %466 = vst [vmem:[#allocation2 + $0x70] sm:$0xf] %v8358_v0  ;;  %467 = vst [vmem:[#allocation2 + $0x74] sm:$0xf] %v8358_v0 }
  0xb5   : > { %469 = vst [vmem:[#allocation2 + $0x7c] sm:$0xf] %v8358_v0  ;;  %470 = vst [vmem:[#allocation2 + $0x80] sm:$0xf] %v8358_v0 }
  0xb6   : > { %471 = vst [vmem:[#allocation2 + $0x84] sm:$0xf] %v8358_v0  ;;  %472 = vst [vmem:[#allocation2 + $0x88] sm:$0xf] %v8358_v0 }
  0xb7   : > { %474 = vst [vmem:[#allocation2 + $0x90] sm:$0xf] %v8358_v0  ;;  %475 = vst [vmem:[#allocation2 + $0x94] sm:$0xf] %v8358_v0 }
  0xb8   : > { %476 = vst [vmem:[#allocation2 + $0x98] sm:$0xf] %v8358_v0  ;;  %477 = vst [vmem:[#allocation2 + $0x9c] sm:$0xf] %v8358_v0 }
  0xb9   : > { %479 = vst [vmem:[#allocation2 + $0xa4] sm:$0xf] %v8358_v0  ;;  %480 = vst [vmem:[#allocation2 + $0xa8] sm:$0xf] %v8358_v0 }
  0xba   : > { %481 = vst [vmem:[#allocation2 + $0xac] sm:$0xf] %v8358_v0  ;;  %482 = vst [vmem:[#allocation2 + $0xb0] sm:$0xf] %v8358_v0  ;;  %501 = sbr.rel (%p6340_p10) target bundleno = 198 (0xc6), region = 80 }
  0xbb   : > { %484 = vst [vmem:[#allocation2 + $0xb8] sm:$0xf] %v8358_v0  ;;  %485 = vst [vmem:[#allocation2 + $0xbc] sm:$0xf] %v8358_v0 }
  0xbc   : > { %486 = vst [vmem:[#allocation2 + $0xc0] sm:$0xf] %v8358_v0  ;;  %487 = vst [vmem:[#allocation2 + $0xc4] sm:$0xf] %v8358_v0 }
  0xbd   : > { %489 = vst [vmem:[#allocation2 + $0xcc] sm:$0xf] %v8358_v0  ;;  %490 = vst [vmem:[#allocation2 + $0xd0] sm:$0xf] %v8358_v0 }
  0xbe   : > { %491 = vst [vmem:[#allocation2 + $0xd4] sm:$0xf] %v8358_v0  ;;  %492 = vst [vmem:[#allocation2 + $0xd8] sm:$0xf] %v8358_v0 }
  0xbf   : > { %494 = vst [vmem:[#allocation2 + $0xe0] sm:$0xf] %v8358_v0  ;;  %495 = vst [vmem:[#allocation2 + $0xe4] sm:$0xf] %v8358_v0 }
  0xc0   : > { %496 = vst [vmem:[#allocation2 + $0xe8] sm:$0xf] %v8358_v0  ;;  %497 = vst [vmem:[#allocation2 + $0xec] sm:$0xf] %v8358_v0 }
  0xc1   : > { %523 = vst [vmem:[#allocation2 + $0x30] sm:$0xff] %v502_v1   ;;  %525 = vst [vmem:[#allocation2 + $0x44] sm:$0xff] %v504_v2  }
  0xc2   : > { %527 = vst [vmem:[#allocation2 + $0x58] sm:$0xff] %v506_v3   ;;  %529 = vst [vmem:[#allocation2 + $0x6c] sm:$0xff] %v508_v4  }
  0xc3   : > { %531 = vst [vmem:[#allocation2 + $0x80] sm:$0xff] %v510_v5   ;;  %533 = vst [vmem:[#allocation2 + $0x94] sm:$0xff] %v512_v6  }
  0xc4   : > { %535 = vst [vmem:[#allocation2 + $0xa8] sm:$0xff] %v514_v7   ;;  %537 = vst [vmem:[#allocation2 + $0xbc] sm:$0xff] %v516_v8  }
  0xc5   : > { %539 = vst [vmem:[#allocation2 + $0xd0] sm:$0xff] %v518_v9   ;;  %541 = vst [vmem:[#allocation2 + $0xe4] sm:$0xff] %v520_v10  }
  0xc6 PF: > { %p6341_p2 = scmp.ne.s32.totalorder %s8334_s19, 1 }
  0xc7   : > { %s6342_s28 = sshll.u32 (!%p6341_p2), %s8334_s19, 3 }
  0xc8   : > { %546 = sbr.rel (%p6341_p2) target bundleno = 209 (0xd1), region = 84  ;;  %s6343_s20 = sadd.s32 (!%p6341_p2), 4294967294, %s6342_s28 }
  0xc9   : > { %s6690_s3 = sshll.u32 (!%p6341_p2), %s6343_s20, 3 }
  0xca   : > { %s551_s5 = scalar_lea.vmem (!%p6341_p2), %s8677_s25, %s6690_s3 [#allocation6] }
  0xcb   : > { %v552_v11 = vld [vmem:[%s551_s5] sm:$0xff] (!%p6341_p2)   ;;  %v554_v12 = vld [vmem:[%s551_s5 + $0x8] sm:$0xff] (!%p6341_p2)   ;;  %v556_v13 = vld [vmem:[%s551_s5 + $0x10] sm:$0xff] (!%p6341_p2)  }
  0xcc   : > { %572 = vst [vmem:[#allocation2 + $0x8] sm:$0xff] (!%p6341_p2), %v552_v11   ;;  %574 = vst [vmem:[#allocation2 + $0x1c] sm:$0xff] (!%p6341_p2), %v554_v12   ;;  %v558_v14 = vld [vmem:[%s551_s5 + $0x18] sm:$0xff] (!%p6341_p2)   ;;  %v560_v15 = vld [vmem:[%s551_s5 + $0x20] sm:$0xff] (!%p6341_p2)  }
  0xcd   : > { %576 = vst [vmem:[#allocation2 + $0x30] sm:$0xff] (!%p6341_p2), %v556_v13   ;;  %v562_v16 = vld [vmem:[%s551_s5 + $0x28] sm:$0xff] (!%p6341_p2)   ;;  %578 = vst [vmem:[#allocation2 + $0x44] sm:$0xff] (!%p6341_p2), %v558_v14   ;;  %v564_v17 = vld [vmem:[%s551_s5 + $0x30] sm:$0xff] (!%p6341_p2)  }
  0xce   : > { %580 = vst [vmem:[#allocation2 + $0x58] sm:$0xff] (!%p6341_p2), %v560_v15   ;;  %582 = vst [vmem:[#allocation2 + $0x6c] sm:$0xff] (!%p6341_p2), %v562_v16   ;;  %v566_v18 = vld [vmem:[%s551_s5 + $0x38] sm:$0xff] (!%p6341_p2)   ;;  %v568_v19 = vld [vmem:[%s551_s5 + $0x40] sm:$0xff] (!%p6341_p2)  }
  0xcf   : > { %584 = vst [vmem:[#allocation2 + $0x80] sm:$0xff] %v564_v17   ;;  %586 = vst [vmem:[#allocation2 + $0x94] sm:$0xff] %v566_v18   ;;  %v570_v20 = vld [vmem:[%s551_s5 + $0x48] sm:$0xff]  }
  0xd0   : > { %588 = vst [vmem:[#allocation2 + $0xa8] sm:$0xff] %v568_v19   ;;  %590 = vst [vmem:[#allocation2 + $0xbc] sm:$0xff] %v570_v20  }
  0xd1 PF: > { %p592_p9 = scmp.gt.s32.totalorder %s8334_s19, 0  ;;  %p593_p5 = scmp.lt.s32.totalorder %s8334_s19, 1 }
  0xd3   : > { %p594_p13 = pnand %p593_p5, %p592_p9 }
  0xd4   : > { %s6346_s8 = sshll.u32 (!%p594_p13), %s8334_s19, 3 }
  0xd5   : > { %597 = sbr.rel (%p594_p13) target bundleno = 223 (0xdf), region = 88  ;;  %s6347_s30 = sadd.s32 (!%p594_p13), 4294967294, %s6346_s8 }
  0xd6   : > { %s6691_s16 = sshll.u32 (!%p594_p13), %s6347_s30, 3 }
  0xd7   : > { %s602_s2 = scalar_lea.vmem (!%p594_p13), %s8677_s25, %s6691_s16 [#allocation6] }
  0xd8   : > { %v603_v21 = vld [vmem:[%s602_s2] sm:$0xff] (!%p594_p13)   ;;  %v605_v22 = vld [vmem:[%s602_s2 + $0x8] sm:$0xff] (!%p594_p13)   ;;  %v607_v23 = vld [vmem:[%s602_s2 + $0x10] sm:$0xff] (!%p594_p13)  }
  0xd9   : > { %627 = vst [vmem:[#allocation2 + $0x8] sm:$0xff] (!%p594_p13), %v603_v21   ;;  %629 = vst [vmem:[#allocation2 + $0x1c] sm:$0xff] (!%p594_p13), %v605_v22   ;;  %v609_v24 = vld [vmem:[%s602_s2 + $0x18] sm:$0xff] (!%p594_p13)   ;;  %v611_v25 = vld [vmem:[%s602_s2 + $0x20] sm:$0xff] (!%p594_p13)  }
  0xda   : > { %631 = vst [vmem:[#allocation2 + $0x30] sm:$0xff] (!%p594_p13), %v607_v23   ;;  %v613_v26 = vld [vmem:[%s602_s2 + $0x28] sm:$0xff] (!%p594_p13)   ;;  %633 = vst [vmem:[#allocation2 + $0x44] sm:$0xff] (!%p594_p13), %v609_v24   ;;  %v615_v27 = vld [vmem:[%s602_s2 + $0x30] sm:$0xff] (!%p594_p13)  }
  0xdb   : > { %635 = vst [vmem:[#allocation2 + $0x58] sm:$0xff] (!%p594_p13), %v611_v25   ;;  %637 = vst [vmem:[#allocation2 + $0x6c] sm:$0xff] (!%p594_p13), %v613_v26   ;;  %v617_v28 = vld [vmem:[%s602_s2 + $0x38] sm:$0xff] (!%p594_p13)   ;;  %v619_v29 = vld [vmem:[%s602_s2 + $0x40] sm:$0xff] (!%p594_p13)  }
  0xdc   : > { %639 = vst [vmem:[#allocation2 + $0x80] sm:$0xff] %v615_v27   ;;  %641 = vst [vmem:[#allocation2 + $0x94] sm:$0xff] %v617_v28   ;;  %v621_v30 = vld [vmem:[%s602_s2 + $0x48] sm:$0xff]   ;;  %v623_v31 = vld [vmem:[%s602_s2 + $0x50] sm:$0xff]  }
  0xdd   : > { %643 = vst [vmem:[#allocation2 + $0xa8] sm:$0xff] %v619_v29   ;;  %v625_v32 = vld [vmem:[%s602_s2 + $0x58] sm:$0xff]   ;;  %645 = vst [vmem:[#allocation2 + $0xbc] sm:$0xff] %v621_v30  }
  0xde   : > { %647 = vst [vmem:[#allocation2 + $0xd0] sm:$0xff] %v623_v31   ;;  %649 = vst [vmem:[#allocation2 + $0xe4] sm:$0xff] %v625_v32  }
  0xdf PF: > { %v7865_v33 = vld [vmem:[#allocation9 + $0x40] sm:$0xff]   ;;  %2875 = vst [vmem:[#allocation4 + $0x1c] sm:$0xf] %v8358_v0  ;;  %2876 = vst [vmem:[#allocation4 + $0x20] sm:$0xf] %v8358_v0  ;;  %v7869_v37 = vld [vmem:[#allocation9 + $0x48] sm:$0xff]  }
  0xe0   : > { %2870 = vst [vmem:[#allocation4 + $0x8] sm:$0xf] %v8358_v0  ;;  %2871 = vst [vmem:[#allocation4 + $0xc] sm:$0xf] %v8358_v0  ;;  %v7866_v34 = vld [vmem:[#allocation9 + $0xc0] sm:$0xff]   ;;  %6743 = vmatprep.subr.bf16.mxu0 %v7865_v33  ;;  %v7870_v38 = vld [vmem:[#allocation9 + $0xc8] sm:$0xff]  }
  0xe1   : > { %2885 = vst [vmem:[#allocation4 + $0x44] sm:$0xf] %v8358_v0  ;;  %2886 = vst [vmem:[#allocation4 + $0x48] sm:$0xf] %v8358_v0  ;;  %v7867_v35 = vld [vmem:[#allocation9] sm:$0xff]   ;;  %6819 = vmatprep.subr.bf16.mxu1 %v7866_v34  ;;  %v7871_v39 = vld [vmem:[#allocation9 + $0x8] sm:$0xff]  }
  0xe2   : > { %2880 = vst [vmem:[#allocation4 + $0x30] sm:$0xf] %v8358_v0  ;;  %2881 = vst [vmem:[#allocation4 + $0x34] sm:$0xf] %v8358_v0  ;;  %v7868_v36 = vld [vmem:[#allocation9 + $0x80] sm:$0xff]   ;;  %6744 = vmatpush3.bf16.msra.mxu0 %v7867_v35  ;;  %v7872_v40 = vld [vmem:[#allocation9 + $0x88] sm:$0xff]  }
  0xe3   : > { %2895 = vst [vmem:[#allocation4 + $0x6c] sm:$0xf] %v8358_v0  ;;  %2896 = vst [vmem:[#allocation4 + $0x70] sm:$0xf] %v8358_v0  ;;  %6820 = vmatpush3.bf16.msra.mxu1 %v7868_v36  ;;  %6745 = vmatprep.subr.bf16.mxu0 %v7869_v37  ;;  %v7873_v41 = vld [vmem:[#allocation9 + $0x50] sm:$0xff]   ;;  %v7877_v45 = vld [vmem:[#allocation9 + $0x58] sm:$0xff]  }
  0xe4   : > { %2890 = vst [vmem:[#allocation4 + $0x58] sm:$0xf] %v8358_v0  ;;  %2891 = vst [vmem:[#allocation4 + $0x5c] sm:$0xf] %v8358_v0  ;;  %6821 = vmatprep.subr.bf16.mxu1 %v7870_v38  ;;  %v7874_v42 = vld [vmem:[#allocation9 + $0xd0] sm:$0xff]   ;;  %v7878_v46 = vld [vmem:[#allocation9 + $0xd8] sm:$0xff]  }
  0xe5   : > { %2905 = vst [vmem:[#allocation4 + $0x94] sm:$0xf] %v8358_v0  ;;  %2906 = vst [vmem:[#allocation4 + $0x98] sm:$0xf] %v8358_v0  ;;  %v7875_v43 = vld [vmem:[#allocation9 + $0x10] sm:$0xff]   ;;  %v7879_v47 = vld [vmem:[#allocation9 + $0x18] sm:$0xff]  }
  0xe6   : > { %2900 = vst [vmem:[#allocation4 + $0x80] sm:$0xf] %v8358_v0  ;;  %2901 = vst [vmem:[#allocation4 + $0x84] sm:$0xf] %v8358_v0  ;;  %6746 = vmatpush3.bf16.msra.mxu0 %v7871_v39  ;;  %v7876_v44 = vld [vmem:[#allocation9 + $0x90] sm:$0xff]   ;;  %v7880_v48 = vld [vmem:[#allocation9 + $0x98] sm:$0xff]  }
  0xe7   : > { %2915 = vst [vmem:[#allocation4 + $0xbc] sm:$0xf] %v8358_v0  ;;  %2916 = vst [vmem:[#allocation4 + $0xc0] sm:$0xf] %v8358_v0  ;;  %6822 = vmatpush3.bf16.msra.mxu1 %v7872_v40  ;;  %6747 = vmatprep.subr.bf16.mxu0 %v7873_v41  ;;  %v7881_v49 = vld [vmem:[#allocation9 + $0x60] sm:$0xff]   ;;  %v7885_v53 = vld [vmem:[#allocation9 + $0x68] sm:$0xff]  }
  0xe8   : > { %2910 = vst [vmem:[#allocation4 + $0xa8] sm:$0xf] %v8358_v0  ;;  %2911 = vst [vmem:[#allocation4 + $0xac] sm:$0xf] %v8358_v0  ;;  %6823 = vmatprep.subr.bf16.mxu1 %v7874_v42  ;;  %v7882_v50 = vld [vmem:[#allocation9 + $0xe0] sm:$0xff]   ;;  %v7886_v54 = vld [vmem:[#allocation9 + $0xe8] sm:$0xff]  }
  0xe9   : > { %2869 = vst [vmem:[#allocation4 + $0x4] sm:$0xf] %v8358_v0  ;;  %2872 = vst [vmem:[#allocation4 + $0x10] sm:$0xf] %v8358_v0  ;;  %v7883_v51 = vld [vmem:[#allocation9 + $0x20] sm:$0xff]   ;;  %v7887_v55 = vld [vmem:[#allocation9 + $0x28] sm:$0xff]  }
  0xea   : > { %2874 = vst [vmem:[#allocation4 + $0x18] sm:$0xf] %v8358_v0  ;;  %2877 = vst [vmem:[#allocation4 + $0x24] sm:$0xf] %v8358_v0  ;;  %6748 = vmatpush3.bf16.msra.mxu0 %v7875_v43  ;;  %v7884_v52 = vld [vmem:[#allocation9 + $0xa0] sm:$0xff]   ;;  %v7888_v56 = vld [vmem:[#allocation9 + $0xa8] sm:$0xff]  }
  0xeb   : > { %2879 = vst [vmem:[#allocation4 + $0x2c] sm:$0xf] %v8358_v0  ;;  %2882 = vst [vmem:[#allocation4 + $0x38] sm:$0xf] %v8358_v0  ;;  %6824 = vmatpush3.bf16.msra.mxu1 %v7876_v44  ;;  %6749 = vmatprep.subr.bf16.mxu0 %v7877_v45  ;;  %v7889_v57 = vld [vmem:[#allocation9 + $0x70] sm:$0xff]   ;;  %v7893_v61 = vld [vmem:[#allocation9 + $0x78] sm:$0xff]  }
  0xec   : > { %2884 = vst [vmem:[#allocation4 + $0x40] sm:$0xf] %v8358_v0  ;;  %2887 = vst [vmem:[#allocation4 + $0x4c] sm:$0xf] %v8358_v0  ;;  %6825 = vmatprep.subr.bf16.mxu1 %v7878_v46  ;;  %v7890_v58 = vld [vmem:[#allocation9 + $0xf0] sm:$0xff]   ;;  %v7894_v62 = vld [vmem:[#allocation9 + $0xf8] sm:$0xff]  }
  0xed   : > { %2889 = vst [vmem:[#allocation4 + $0x54] sm:$0xf] %v8358_v0  ;;  %2892 = vst [vmem:[#allocation4 + $0x60] sm:$0xf] %v8358_v0  ;;  %v7891_v59 = vld [vmem:[#allocation9 + $0x30] sm:$0xff]   ;;  %v7895_v63 = vld [vmem:[#allocation9 + $0x38] sm:$0xff]  }
  0xee   : > { %2894 = vst [vmem:[#allocation4 + $0x68] sm:$0xf] %v8358_v0  ;;  %2897 = vst [vmem:[#allocation4 + $0x74] sm:$0xf] %v8358_v0  ;;  %6750 = vmatpush3.bf16.msra.mxu0 %v7879_v47  ;;  %v7892_v60 = vld [vmem:[#allocation9 + $0xb0] sm:$0xff]   ;;  %v7897_v1 = vld [vmem:[#allocation2 + $0x8] sm:$0xff]  }
  0xef   : > { %2899 = vst [vmem:[#allocation4 + $0x7c] sm:$0xf] %v8358_v0  ;;  %2902 = vst [vmem:[#allocation4 + $0x88] sm:$0xf] %v8358_v0  ;;  %6826 = vmatpush3.bf16.msra.mxu1 %v7880_v48  ;;  %6751 = vmatprep.subr.bf16.mxu0 %v7881_v49  ;;  %v654_v2 = vld [vmem:[#allocation2 + $0x18] sm:$0x8] }
  0xf0   : > { %2904 = vst [vmem:[#allocation4 + $0x90] sm:$0xf] %v8358_v0  ;;  %2907 = vst [vmem:[#allocation4 + $0x9c] sm:$0xf] %v8358_v0  ;;  %6827 = vmatprep.subr.bf16.mxu1 %v7882_v50  ;;  %v655_v3 = vld [vmem:[#allocation2 + $0x1c] sm:$0xf]  ;;  %2261 = vmatprep.mubr.bf16.mxu0 %v7897_v1 }
  0xf1   : > { %2909 = vst [vmem:[#allocation4 + $0xa4] sm:$0xf] %v8358_v0  ;;  %2912 = vst [vmem:[#allocation4 + $0xb0] sm:$0xf] %v8358_v0  ;;  %v656_v4 = vld [vmem:[#allocation2 + $0x20] sm:$0xf] }
  0xf2   : > { %2914 = vst [vmem:[#allocation4 + $0xb8] sm:$0xf] %v8358_v0  ;;  %2917 = vst [vmem:[#allocation4 + $0xc4] sm:$0xf] %v8358_v0  ;;  %6752 = vmatpush3.bf16.msra.mxu0 %v7883_v51  ;;  %v7896_v0 = vld [vmem:[#allocation9 + $0xb8] sm:$0xff]   ;;  %v713_v5 = vshrl.u32 %v654_v2, 16 }
  0xf3   : > { %6828 = vmatpush3.bf16.msra.mxu1 %v7884_v52  ;;  %6753 = vmatprep.subr.bf16.mxu0 %v7885_v53  ;;  %vm687_vm0 = vsmask.f32 256  ;;  %vm688_vm1 = vsmask.f32 4368  ;;  %v718_v6 = vshrl.u32 %v655_v3, 16  ;;  %v721_v7 = vshll.u32 %v655_v3, 16 }
  0xf4   : > { %6829 = vmatprep.subr.bf16.mxu1 %v7886_v54  ;;  %v727_v8 = vshrl.u32 %v656_v4, 16  ;;  %v730_v9 = vshll.u32 %v656_v4, 16  ;;  %v651_v10 = vld [vmem:[#allocation2 + $0x4] sm:$0x8]  ;;  %v7898_v11 = vld [vmem:[#allocation9 + $0x140] sm:$0xff]   ;;  %v6351_v12 = vrot.slane %v713_v5, 11  ;;  %vm8809_vm2 = vmor %vm687_vm0, %vm688_vm1 }
  0xf5   : > { %v720_v13 = vrot.slane %v718_v6, 7  ;;  %v652_v14 = vld [vmem:[#allocation2 + $0x8] sm:$0xf]  ;;  %v653_v15 = vld [vmem:[#allocation2 + $0xc] sm:$0xf]  ;;  %v691_v18 = vshrl.u32 %v651_v10, 16 }
  0xf6   : > { %6754 = vmatpush3.bf16.msra.mxu0 %v7887_v55  ;;  %v729_v17 = vrot.slane %v727_v8, 7  ;;  %v696_v19 = vshrl.u32 %v652_v14, 16  ;;  %v699_v20 = vshll.u32 %v652_v14, 16  ;;  %v1158_v21 = vld [vmem:[#allocation2 + $0x8] sm:$0xf]  ;;  %v705_v24 = vshrl.u32 %v653_v15, 16 }
  0xf7   : > { %6830 = vmatpush3.bf16.msra.mxu1 %v7888_v56  ;;  %6755 = vmatprep.subr.bf16.mxu0 %v7889_v57  ;;  %v723_v22 = vor.u32 %v721_v7, %v720_v13  ;;  %v725_v23 = vrot.slane %v720_v13, 4  ;;  %v708_v25 = vshll.u32 %v653_v15, 16  ;;  %v1159_v26 = vld [vmem:[#allocation2 + $0xc] sm:$0xf]  ;;  %v6350_v28 = vrot.slane %v691_v18, 11  ;;  %v7900_v47 = vld [vmem:[#allocation2 + $0x1c] sm:$0xff]  }
  0xf8   : > { %6831 = vmatprep.subr.bf16.mxu1 %v7890_v58  ;;  %v732_v27 = vor.u32 %v730_v9, %v729_v17  ;;  %v698_v29 = vrot.slane %v696_v19, 7  ;;  %v1160_v30 = vld [vmem:[#allocation2 + $0x10] sm:$0x1]  ;;  %vm1194_vm3 = vsmask.f32 3328  ;;  %v707_v32 = vrot.slane %v705_v24, 7 }
  0xf9   : > { %v724_v31 = vsel %vm8809_vm2, %v6351_v12, %v723_v22  ;;  %vm1195_vm4 = vsmask.f32 7440  ;;  %v1198_v33 = vshrl.u32 %v1158_v21, 16  ;;  %v1201_v37 = vshll.u32 %v1158_v21, 16  ;;  %v7899_v42 = vld [vmem:[#allocation9 + $0x100] sm:$0xff]   ;;  %v7901_v52 = vld [vmem:[#allocation9 + $0x148] sm:$0xff]  }
  0xfa   : > { %6756 = vmatpush3.bf16.msra.mxu0 %v7891_v59  ;;  %v733_v34 = vsel %vm8809_vm2, %v725_v23, %v732_v27  ;;  %v701_v35 = vor.u32 %v699_v20, %v698_v29  ;;  %v703_v36 = vrot.slane %v698_v29, 4  ;;  %v710_v39 = vor.u32 %v708_v25, %v707_v32  ;;  %v657_v50 = vld [vmem:[#allocation2 + $0x2c] sm:$0x8]  ;;  %v658_v51 = vld [vmem:[#allocation2 + $0x30] sm:$0xf]  ;;  %1117 = vst [vmem:[#allocation3 + $0x50] sm:$0xff] %v7900_v47  ;;  %vm8827_vm5 = vmor %vm1194_vm3, %vm1195_vm4 }
  0xfb   : > { %6832 = vmatpush3.bf16.msra.mxu1 %v7892_v60  ;;  %6757 = vmatprep.subr.bf16.mxu0 %v7893_v61  ;;  %v8817_v38 = vcombine.low %v724_v31, %v733_v34  ;;  %v1200_v40 = vrot.slane %v1198_v33, 4  ;;  %v1207_v41 = vshll.u32 %v1159_v26, 16  ;;  %v1203_v44 = vrot.slane %v1201_v37, 5  ;;  %1132 = vst [vmem:[#allocation3 + $0x20] sm:$0xff] %v7900_v47  ;;  %v659_v57 = vld [vmem:[#allocation2 + $0x34] sm:$0xf] }
  0xfc   : > { %6833 = vmatprep.subr.bf16.mxu1 %v7894_v62  ;;  %v702_v43 = vsel %vm8809_vm2, %v6350_v28, %v701_v35  ;;  %v1211_v45 = vshrl.u32 %v1159_v26, 16  ;;  %v1217_v46 = vshll.u32 %v1160_v30, 16  ;;  %v711_v48 = vsel %vm8809_vm2, %v703_v36, %v710_v39  ;;  %v1161_v58 = vld [vmem:[#allocation2 + $0x1c] sm:$0xf]  ;;  %v1163_v4 = vld [vmem:[#allocation2 + $0x24] sm:$0x1] }
  0xfd   : > { %2374 = vmatprep.mubr.bf16.mxu1 %v8817_v38  ;;  %951 = vst [vmem:[#allocation3 + $0x48] sm:$0xff] %v8817_v38  ;;  %v1209_v49 = vrot.slane %v1207_v41, 5  ;;  %v6360_v53 = vcombine.low %v702_v43, %v711_v48  ;;  %v1204_v54 = vor.u32 %v1203_v44, %v1200_v40  ;;  %v735_v60 = vshrl.u32 %v657_v50, 16  ;;  %v7902_v6 = vld [vmem:[#allocation9 + $0x108] sm:$0xff]   ;;  %v7904_v25 = vld [vmem:[#allocation9 + $0x150] sm:$0xff]   ;;  %s9972_s29 = sld [smem:[#allocation24_spill]] }
  0xfe   : > { %6758 = vmatpush3.bf16.msra.mxu0 %v7895_v63  ;;  %v1213_v55 = vrot.slane %v1211_v45, 4  ;;  %v1219_v56 = vrot.slane %v1217_v46, 5  ;;  %v740_v61 = vshrl.u32 %v658_v51, 16  ;;  %v743_v62 = vshll.u32 %v658_v51, 16  ;;  %v7903_v15 = vld [vmem:[#allocation2 + $0x30] sm:$0xff]   ;;  %v7905_v37 = vld [vmem:[#allocation9 + $0x110] sm:$0xff]  }
  0xff   : > { %6834 = vmatpush3.bf16.msra.mxu1 %v7896_v0  ;;  %6895 = vmatprep.subr.bf16.mxu0 %v7898_v11  ;;  %v749_v63 = vshrl.u32 %v659_v57, 16  ;;  %v1162_v0 = vld [vmem:[#allocation2 + $0x20] sm:$0xf]  ;;  %v1205_v1 = vrot.slane %v1204_v54, 4  ;;  %v752_v3 = vshll.u32 %v659_v57, 16  ;;  %v1222_v5 = vshrl.u32 %v1161_v58, 16 }
 0x100   : > { %v1214_v2 = vor.u32 %v1213_v55, %v1209_v49  ;;  %v6352_v7 = vrot.slane %v735_v60, 11  ;;  %v742_v8 = vrot.slane %v740_v61, 7  ;;  %v1225_v10 = vshll.u32 %v1161_v58, 16  ;;  %1118 = vst [vmem:[#allocation3 + $0x98] sm:$0xff] %v7903_v15  ;;  %1133 = vst [vmem:[#allocation3 + $0x68] sm:$0xff] %v7903_v15  ;;  %s9973_s25 = sld [smem:[#allocation25_spill]] }
 0x101   : > { %2262 = vmatmul.mubr.bf16.vlgmr.msra.gmra.mrb[0].mxu0 %v6360_v53  ;;  %v751_v9 = vrot.slane %v749_v63, 7  ;;  %v1210_v11 = vsel %vm8827_vm5, %v1205_v1, %v1209_v49  ;;  %v1224_v13 = vrot.slane %v1222_v5, 4  ;;  %v1231_v14 = vshll.u32 %v1162_v0, 16  ;;  %1148 = vst [vmem:[#allocation3 + $0x38] sm:$0xff] %v7903_v15  ;;  %v660_v30 = vld [vmem:[#allocation2 + $0x40] sm:$0x8] }
 0x102   : > { %6896 = vmatpush3.bf16.msra.mxu0 %v7899_v42  ;;  %2269 = vmatprep.mubr.bf16.mxu0 %v7900_v47  ;;  %v1215_v12 = vrot.slane %v1214_v2, 4  ;;  %v745_v17 = vor.u32 %v743_v62, %v742_v8  ;;  %v747_v18 = vrot.slane %v742_v8, 4  ;;  %v1227_v20 = vrot.slane %v1225_v10, 5  ;;  %v661_v31 = vld [vmem:[#allocation2 + $0x44] sm:$0xf]  ;;  %v8854_v8 = vld [vmem:[#allocation2 + $0x58] sm:$0xff]  }
 0x103   : > { %6897 = vmatprep.subr.bf16.mxu0 %v7901_v52  ;;  %v754_v19 = vor.u32 %v752_v3, %v751_v9  ;;  %v1233_v22 = vrot.slane %v1231_v14, 5  ;;  %v1235_v23 = vshrl.u32 %v1162_v0, 16  ;;  %v1241_v24 = vshll.u32 %v1163_v4, 16  ;;  %v662_v35 = vld [vmem:[#allocation2 + $0x48] sm:$0xf]  ;;  %v7907_v2 = vld [vmem:[#allocation9 + $0x158] sm:$0xff]  }
 0x104   : > { %v1220_v21 = vsel %vm8827_vm5, %v1215_v12, %v1219_v56  ;;  %v746_v27 = vsel %vm8809_vm2, %v6352_v7, %v745_v17  ;;  %v1228_v29 = vor.u32 %v1227_v20, %v1224_v13  ;;  %v757_v36 = vshrl.u32 %v660_v30, 16  ;;  %v1164_v43 = vld [vmem:[#allocation2 + $0x30] sm:$0xf]  ;;  %v1165_v47 = vld [vmem:[#allocation2 + $0x34] sm:$0xf]  ;;  %v7906_v53 = vld [vmem:[#allocation2 + $0x44] sm:$0xff]  }
 0x105   : > { %v6386_v26 = vcombine.low %v1210_v11, %v1220_v21  ;;  %v755_v28 = vsel %vm8809_vm2, %v747_v18, %v754_v19  ;;  %v1237_v33 = vrot.slane %v1235_v23, 4  ;;  %v1243_v34 = vrot.slane %v1241_v24, 5  ;;  %v1166_v48 = vld [vmem:[#allocation2 + $0x38] sm:$0x1]  ;;  %1119 = vst [vmem:[#allocation3 + $0xe0] sm:$0xff] %v7906_v53  ;;  %1134 = vst [vmem:[#allocation3 + $0xb0] sm:$0xff] %v7906_v53 }
 0x106   : > { %6898 = vmatpush3.bf16.msra.mxu0 %v7902_v6  ;;  %v8839_v32 = vcombine.low %v746_v27, %v755_v28  ;;  %v1229_v39 = vrot.slane %v1228_v29, 4  ;;  %v762_v40 = vshrl.u32 %v661_v31, 16  ;;  %v765_v41 = vshll.u32 %v661_v31, 16  ;;  %1149 = vst [vmem:[#allocation3 + $0x80] sm:$0xff] %v7906_v53  ;;  %v663_v7 = vld [vmem:[#allocation2 + $0x54] sm:$0x8] }
 0x107   : > { %6899 = vmatprep.subr.bf16.mxu0 %v7904_v25  ;;  %2375 = vmatmul.mubr.bf16.vlgmr.msra.gmra.mrb[0].mxu1 %v6386_v26  ;;  %v771_v42 = vshrl.u32 %v662_v35, 16  ;;  %v1238_v44 = vor.u32 %v1237_v33, %v1233_v22  ;;  %v6353_v45 = vrot.slane %v757_v36, 11  ;;  %v774_v46 = vshll.u32 %v662_v35, 16  ;;  %v664_v12 = vld [vmem:[#allocation2 + $0x58] sm:$0xf]  ;;  %1120 = vst [vmem:[#allocation3 + $0x128] sm:$0xff] %v8854_v8 }
 0x108   : > { %987 = vst [vmem:[#allocation3 + $0x60] sm:$0xff] %v8839_v32  ;;  %2382 = vmatprep.mubr.bf16.mxu1 %v8839_v32  ;;  %952 = vst [vmem:[#allocation3 + $0x90] sm:$0xff] %v8839_v32  ;;  %v1234_v49 = vsel %vm8827_vm5, %v1229_v39, %v1233_v22  ;;  %v764_v50 = vrot.slane %v762_v40, 7  ;;  %v1246_v52 = vshrl.u32 %v1164_v43, 16  ;;  %v1249_v55 = vshll.u32 %v1164_v43, 16 }
 0x109   : > { %1022 = vst [vmem:[#allocation3 + $0x30] sm:$0xff] %v8839_v32  ;;  %2270 = vmatmul.mubr.bf16.gmra.mrb[4].mxu0 %v8817_v38  ;;  %v773_v51 = vrot.slane %v771_v42, 7  ;;  %v1239_v54 = vrot.slane %v1238_v44, 4  ;;  %v1255_v56 = vshll.u32 %v1165_v47, 16  ;;  %v1259_v57 = vshrl.u32 %v1165_v47, 16  ;;  %1135 = vst [vmem:[#allocation3 + $0xf8] sm:$0xff] %v8854_v8 }
 0x10a   : > { %2277 = vmatprep.mubr.bf16.mxu0 %v7903_v15  ;;  %6900 = vmatpush3.bf16.msra.mxu0 %v7905_v37  ;;  %v767_v58 = vor.u32 %v765_v41, %v764_v50  ;;  %v769_v38 = vrot.slane %v764_v50, 4  ;;  %v1248_v61 = vrot.slane %v1246_v52, 4  ;;  %v1251_v63 = vrot.slane %v1249_v55, 5  ;;  %v665_v13 = vld [vmem:[#allocation2 + $0x5c] sm:$0xf]  ;;  %v7909_v15 = vld [vmem:[#allocation9 + $0x118] sm:$0xff]  }
 0x10b   : > { %v776_v60 = vor.u32 %v774_v46, %v773_v51  ;;  %v1244_v62 = vsel %vm8827_vm5, %v1239_v54, %v1243_v34  ;;  %v1257_v0 = vrot.slane %v1255_v56, 5  ;;  %v1261_v1 = vrot.slane %v1259_v57, 4  ;;  %6901 = vmatprep.subr.bf16.mxu0 %v7907_v2  ;;  %v1167_v21 = vld [vmem:[#allocation2 + $0x44] sm:$0xf]  ;;  %1150 = vst [vmem:[#allocation3 + $0xc8] sm:$0xff] %v8854_v8  ;;  %v7910_v41 = vld [vmem:[#allocation9 + $0x1c0] sm:$0xff]  }
 0x10c   : > { %v6387_v3 = vcombine.low %v1234_v49, %v1244_v62  ;;  %v768_v4 = vsel %vm8809_vm2, %v6353_v45, %v767_v58  ;;  %v1265_v6 = vshll.u32 %v1166_v48, 16  ;;  %v1252_v10 = vor.u32 %v1251_v63, %v1248_v61  ;;  %v1168_v26 = vld [vmem:[#allocation2 + $0x48] sm:$0xf]  ;;  %v1169_v29 = vld [vmem:[#allocation2 + $0x4c] sm:$0x1]  ;;  %6971 = vmatprep.subr.bf16.mxu1 %v7910_v41 }
 0x10d   : > { %v777_v5 = vsel %vm8809_vm2, %v769_v38, %v776_v60  ;;  %v1262_v11 = vor.u32 %v1261_v1, %v1257_v0  ;;  %v779_v14 = vshrl.u32 %v663_v7, 16  ;;  %v784_v18 = vshrl.u32 %v664_v12, 16  ;;  %v666_v46 = vld [vmem:[#allocation2 + $0x68] sm:$0x8]  ;;  %v667_v50 = vld [vmem:[#allocation2 + $0x6c] sm:$0xf] }
 0x10e   : > { %v8856_v9 = vcombine.low %v768_v4, %v777_v5  ;;  %1478 = vst [vmem:[#allocation3 + $0x58] sm:$0xff] %v6387_v3  ;;  %1515 = vst [vmem:[#allocation3 + $0x28] sm:$0xff] %v6387_v3  ;;  %v1267_v17 = vrot.slane %v1265_v6, 5  ;;  %v787_v19 = vshll.u32 %v664_v12, 16  ;;  %v793_v20 = vshrl.u32 %v665_v13, 16  ;;  %6902 = vmatpush3.bf16.msra.mxu0 %v7909_v15  ;;  %v7911_v57 = vld [vmem:[#allocation9 + $0x180] sm:$0xff]  }
 0x10f   : > { %2383 = vmatmul.mubr.bf16.gmra.mrb[4].mxu1 %v6387_v3  ;;  %v1253_v22 = vrot.slane %v1252_v10, 4  ;;  %v1263_v23 = vrot.slane %v1262_v11, 4  ;;  %v6354_v24 = vrot.slane %v779_v14, 11  ;;  %v796_v25 = vshll.u32 %v665_v13, 16  ;;  %v668_v51 = vld [vmem:[#allocation2 + $0x70] sm:$0xf] }
 0x110   : > { %988 = vst [vmem:[#allocation3 + $0xa8] sm:$0xff] %v8856_v9  ;;  %2390 = vmatprep.mubr.bf16.mxu1 %v8856_v9  ;;  %953 = vst [vmem:[#allocation3 + $0xd8] sm:$0xff] %v8856_v9  ;;  %v786_v27 = vrot.slane %v784_v18, 7  ;;  %v795_v28 = vrot.slane %v793_v20, 7  ;;  %v1270_v30 = vshrl.u32 %v1167_v21, 16  ;;  %v1273_v31 = vshll.u32 %v1167_v21, 16  ;;  %6972 = vmatpush3.bf16.msra.mxu1 %v7911_v57 }
 0x111   : > { %1023 = vst [vmem:[#allocation3 + $0x78] sm:$0xff] %v8856_v9  ;;  %2278 = vmatmul.mubr.bf16.gmra.mrb[8].mxu0 %v8839_v32  ;;  %v1258_v33 = vsel %vm8827_vm5, %v1253_v22, %v1257_v0  ;;  %v1268_v34 = vsel %vm8827_vm5, %v1263_v23, %v1267_v17  ;;  %v1279_v35 = vshll.u32 %v1168_v26, 16  ;;  %v1283_v32 = vshrl.u32 %v1168_v26, 16  ;;  %v1170_v62 = vld [vmem:[#allocation2 + $0x58] sm:$0xf]  ;;  %v8886_v14 = vld [vmem:[#allocation2 + $0x6c] sm:$0xff]  }
 0x112   : > { %2285 = vmatprep.mubr.bf16.mxu0 %v7906_v53  ;;  %v6388_v36 = vcombine.low %v1258_v33, %v1268_v34  ;;  %v789_v37 = vor.u32 %v787_v19, %v786_v27  ;;  %v791_v39 = vrot.slane %v786_v27, 4  ;;  %v798_v40 = vor.u32 %v796_v25, %v795_v28  ;;  %v1171_v3 = vld [vmem:[#allocation2 + $0x5c] sm:$0xf]  ;;  %v1172_v5 = vld [vmem:[#allocation2 + $0x60] sm:$0x1]  ;;  %1121 = vst [vmem:[#allocation3 + $0x170] sm:$0xff] %v8886_v14 }
 0x113   : > { %v1272_v42 = vrot.slane %v1270_v30, 4  ;;  %v1275_v43 = vrot.slane %v1273_v31, 5  ;;  %v1281_v44 = vrot.slane %v1279_v35, 5  ;;  %v1285_v45 = vrot.slane %v1283_v32, 4  ;;  %1136 = vst [vmem:[#allocation3 + $0x140] sm:$0xff] %v8886_v14  ;;  %1151 = vst [vmem:[#allocation3 + $0x110] sm:$0xff] %v8886_v14 }
 0x114   : > { %1479 = vst [vmem:[#allocation3 + $0xa0] sm:$0xff] %v6388_v36  ;;  %1516 = vst [vmem:[#allocation3 + $0x70] sm:$0xff] %v6388_v36  ;;  %v790_v47 = vsel %vm8809_vm2, %v6354_v24, %v789_v37  ;;  %v799_v48 = vsel %vm8809_vm2, %v791_v39, %v798_v40  ;;  %v1289_v49 = vshll.u32 %v1169_v29, 16  ;;  %v801_v52 = vshrl.u32 %v666_v46, 16  ;;  %v7913_v23 = vld [vmem:[#allocation9 + $0x160] sm:$0xff]  }
 0x115   : > { %1553 = vst [vmem:[#allocation3 + $0x40] sm:$0xff] %v6388_v36  ;;  %v8874_v53 = vcombine.low %v790_v47, %v799_v48  ;;  %v1276_v54 = vor.u32 %v1275_v43, %v1272_v42  ;;  %v1286_v55 = vor.u32 %v1285_v45, %v1281_v44  ;;  %v806_v56 = vshrl.u32 %v667_v50, 16  ;;  %v669_v26 = vld [vmem:[#allocation2 + $0x7c] sm:$0x8]  ;;  %v670_v27 = vld [vmem:[#allocation2 + $0x80] sm:$0xf]  ;;  %6903 = vmatprep.subr.bf16.mxu0 %v7913_v23 }
 0x116   : > { %v1291_v58 = vrot.slane %v1289_v49, 5  ;;  %v6355_v38 = vrot.slane %v801_v52, 11  ;;  %v809_v60 = vshll.u32 %v667_v50, 16  ;;  %v815_v61 = vshrl.u32 %v668_v51, 16  ;;  %v671_v31 = vld [vmem:[#allocation2 + $0x84] sm:$0xf] }
 0x117   : > { %2391 = vmatmul.mubr.bf16.gmra.mrb[8].mxu1 %v6388_v36  ;;  %989 = vst [vmem:[#allocation3 + $0xf0] sm:$0xff] %v8874_v53  ;;  %954 = vst [vmem:[#allocation3 + $0x120] sm:$0xff] %v8874_v53  ;;  %v1277_v63 = vrot.slane %v1276_v54, 4  ;;  %v1287_v0 = vrot.slane %v1286_v55, 4  ;;  %v808_v1 = vrot.slane %v806_v56, 7  ;;  %v818_v2 = vshll.u32 %v668_v51, 16 }
 0x118   : > { %2398 = vmatprep.mubr.bf16.mxu1 %v8874_v53  ;;  %1024 = vst [vmem:[#allocation3 + $0xc0] sm:$0xff] %v8874_v53  ;;  %v817_v4 = vrot.slane %v815_v61, 7  ;;  %v1294_v6 = vshrl.u32 %v1170_v62, 16  ;;  %v1297_v7 = vshll.u32 %v1170_v62, 16  ;;  %v1303_v10 = vshll.u32 %v1171_v3, 16  ;;  %v7914_v34 = vld [vmem:[#allocation9 + $0x120] sm:$0xff]  }
 0x119   : > { %2286 = vmatmul.mubr.bf16.gmra.mrb[12].mxu0 %v8856_v9  ;;  %v1282_v11 = vsel %vm8827_vm5, %v1277_v63, %v1281_v44  ;;  %v1292_v12 = vsel %vm8827_vm5, %v1287_v0, %v1291_v58  ;;  %v811_v9 = vor.u32 %v809_v60, %v808_v1  ;;  %v813_v13 = vrot.slane %v808_v1, 4  ;;  %v1173_v39 = vld [vmem:[#allocation2 + $0x6c] sm:$0xf]  ;;  %v1174_v43 = vld [vmem:[#allocation2 + $0x70] sm:$0xf]  ;;  %v8913_v62 = vld [vmem:[#allocation2 + $0x80] sm:$0xff]  }
 0x11a   : > { %2293 = vmatprep.mubr.bf16.mxu0 %v8854_v8  ;;  %v8888_v15 = vcombine.low %v1282_v11, %v1292_v12  ;;  %v820_v17 = vor.u32 %v818_v2, %v817_v4  ;;  %v1296_v8 = vrot.slane %v1294_v6, 4  ;;  %v1299_v18 = vrot.slane %v1297_v7, 5  ;;  %v1175_v44 = vld [vmem:[#allocation2 + $0x74] sm:$0x1]  ;;  %6904 = vmatpush3.bf16.msra.mxu0 %v7914_v34  ;;  %1122 = vst [vmem:[#allocation3 + $0x1b8] sm:$0xff] %v8913_v62 }
 0x11b   : > { %v812_v19 = vsel %vm8809_vm2, %v6355_v38, %v811_v9  ;;  %v1305_v20 = vrot.slane %v1303_v10, 5  ;;  %v1307_v21 = vshrl.u32 %v1171_v3, 16  ;;  %v1313_v22 = vshll.u32 %v1172_v5, 16  ;;  %v7915_v49 = vld [vmem:[#allocation9 + $0x1c8] sm:$0xff]   ;;  %1137 = vst [vmem:[#allocation3 + $0x188] sm:$0xff] %v8913_v62  ;;  %1152 = vst [vmem:[#allocation3 + $0x158] sm:$0xff] %v8913_v62 }
 0x11c   : > { %1480 = vst [vmem:[#allocation3 + $0xe8] sm:$0xff] %v8888_v15  ;;  %1517 = vst [vmem:[#allocation3 + $0xb8] sm:$0xff] %v8888_v15  ;;  %v821_v24 = vsel %vm8809_vm2, %v813_v13, %v820_v17  ;;  %v1300_v25 = vor.u32 %v1299_v18, %v1296_v8  ;;  %v823_v33 = vshrl.u32 %v669_v26, 16  ;;  %v828_v32 = vshrl.u32 %v670_v27, 16  ;;  %6973 = vmatprep.subr.bf16.mxu1 %v7915_v49  ;;  %v7917_v3 = vld [vmem:[#allocation9 + $0x188] sm:$0xff]  }
 0x11d   : > { %1554 = vst [vmem:[#allocation3 + $0x88] sm:$0xff] %v8888_v15  ;;  %v8900_v28 = vcombine.low %v812_v19, %v821_v24  ;;  %v1309_v29 = vrot.slane %v1307_v21, 4  ;;  %v1315_v30 = vrot.slane %v1313_v22, 5  ;;  %v831_v36 = vshll.u32 %v670_v27, 16  ;;  %v672_v7 = vld [vmem:[#allocation2 + $0x90] sm:$0x8]  ;;  %6974 = vmatpush3.bf16.msra.mxu1 %v7917_v3 }
 0x11e   : > { %v1301_v35 = vrot.slane %v1300_v25, 4  ;;  %v837_v37 = vshrl.u32 %v671_v31, 16  ;;  %v6356_v41 = vrot.slane %v823_v33, 11  ;;  %v840_v42 = vshll.u32 %v671_v31, 16  ;;  %v673_v10 = vld [vmem:[#allocation2 + $0x94] sm:$0xf] }
 0x11f   : > { %2399 = vmatmul.mubr.bf16.gmra.mrb[12].mxu1 %v8888_v15  ;;  %990 = vst [vmem:[#allocation3 + $0x138] sm:$0xff] %v8900_v28  ;;  %955 = vst [vmem:[#allocation3 + $0x168] sm:$0xff] %v8900_v28  ;;  %v1310_v40 = vor.u32 %v1309_v29, %v1305_v20  ;;  %v830_v46 = vrot.slane %v828_v32, 7  ;;  %v1318_v48 = vshrl.u32 %v1173_v39, 16  ;;  %v1321_v51 = vshll.u32 %v1173_v39, 16  ;;  %v7923_v3 = vld [vmem:[#allocation9 + $0x170] sm:$0xff]  }
 0x120   : > { %2406 = vmatprep.mubr.bf16.mxu1 %v8900_v28  ;;  %1025 = vst [vmem:[#allocation3 + $0x108] sm:$0xff] %v8900_v28  ;;  %v1306_v45 = vsel %vm8827_vm5, %v1301_v35, %v1305_v20  ;;  %v839_v47 = vrot.slane %v837_v37, 7  ;;  %v1327_v52 = vshll.u32 %v1174_v43, 16  ;;  %v1331_v54 = vshrl.u32 %v1174_v43, 16  ;;  %v674_v12 = vld [vmem:[#allocation2 + $0x98] sm:$0xf] }
 0x121   : > { %2294 = vmatmul.mubr.bf16.gmra.mrb[16].mxu0 %v8874_v53  ;;  %v1311_v50 = vrot.slane %v1310_v40, 4  ;;  %v833_v53 = vor.u32 %v831_v36, %v830_v46  ;;  %v835_v55 = vrot.slane %v830_v46, 4  ;;  %v1320_v57 = vrot.slane %v1318_v48, 4  ;;  %v1176_v23 = vld [vmem:[#allocation2 + $0x80] sm:$0xf]  ;;  %v7918_v40 = vld [vmem:[#allocation9 + $0x168] sm:$0xff]  }
 0x122   : > { %2301 = vmatprep.mubr.bf16.mxu0 %v8886_v14  ;;  %v842_v56 = vor.u32 %v840_v42, %v839_v47  ;;  %v1323_v38 = vrot.slane %v1321_v51, 5  ;;  %v1329_v60 = vrot.slane %v1327_v52, 5  ;;  %v1333_v61 = vrot.slane %v1331_v54, 4  ;;  %v1177_v27 = vld [vmem:[#allocation2 + $0x84] sm:$0xf]  ;;  %6905 = vmatprep.subr.bf16.mxu0 %v7918_v40 }
 0x123   : > { %v1316_v58 = vsel %vm8827_vm5, %v1311_v50, %v1315_v30  ;;  %v834_v0 = vsel %vm8809_vm2, %v6356_v41, %v833_v53  ;;  %v1337_v2 = vshll.u32 %v1175_v44, 16  ;;  %v845_v9 = vshrl.u32 %v672_v7, 16  ;;  %v1178_v29 = vld [vmem:[#allocation2 + $0x88] sm:$0x1]  ;;  %v7919_v44 = vld [vmem:[#allocation9 + $0x128] sm:$0xff]   ;;  %v7921_v53 = vld [vmem:[#allocation9 + $0x1d0] sm:$0xff]  }
 0x124   : > { %v8915_v63 = vcombine.low %v1306_v45, %v1316_v58  ;;  %v843_v1 = vsel %vm8809_vm2, %v835_v55, %v842_v56  ;;  %v1324_v5 = vor.u32 %v1323_v38, %v1320_v57  ;;  %v1334_v6 = vor.u32 %v1333_v61, %v1329_v60  ;;  %v8947_v45 = vld [vmem:[#allocation2 + $0x94] sm:$0xff]   ;;  %6906 = vmatpush3.bf16.msra.mxu0 %v7919_v44  ;;  %v675_v52 = vld [vmem:[#allocation2 + $0xa4] sm:$0x8]  ;;  %v676_v54 = vld [vmem:[#allocation2 + $0xa8] sm:$0xf] }
 0x125   : > { %v8921_v4 = vcombine.low %v834_v0, %v843_v1  ;;  %v1339_v11 = vrot.slane %v1337_v2, 5  ;;  %v850_v13 = vshrl.u32 %v673_v10, 16  ;;  %v853_v17 = vshll.u32 %v673_v10, 16  ;;  %1123 = vst [vmem:[#allocation3 + $0x200] sm:$0xff] %v8947_v45  ;;  %1138 = vst [vmem:[#allocation3 + $0x1d0] sm:$0xff] %v8947_v45  ;;  %6975 = vmatprep.subr.bf16.mxu1 %v7921_v53  ;;  %6907 = vmatprep.subr.bf16.mxu0 %v7923_v3 }
 0x126   : > { %1481 = vst [vmem:[#allocation3 + $0x130] sm:$0xff] %v8915_v63  ;;  %1518 = vst [vmem:[#allocation3 + $0x100] sm:$0xff] %v8915_v63  ;;  %v1325_v8 = vrot.slane %v1324_v5, 4  ;;  %v1335_v18 = vrot.slane %v1334_v6, 4  ;;  %v859_v19 = vshrl.u32 %v674_v12, 16  ;;  %v862_v20 = vshll.u32 %v674_v12, 16 }
 0x127   : > { %2407 = vmatmul.mubr.bf16.gmra.mrb[16].mxu1 %v8915_v63  ;;  %1555 = vst [vmem:[#allocation3 + $0xd0] sm:$0xff] %v8915_v63  ;;  %991 = vst [vmem:[#allocation3 + $0x180] sm:$0xff] %v8921_v4  ;;  %v6357_v21 = vrot.slane %v845_v9, 11  ;;  %v852_v22 = vrot.slane %v850_v13, 7  ;;  %v1342_v30 = vshrl.u32 %v1176_v23, 16  ;;  %v1345_v35 = vshll.u32 %v1176_v23, 16 }
 0x128   : > { %2414 = vmatprep.mubr.bf16.mxu1 %v8921_v4  ;;  %956 = vst [vmem:[#allocation3 + $0x1b0] sm:$0xff] %v8921_v4  ;;  %1026 = vst [vmem:[#allocation3 + $0x150] sm:$0xff] %v8921_v4  ;;  %v1330_v24 = vsel %vm8827_vm5, %v1325_v8, %v1329_v60  ;;  %v1340_v25 = vsel %vm8827_vm5, %v1335_v18, %v1339_v11  ;;  %v861_v26 = vrot.slane %v859_v19, 7  ;;  %v1351_v37 = vshll.u32 %v1177_v27, 16  ;;  %v677_v56 = vld [vmem:[#allocation2 + $0xac] sm:$0xf] }
 0x129   : > { %2302 = vmatmul.mubr.bf16.gmra.mrb[20].mxu0 %v8900_v28  ;;  %v8940_v31 = vcombine.low %v1330_v24, %v1340_v25  ;;  %v855_v33 = vor.u32 %v853_v17, %v852_v22  ;;  %v857_v34 = vrot.slane %v852_v22, 4  ;;  %v1344_v36 = vrot.slane %v1342_v30, 4  ;;  %1153 = vst [vmem:[#allocation3 + $0x1a0] sm:$0xff] %v8947_v45  ;;  %v7922_v60 = vld [vmem:[#allocation9 + $0x190] sm:$0xff]   ;;  %v1179_v2 = vld [vmem:[#allocation2 + $0x94] sm:$0xf] }
 0x12a   : > { %2309 = vmatprep.mubr.bf16.mxu0 %v8913_v62  ;;  %v864_v32 = vor.u32 %v862_v20, %v861_v26  ;;  %v1355_v39 = vshrl.u32 %v1177_v27, 16  ;;  %v1347_v42 = vrot.slane %v1345_v35, 5  ;;  %v1361_v43 = vshll.u32 %v1178_v29, 16  ;;  %v1180_v10 = vld [vmem:[#allocation2 + $0x98] sm:$0xf]  ;;  %6976 = vmatpush3.bf16.msra.mxu1 %v7922_v60 }
 0x12b   : > { %1482 = vst [vmem:[#allocation3 + $0x178] sm:$0xff] %v8940_v31  ;;  %1519 = vst [vmem:[#allocation3 + $0x148] sm:$0xff] %v8940_v31  ;;  %v856_v41 = vsel %vm8809_vm2, %v6357_v21, %v855_v33  ;;  %v1353_v47 = vrot.slane %v1351_v37, 5  ;;  %v867_v57 = vshrl.u32 %v675_v52, 16  ;;  %v872_v58 = vshrl.u32 %v676_v54, 16  ;;  %v7924_v18 = vld [vmem:[#allocation9 + $0x130] sm:$0xff]  }
 0x12c   : > { %1556 = vst [vmem:[#allocation3 + $0x118] sm:$0xff] %v8940_v31  ;;  %v865_v46 = vsel %vm8809_vm2, %v857_v34, %v864_v32  ;;  %v1357_v48 = vrot.slane %v1355_v39, 4  ;;  %v1348_v50 = vor.u32 %v1347_v42, %v1344_v36  ;;  %v1363_v51 = vrot.slane %v1361_v43, 5  ;;  %v1181_v13 = vld [vmem:[#allocation2 + $0x9c] sm:$0x1]  ;;  %6908 = vmatpush3.bf16.msra.mxu0 %v7924_v18  ;;  %v7925_v37 = vld [vmem:[#allocation9 + $0x1d8] sm:$0xff]  }
 0x12d   : > { %v8952_v49 = vcombine.low %v856_v41, %v865_v46  ;;  %v875_v38 = vshll.u32 %v676_v54, 16  ;;  %v881_v0 = vshrl.u32 %v677_v56, 16  ;;  %v884_v1 = vshll.u32 %v677_v56, 16  ;;  %v8980_v39 = vld [vmem:[#allocation2 + $0xa8] sm:$0xff]   ;;  %v7927_v41 = vld [vmem:[#allocation9 + $0x198] sm:$0xff]   ;;  %6977 = vmatprep.subr.bf16.mxu1 %v7925_v37 }
 0x12e   : > { %v1358_v55 = vor.u32 %v1357_v48, %v1353_v47  ;;  %v1349_v61 = vrot.slane %v1348_v50, 4  ;;  %v6358_v6 = vrot.slane %v867_v57, 11  ;;  %v874_v7 = vrot.slane %v872_v58, 7  ;;  %1124 = vst [vmem:[#allocation3 + $0x248] sm:$0xff] %v8980_v39  ;;  %1139 = vst [vmem:[#allocation3 + $0x218] sm:$0xff] %v8980_v39  ;;  %6978 = vmatpush3.bf16.msra.mxu1 %v7927_v41  ;;  %v7929_v56 = vld [vmem:[#allocation9 + $0x1a0] sm:$0xff]  }
 0x12f   : > { %2415 = vmatmul.mubr.bf16.gmra.mrb[20].mxu1 %v8940_v31  ;;  %992 = vst [vmem:[#allocation3 + $0x1c8] sm:$0xff] %v8952_v49  ;;  %957 = vst [vmem:[#allocation3 + $0x1f8] sm:$0xff] %v8952_v49  ;;  %v1366_v11 = vshrl.u32 %v1179_v2, 16  ;;  %v883_v9 = vrot.slane %v881_v0, 7  ;;  %v1369_v17 = vshll.u32 %v1179_v2, 16  ;;  %v1375_v8 = vshll.u32 %v1180_v10, 16 }
 0x130   : > { %2422 = vmatprep.mubr.bf16.mxu1 %v8952_v49  ;;  %1027 = vst [vmem:[#allocation3 + $0x198] sm:$0xff] %v8952_v49  ;;  %v1359_v5 = vrot.slane %v1358_v55, 4  ;;  %v1354_v12 = vsel %vm8827_vm5, %v1349_v61, %v1353_v47  ;;  %v877_v20 = vor.u32 %v875_v38, %v874_v7  ;;  %v879_v21 = vrot.slane %v874_v7, 4  ;;  %1154 = vst [vmem:[#allocation3 + $0x1e8] sm:$0xff] %v8980_v39  ;;  %v678_v43 = vld [vmem:[#allocation2 + $0xb8] sm:$0x8] }
 0x131   : > { %2310 = vmatmul.mubr.bf16.gmra.mrb[24].mxu0 %v8921_v4  ;;  %v1368_v22 = vrot.slane %v1366_v11, 4  ;;  %v886_v24 = vor.u32 %v884_v1, %v883_v9  ;;  %v1371_v25 = vrot.slane %v1369_v17, 5  ;;  %v1377_v26 = vrot.slane %v1375_v8, 5  ;;  %v679_v44 = vld [vmem:[#allocation2 + $0xbc] sm:$0xf]  ;;  %v7931_v8 = vld [vmem:[#allocation9 + $0x1e8] sm:$0xff]  }
 0x132   : > { %2317 = vmatprep.mubr.bf16.mxu0 %v8947_v45  ;;  %v1364_v19 = vsel %vm8827_vm5, %v1359_v5, %v1363_v51  ;;  %v878_v27 = vsel %vm8809_vm2, %v6358_v6, %v877_v20  ;;  %v1379_v29 = vshrl.u32 %v1180_v10, 16  ;;  %v1385_v30 = vshll.u32 %v1181_v13, 16  ;;  %v680_v46 = vld [vmem:[#allocation2 + $0xc0] sm:$0xf]  ;;  %v7928_v51 = vld [vmem:[#allocation9 + $0x1e0] sm:$0xff]   ;;  %v7935_v41 = vld [vmem:[#allocation9 + $0x1f0] sm:$0xff]  }
 0x133   : > { %v8967_v23 = vcombine.low %v1354_v12, %v1364_v19  ;;  %v887_v33 = vsel %vm8809_vm2, %v879_v21, %v886_v24  ;;  %v1372_v34 = vor.u32 %v1371_v25, %v1368_v22  ;;  %v889_v47 = vshrl.u32 %v678_v43, 16  ;;  %v1182_v38 = vld [vmem:[#allocation2 + $0xa8] sm:$0xf]  ;;  %v1183_v60 = vld [vmem:[#allocation2 + $0xac] sm:$0xf]  ;;  %6979 = vmatprep.subr.bf16.mxu1 %v7928_v51  ;;  %v7930_v5 = vld [vmem:[#allocation9 + $0x178] sm:$0xff]  }
 0x134   : > { %v8977_v35 = vcombine.low %v878_v27, %v887_v33  ;;  %v1381_v32 = vrot.slane %v1379_v29, 4  ;;  %v1387_v36 = vrot.slane %v1385_v30, 5  ;;  %v894_v48 = vshrl.u32 %v679_v44, 16  ;;  %v1184_v1 = vld [vmem:[#allocation2 + $0xb0] sm:$0x1]  ;;  %6980 = vmatpush3.bf16.msra.mxu1 %v7929_v56  ;;  %6909 = vmatprep.subr.bf16.mxu0 %v7930_v5  ;;  %v9005_v25 = vld [vmem:[#allocation2 + $0xbc] sm:$0xff]  }
 0x135   : > { %1483 = vst [vmem:[#allocation3 + $0x1c0] sm:$0xff] %v8967_v23  ;;  %1520 = vst [vmem:[#allocation3 + $0x190] sm:$0xff] %v8967_v23  ;;  %v1373_v40 = vrot.slane %v1372_v34, 4  ;;  %v897_v50 = vshll.u32 %v679_v44, 16  ;;  %v903_v53 = vshrl.u32 %v680_v46, 16  ;;  %v906_v55 = vshll.u32 %v680_v46, 16  ;;  %6981 = vmatprep.subr.bf16.mxu1 %v7931_v8 }
 0x136   : > { %1557 = vst [vmem:[#allocation3 + $0x160] sm:$0xff] %v8967_v23  ;;  %993 = vst [vmem:[#allocation3 + $0x210] sm:$0xff] %v8977_v35  ;;  %v1382_v42 = vor.u32 %v1381_v32, %v1377_v26  ;;  %v6359_v57 = vrot.slane %v889_v47, 11  ;;  %v896_v58 = vrot.slane %v894_v48, 7  ;;  %v1390_v2 = vshrl.u32 %v1182_v38, 16  ;;  %v7933_v29 = vld [vmem:[#allocation9 + $0x138] sm:$0xff]  }
 0x137   : > { %2423 = vmatmul.mubr.bf16.gmra.mrb[24].mxu1 %v8967_v23  ;;  %958 = vst [vmem:[#allocation3 + $0x240] sm:$0xff] %v8977_v35  ;;  %1028 = vst [vmem:[#allocation3 + $0x1e0] sm:$0xff] %v8977_v35  ;;  %v1378_v52 = vsel %vm8827_vm5, %v1373_v40, %v1377_v26  ;;  %v905_v0 = vrot.slane %v903_v53, 7  ;;  %v1393_v3 = vshll.u32 %v1182_v38, 16  ;;  %v1399_v11 = vshll.u32 %v1183_v60, 16  ;;  %v7934_v32 = vld [vmem:[#allocation9 + $0x1a8] sm:$0xff]   ;;  %6910 = vmatpush3.bf16.msra.mxu0 %v7933_v29 }
 0x138   : > { %2430 = vmatprep.mubr.bf16.mxu1 %v8977_v35  ;;  %v1383_v54 = vrot.slane %v1382_v42, 4  ;;  %v899_v7 = vor.u32 %v897_v50, %v896_v58  ;;  %v901_v10 = vrot.slane %v896_v58, 4  ;;  %v1392_v9 = vrot.slane %v1390_v2, 4  ;;  %1140 = vst [vmem:[#allocation3 + $0x260] sm:$0xff] %v9005_v25  ;;  %1155 = vst [vmem:[#allocation3 + $0x230] sm:$0xff] %v9005_v25  ;;  %6982 = vmatpush3.bf16.msra.mxu1 %v7934_v32  ;;  %v7936_v47 = vld [vmem:[#allocation9 + $0x1b0] sm:$0xff]  }
 0x139   : > { %2318 = vmatmul.mubr.bf16.gmra.mrb[28].mxu0 %v8952_v49  ;;  %v908_v12 = vor.u32 %v906_v55, %v905_v0  ;;  %v1395_v13 = vrot.slane %v1393_v3, 5  ;;  %v1403_v17 = vshrl.u32 %v1183_v60, 16  ;;  %v1401_v19 = vrot.slane %v1399_v11, 5  ;;  %v681_v34 = vld [vmem:[#allocation2 + $0xcc] sm:$0x8]  ;;  %6983 = vmatprep.subr.bf16.mxu1 %v7935_v41  ;;  %v1568_v55 = vld [vmem:[#allocation3 + $0x28] sm:$0xff] }
 0x13a   : > { %2325 = vmatprep.mubr.bf16.mxu0 %v8980_v39  ;;  %v1388_v61 = vsel %vm8827_vm5, %v1383_v54, %v1387_v36  ;;  %v900_v18 = vsel %vm8809_vm2, %v6359_v57, %v899_v7  ;;  %v1409_v20 = vshll.u32 %v1184_v1, 16  ;;  %v682_v36 = vld [vmem:[#allocation2 + $0xd0] sm:$0xf]  ;;  %v683_v37 = vld [vmem:[#allocation2 + $0xd4] sm:$0xf]  ;;  %v961_v40 = vshrl.u32 %v681_v34, 16 }
 0x13b   : > { %v8994_v6 = vcombine.low %v1378_v52, %v1388_v61  ;;  %v909_v21 = vsel %vm8809_vm2, %v901_v10, %v908_v12  ;;  %v1396_v22 = vor.u32 %v1395_v13, %v1392_v9  ;;  %v1405_v24 = vrot.slane %v1403_v17, 4  ;;  %v7937_v52 = vld [vmem:[#allocation9 + $0x1f8] sm:$0xff]   ;;  %v1185_v58 = vld [vmem:[#allocation2 + $0xbc] sm:$0xf]  ;;  %v7939_v12 = vld [vmem:[#allocation9 + $0x200] sm:$0xff]  }
 0x13c   : > { %v9007_v26 = vcombine.low %v900_v18, %v909_v21  ;;  %v1411_v27 = vrot.slane %v1409_v20, 5  ;;  %v966_v44 = vshrl.u32 %v682_v36, 16  ;;  %v969_v46 = vshll.u32 %v682_v36, 16  ;;  %v1186_v38 = vld [vmem:[#allocation2 + $0xc0] sm:$0xf]  ;;  %6984 = vmatpush3.bf16.msra.mxu1 %v7936_v47  ;;  %v1567_v21 = vld [vmem:[#allocation3 + $0x20] sm:$0xff]  ;;  %7609 = vmatprep.subr.bf16.mxu0 %v7939_v12 }
 0x13d   : > { %1484 = vst [vmem:[#allocation3 + $0x208] sm:$0xff] %v8994_v6  ;;  %1521 = vst [vmem:[#allocation3 + $0x1d8] sm:$0xff] %v8994_v6  ;;  %v1397_v30 = vrot.slane %v1396_v22, 4  ;;  %v1406_v33 = vor.u32 %v1405_v24, %v1401_v19  ;;  %v6370_v48 = vrot.slane %v961_v40, 11  ;;  %v975_v50 = vshrl.u32 %v683_v37, 16  ;;  %v7938_v3 = vld [vmem:[#allocation9 + $0x1b8] sm:$0xff]   ;;  %6985 = vmatprep.subr.bf16.mxu1 %v7937_v52 }
 0x13e   : > { %1558 = vst [vmem:[#allocation3 + $0x1a8] sm:$0xff] %v8994_v6  ;;  %994 = vst [vmem:[#allocation3 + $0x258] sm:$0xff] %v9007_v26  ;;  %v978_v51 = vshll.u32 %v683_v37, 16  ;;  %v968_v53 = vrot.slane %v966_v44, 7  ;;  %v1187_v0 = vld [vmem:[#allocation2 + $0xc4] sm:$0x1] }
 0x13f   : > { %2431 = vmatmul.mubr.bf16.gmra.mrb[28].mxu1 %v8994_v6  ;;  %1029 = vst [vmem:[#allocation3 + $0x228] sm:$0xff] %v9007_v26  ;;  %v1402_v42 = vsel %vm8827_vm5, %v1397_v30, %v1401_v19  ;;  %v1407_v43 = vrot.slane %v1406_v33, 4  ;;  %v977_v57 = vrot.slane %v975_v50, 7  ;;  %v1414_v1 = vshrl.u32 %v1185_v58, 16  ;;  %v1577_v30 = vld [vmem:[#allocation3 + $0x70] sm:$0xff]  ;;  %v7940_v32 = vld [vmem:[#allocation9 + $0x208] sm:$0xff]  }
 0x140   : > { %2438 = vmatprep.mubr.bf16.mxu1 %v9007_v26  ;;  %v971_v60 = vor.u32 %v969_v46, %v968_v53  ;;  %v973_v61 = vrot.slane %v968_v53, 4  ;;  %v1417_v2 = vshll.u32 %v1185_v58, 16  ;;  %v1423_v7 = vshll.u32 %v1186_v38, 16  ;;  %6986 = vmatpush3.bf16.msra.mxu1 %v7938_v3  ;;  %v7941_v37 = vld [vmem:[#allocation9 + $0x210] sm:$0xff]   ;;  %v1570_v41 = vld [vmem:[#allocation3 + $0x38] sm:$0xff]  ;;  %v9043_v44 = vld [vmem:[#allocation2 + $0xd0] sm:$0xff]  }
 0x141   : > { %2326 = vmatmul.mubr.bf16.gmra.mrb[32].mxu0 %v8977_v35  ;;  %v1412_v54 = vsel %vm8827_vm5, %v1407_v43, %v1411_v27  ;;  %v980_v5 = vor.u32 %v978_v51, %v977_v57  ;;  %v1427_v10 = vshrl.u32 %v1186_v38, 16  ;;  %v1433_v11 = vshll.u32 %v1187_v0, 16  ;;  %v7942_v43 = vld [vmem:[#allocation9 + $0x218] sm:$0xff]   ;;  %v7943_v47 = vld [vmem:[#allocation9 + $0x220] sm:$0xff]   ;;  %1156 = vst [vmem:[#allocation3 + $0x278] sm:$0xff] %v9043_v44 }
 0x142   : > { %2333 = vmatprep.mubr.bf16.mxu0 %v9005_v25  ;;  %v9020_v56 = vcombine.low %v1402_v42, %v1412_v54  ;;  %v972_v9 = vsel %vm8809_vm2, %v6370_v48, %v971_v60  ;;  %v1416_v13 = vrot.slane %v1414_v1, 4  ;;  %v1419_v17 = vrot.slane %v1417_v2, 5  ;;  %v1576_v42 = vld [vmem:[#allocation3 + $0x68] sm:$0xff]  ;;  %v1569_v46 = vld [vmem:[#allocation3 + $0x30] sm:$0xff]  ;;  %v1188_v48 = vld [vmem:[#allocation2 + $0xd0] sm:$0xf] }
 0x143   : > { %v981_v8 = vsel %vm8809_vm2, %v973_v61, %v980_v5  ;;  %v1425_v18 = vrot.slane %v1423_v7, 5  ;;  %v1429_v19 = vrot.slane %v1427_v10, 4  ;;  %v1435_v20 = vrot.slane %v1433_v11, 5  ;;  %v1189_v50 = vld [vmem:[#allocation2 + $0xd4] sm:$0xf]  ;;  %v9047_v58 = vld [vmem:[#allocation2 + $0xe4] sm:$0xff]  }
 0x144   : > { %1485 = vst [vmem:[#allocation3 + $0x250] sm:$0xff] %v9020_v56  ;;  %1522 = vst [vmem:[#allocation3 + $0x220] sm:$0xff] %v9020_v56  ;;  %v9030_v22 = vcombine.low %v972_v9, %v981_v8  ;;  %v1420_v24 = vor.u32 %v1419_v17, %v1416_v13  ;;  %v1190_v51 = vld [vmem:[#allocation2 + $0xd8] sm:$0x1]  ;;  %v1488_v52 = vshrl.u32 %v1188_v48, 16  ;;  %v1491_v54 = vshll.u32 %v1188_v48, 16 }
 0x145   : > { %1559 = vst [vmem:[#allocation3 + $0x1f0] sm:$0xff] %v9020_v56  ;;  %v1430_v27 = vor.u32 %v1429_v19, %v1425_v18  ;;  %v1497_v53 = vshll.u32 %v1189_v50, 16  ;;  %v1507_v57 = vshll.u32 %v1190_v51, 16  ;;  %v684_v61 = vld [vmem:[#allocation2 + $0xe0] sm:$0x8]  ;;  %v7944_v5 = vld [vmem:[#allocation9 + $0x228] sm:$0xff]  }
 0x146   : > { %1030 = vst [vmem:[#allocation3 + $0x270] sm:$0xff] %v9030_v22  ;;  %v1421_v29 = vrot.slane %v1420_v24, 4  ;;  %v1490_v38 = vrot.slane %v1488_v52, 4  ;;  %v1493_v60 = vrot.slane %v1491_v54, 5  ;;  %v1585_v0 = vld [vmem:[#allocation3 + $0xb0] sm:$0xff]  ;;  %v997_v3 = vshrl.u32 %v684_v61, 16 }
 0x147   : > { %2439 = vmatmul.mubr.bf16.gmra.mrb[32].mxu1 %v9020_v56  ;;  %v1431_v33 = vrot.slane %v1430_v27, 4  ;;  %v685_v2 = vld [vmem:[#allocation2 + $0xe4] sm:$0xf]  ;;  %v686_v10 = vld [vmem:[#allocation2 + $0xe8] sm:$0xf]  ;;  %v7949_v9 = vld [vmem:[#allocation3 + $0xe0] sm:$0xff] }
 0x148   : > { %2446 = vmatprep.mubr.bf16.mxu1 %v9030_v22  ;;  %v1426_v34 = vsel %vm8827_vm5, %v1421_v29, %v1425_v18  ;;  %v1494_v7 = vor.u32 %v1493_v60, %v1490_v38  ;;  %v1002_v11 = vshrl.u32 %v685_v2, 16  ;;  %v1509_v17 = vrot.slane %v1507_v57, 5  ;;  %v1191_v19 = vld [vmem:[#allocation2 + $0xe4] sm:$0xf]  ;;  %v1192_v27 = vld [vmem:[#allocation2 + $0xe8] sm:$0xf] }
 0x149   : > { %2334 = vmatmul.mubr.bf16.gmra.mrb[36].mxu0 %v9007_v26  ;;  %v1436_v36 = vsel %vm8827_vm5, %v1431_v33, %v1435_v20  ;;  %v1011_v8 = vshrl.u32 %v686_v10, 16  ;;  %v1014_v18 = vshll.u32 %v686_v10, 16  ;;  %v1526_v33 = vshrl.u32 %v1191_v19, 16  ;;  %v7947_v60 = vld [vmem:[#allocation9 + $0x238] sm:$0xff]  }
 0x14a   : > { %2487 = vmatprep.mubr.bf16.mxu0 %v1568_v55  ;;  %v9038_v40 = vcombine.low %v1426_v34, %v1436_v36  ;;  %v1501_v55 = vshrl.u32 %v1189_v50, 16  ;;  %v1495_v20 = vrot.slane %v1494_v7, 4  ;;  %v1004_v24 = vrot.slane %v1002_v11, 7 }
 0x14b   : > { %v1529_v34 = vshll.u32 %v1191_v19, 16 }
 0x14c   : > { %1523 = vst [vmem:[#allocation3 + $0x268] sm:$0xff] %v9038_v40  ;;  %1560 = vst [vmem:[#allocation3 + $0x238] sm:$0xff] %v9038_v40  ;;  %v1503_v1 = vrot.slane %v1501_v55, 4 }
 0x14f   : > { %2447 = vmatmul.mubr.bf16.gmra.mrb[36].mxu1 %v9038_v40 }
 0x150   : > { %2600 = vmatprep.mubr.bf16.mxu1 %v1570_v41  ;;  %v1009_v41 = vrot.slane %v1004_v24, 4 }
 0x151   : > { %2488 = vmatmul.mubr.bf16.vlgmr.msra.gmra.mrb[40].mxu0 %v1567_v21  ;;  %v6372_v21 = vrot.slane %v997_v3, 11 }
 0x152   : > { %7610 = vmatpush3.bf16.msra.mxu0 %v7939_v12  ;;  %2495 = vmatprep.mubr.bf16.mxu0 %v1577_v30  ;;  %v1005_v12 = vshll.u32 %v685_v2, 16  ;;  %v1013_v30 = vrot.slane %v1011_v8, 7 }
 0x153   : > { %7611 = vmatprep.subr.bf16.mxu0 %v7940_v32 }
 0x154   : > { %v1016_v50 = vor.u32 %v1014_v18, %v1013_v30 }
 0x156   : > { %7612 = vmatpush3.bf16.msra.mxu0 %v7940_v32  ;;  %v7945_v32 = vld [vmem:[#allocation9 + $0x230] sm:$0xff]   ;;  %v1017_v55 = vsel %vm8809_vm2, %v1009_v41, %v1016_v50 }
 0x157   : > { %7613 = vmatprep.subr.bf16.mxu0 %v7941_v37  ;;  %2601 = vmatmul.mubr.bf16.vlgmr.msra.gmra.mrb[40].mxu1 %v1569_v46  ;;  %v1578_v46 = vld [vmem:[#allocation3 + $0x78] sm:$0xff] }
 0x158   : > { %2608 = vmatprep.mubr.bf16.mxu1 %v7949_v9 }
 0x159   : > { %2496 = vmatmul.mubr.bf16.gmra.mrb[44].mxu0 %v1576_v42  ;;  %v1193_v42 = vld [vmem:[#allocation2 + $0xec] sm:$0x1] }
 0x15a   : > { %2503 = vmatprep.mubr.bf16.mxu0 %v8888_v15  ;;  %7614 = vmatpush3.bf16.msra.mxu0 %v7941_v37  ;;  %v1499_v15 = vrot.slane %v1497_v53, 5  ;;  %v1007_v37 = vor.u32 %v1005_v12, %v1004_v24  ;;  %v1539_v53 = vshrl.u32 %v1192_v27, 16  ;;  %v1545_v38 = vshll.u32 %v1193_v42, 16  ;;  %v7951_v12 = vld [vmem:[#allocation3 + $0xf0] sm:$0xff] }
 0x15b   : > { %7615 = vmatprep.subr.bf16.mxu0 %v7942_v43 }
 0x15c   : > { %v1504_v13 = vor.u32 %v1503_v1, %v1499_v15  ;;  %v1500_v36 = vsel %vm8827_vm5, %v1495_v20, %v1499_v15  ;;  %v1008_v52 = vsel %vm8809_vm2, %v6372_v21, %v1007_v37  ;;  %v7950_v15 = vld [vmem:[#allocation3 + $0x128] sm:$0xff]  ;;  %v1547_v3 = vrot.slane %v1545_v38, 5 }
 0x15d   : > { %v6373_v61 = vcombine.low %v1008_v52, %v1017_v55 }
 0x15e   : > { %7616 = vmatpush3.bf16.msra.mxu0 %v7942_v43  ;;  %v1505_v29 = vrot.slane %v1504_v13, 4  ;;  %v1535_v43 = vshll.u32 %v1192_v27, 16 }
 0x15f   : > { %7617 = vmatprep.subr.bf16.mxu0 %v7943_v47  ;;  %2609 = vmatmul.mubr.bf16.gmra.mrb[44].mxu1 %v1578_v46 }
 0x160   : > { %v1510_v48 = vsel %vm8827_vm5, %v1505_v29, %v1509_v17  ;;  %v1537_v54 = vrot.slane %v1535_v43, 5  ;;  %2616 = vmatprep.mubr.bf16.mxu1 %v7950_v15 }
 0x161   : > { %2504 = vmatmul.mubr.bf16.gmra.mrb[48].mxu0 %v1585_v0  ;;  %v9054_v51 = vcombine.low %v1500_v36, %v1510_v48  ;;  %v1541_v0 = vrot.slane %v1539_v53, 4 }
 0x162   : > { %2511 = vmatprep.mubr.bf16.mxu0 %v8915_v63  ;;  %7618 = vmatpush3.bf16.msra.mxu0 %v7943_v47  ;;  %v1528_v63 = vrot.slane %v1526_v33, 4  ;;  %v1531_v47 = vrot.slane %v1529_v34, 5 }
 0x163   : > { %7619 = vmatprep.subr.bf16.mxu0 %v7944_v5  ;;  %1561 = vst [vmem:[#allocation3 + $0x280] sm:$0xff] %v9054_v51  ;;  %v1542_v2 = vor.u32 %v1541_v0, %v1537_v54 }
 0x164   : > { %v1532_v57 = vor.u32 %v1531_v47, %v1528_v63 }
 0x165   : > { %v1543_v7 = vrot.slane %v1542_v2, 4 }
 0x166   : > { %7620 = vmatpush3.bf16.msra.mxu0 %v7944_v5  ;;  %v1533_v1 = vrot.slane %v1532_v57, 4 }
 0x167   : > { %7621 = vmatprep.subr.bf16.mxu0 %v7945_v32  ;;  %v1548_v10 = vsel %vm8827_vm5, %v1543_v7, %v1547_v3  ;;  %2617 = vmatmul.mubr.bf16.gmra.mrb[48].mxu1 %v7951_v12 }
 0x168   : > { %v1538_v5 = vsel %vm8827_vm5, %v1533_v1, %v1537_v54  ;;  %2624 = vmatprep.mubr.bf16.mxu1 %v8886_v14 }
 0x169   : > { %2512 = vmatmul.mubr.bf16.gmra.mrb[52].mxu0 %v7950_v15  ;;  %v6397_v11 = vcombine.low %v1538_v5, %v1548_v10 }
 0x16a   : > { %2519 = vmatprep.mubr.bf16.mxu0 %v8940_v31  ;;  %7622 = vmatpush3.bf16.msra.mxu0 %v7945_v32 }
 0x16b   : > { %7623 = vmatprep.subr.bf16.mxu0 %v7947_v60 }
 0x16e   : > { %7624 = vmatpush3.bf16.msra.mxu0 %v7947_v60 }
 0x16f   : > { %2625 = vmatmul.mubr.bf16.gmra.mrb[52].mxu1 %v8900_v28  ;;  %v1580_v28 = vld [vmem:[#allocation3 + $0x88] sm:$0xff] }
 0x170   : > { %2632 = vmatprep.mubr.bf16.mxu1 %v8913_v62 }
 0x171   : > { %2520 = vmatmul.mubr.bf16.gmra.mrb[56].mxu0 %v8886_v14  ;;  %v1571_v14 = vld [vmem:[#allocation3 + $0x40] sm:$0xff] }
 0x172   : > { %2527 = vmatprep.mubr.bf16.mxu0 %v8967_v23 }
 0x177   : > { %2633 = vmatmul.mubr.bf16.gmra.mrb[56].mxu1 %v8921_v4 }
 0x178   : > { %2640 = vmatprep.mubr.bf16.mxu1 %v8947_v45 }
 0x179   : > { %2528 = vmatmul.mubr.bf16.gmra.mrb[60].mxu0 %v8913_v62  ;;  %v1589_v62 = vld [vmem:[#allocation3 + $0xd0] sm:$0xff] }
 0x17a   : > { %2535 = vmatprep.mubr.bf16.mxu0 %v8994_v6 }
 0x17f   : > { %2641 = vmatmul.mubr.bf16.gmra.mrb[60].mxu1 %v8952_v49 }
 0x180   : > { %2648 = vmatprep.mubr.bf16.mxu1 %v8980_v39 }
 0x181   : > { %2536 = vmatmul.mubr.bf16.gmra.mrb[64].mxu0 %v8947_v45 }
 0x182   : > { %2543 = vmatprep.mubr.bf16.mxu0 %v9020_v56 }
 0x187   : > { %2649 = vmatmul.mubr.bf16.gmra.mrb[64].mxu1 %v8977_v35 }
 0x188   : > { %2656 = vmatprep.mubr.bf16.mxu1 %v9005_v25 }
 0x189   : > { %2544 = vmatmul.mubr.bf16.gmra.mrb[68].mxu0 %v8980_v39 }
 0x18a   : > { %2551 = vmatprep.mubr.bf16.mxu0 %v9038_v40 }
 0x18f   : > { %2657 = vmatmul.mubr.bf16.gmra.mrb[68].mxu1 %v9007_v26 }
 0x190   : > { %2664 = vmatprep.mubr.bf16.mxu1 %v9043_v44 }
 0x191   : > { %2552 = vmatmul.mubr.bf16.gmra.mrb[72].mxu0 %v9005_v25 }
 0x192   : > { %2559 = vmatprep.mubr.bf16.mxu0 %v9054_v51 }
 0x197   : > { %2665 = vmatmul.mubr.bf16.gmra.mrb[72].mxu1 %v9030_v22 }
 0x198   : > { %2672 = vmatprep.mubr.bf16.mxu1 %v9047_v58 }
 0x199   : > { %2560 = vmatmul.mubr.bf16.gmra.mrb[76].mxu0 %v9043_v44 }
 0x19a   : > { %7625 = vmatprep.mubr.bf16.mxu0 %v1571_v14 }
 0x19f   : > { %2673 = vmatmul.mubr.bf16.gmra.mrb[76].mxu1 %v6373_v61 }
 0x1a1   : > { %7626 = vmatmul.mubr.bf16.vlgmr.msra.gmra.mrb[80].mxu0 %v1580_v28 }
 0x1a2   : > { %7629 = vmatprep.mubr.bf16.mxu0 %v1589_v62 }
 0x1a9   : > { %7630 = vmatmul.mubr.bf16.gmra.mrb[84].mxu0 %v8940_v31 }
 0x1aa   : > { %7633 = vmatprep.mubr.bf16.mxu0 %v8967_v23 }
 0x1b1   : > { %7634 = vmatmul.mubr.bf16.gmra.mrb[88].mxu0 %v8994_v6 }
 0x1b2   : > { %7637 = vmatprep.mubr.bf16.mxu0 %v9020_v56 }
 0x1b9   : > { %7638 = vmatmul.mubr.bf16.gmra.mrb[92].mxu0 %v9038_v40 }
 0x1ba   : > { %7641 = vmatprep.mubr.bf16.mxu0 %v9054_v51 }
 0x1c1   : > { %7642 = vmatmul.mubr.bf16.gmra.mrb[96].mxu0 %v6397_v11 }
 0x1d4   : > { %v6759_v4 = vpop.f32.mrb[0].mxu0 }
 0x1d5   : > { %v6760_v45 = vpop.f32.mrb[1].mxu0 }
 0x1d6   : > { %v6761_v49 = vadd.f32 %v6760_v45, %v6759_v4  ;;  %v6762_v35 = vpop.f32.mrb[2].mxu0 }
 0x1d7   : > { %v6763_v39 = vpop.f32.mrb[3].mxu0 }
 0x1d8   : > { %v6764_v25 = vadd.f32 %v6763_v39, %v6762_v35 }
 0x1da   : > { %v6835_v26 = vpop.f32.mrb[0].mxu1 }
 0x1db   : > { %v6836_v22 = vpop.f32.mrb[1].mxu1 }
 0x1dc   : > { %v6765_v31 = vpop.f32.mrb[4].mxu0  ;;  %v6837_v44 = vadd.f32 %v6836_v22, %v6835_v26  ;;  %v6838_v23 = vpop.f32.mrb[2].mxu1 }
 0x1dd   : > { %v6766_v58 = vpop.f32.mrb[5].mxu0  ;;  %v6839_v6 = vpop.f32.mrb[3].mxu1 }
 0x1de   : > { %v6767_v9 = vadd.f32 %v6766_v58, %v6765_v31  ;;  %v6768_v56 = vpop.f32.mrb[6].mxu0  ;;  %v9096_v13 = vadd.f32 %v6837_v44, %v6761_v49  ;;  %v6840_v40 = vadd.f32 %v6839_v6, %v6838_v23 }
 0x1df   : > { %v6769_v17 = vpop.f32.mrb[7].mxu0 }
 0x1e0   : > { %v6770_v8 = vadd.f32 %v6769_v17, %v6768_v56  ;;  %v9098_v18 = vadd.f32 %v6840_v40, %v6764_v25 }
 0x1e2   : > { %v6841_v19 = vpop.f32.mrb[4].mxu1 }
 0x1e3   : > { %v6842_v20 = vpop.f32.mrb[5].mxu1 }
 0x1e4   : > { %v6771_v21 = vpop.f32.mrb[8].mxu0  ;;  %v6843_v24 = vadd.f32 %v6842_v20, %v6841_v19  ;;  %v6844_v27 = vpop.f32.mrb[6].mxu1 }
 0x1e5   : > { %v6772_v29 = vpop.f32.mrb[9].mxu0  ;;  %v6845_v30 = vpop.f32.mrb[7].mxu1 }
 0x1e6   : > { %v6773_v33 = vadd.f32 %v6772_v29, %v6771_v21  ;;  %v6774_v34 = vpop.f32.mrb[10].mxu0  ;;  %v9100_v32 = vadd.f32 %v6843_v24, %v6767_v9  ;;  %v6846_v36 = vadd.f32 %v6845_v30, %v6844_v27 }
 0x1e7   : > { %v6775_v37 = vpop.f32.mrb[11].mxu0 }
 0x1e8   : > { %v6776_v41 = vadd.f32 %v6775_v37, %v6774_v34  ;;  %v9102_v42 = vadd.f32 %v6846_v36, %v6770_v8 }
 0x1ea   : > { %v6847_v43 = vpop.f32.mrb[8].mxu1 }
 0x1eb   : > { %v6848_v46 = vpop.f32.mrb[9].mxu1 }
 0x1ec   : > { %v6777_v48 = vpop.f32.mrb[12].mxu0  ;;  %v6849_v50 = vadd.f32 %v6848_v46, %v6847_v43  ;;  %v6850_v63 = vpop.f32.mrb[10].mxu1 }
 0x1ed   : > { %v6778_v47 = vpop.f32.mrb[13].mxu0  ;;  %v6851_v51 = vpop.f32.mrb[11].mxu1 }
 0x1ee   : > { %v6779_v52 = vadd.f32 %v6778_v47, %v6777_v48  ;;  %v6780_v54 = vpop.f32.mrb[14].mxu0  ;;  %v9104_v53 = vadd.f32 %v6849_v50, %v6773_v33  ;;  %v6852_v55 = vadd.f32 %v6851_v51, %v6850_v63 }
 0x1ef   : > { %v6781_v57 = vpop.f32.mrb[15].mxu0 }
 0x1f0   : > { %v6782_v38 = vadd.f32 %v6781_v57, %v6780_v54  ;;  %v9106_v60 = vadd.f32 %v6852_v55, %v6776_v41 }
 0x1f2   : > { %v6853_v61 = vpop.f32.mrb[12].mxu1 }
 0x1f3   : > { %v6854_v0 = vpop.f32.mrb[13].mxu1 }
 0x1f4   : > { %v6783_v15 = vpop.f32.mrb[16].mxu0  ;;  %v6855_v1 = vadd.f32 %v6854_v0, %v6853_v61  ;;  %v6856_v2 = vpop.f32.mrb[14].mxu1 }
 0x1f5   : > { %v6784_v3 = vpop.f32.mrb[17].mxu0  ;;  %v6857_v5 = vpop.f32.mrb[15].mxu1 }
 0x1f6   : > { %v6785_v7 = vadd.f32 %v6784_v3, %v6783_v15  ;;  %v6786_v10 = vpop.f32.mrb[18].mxu0  ;;  %v9108_v11 = vadd.f32 %v6855_v1, %v6779_v52  ;;  %v6858_v12 = vadd.f32 %v6857_v5, %v6856_v2 }
 0x1f7   : > { %v6787_v14 = vpop.f32.mrb[19].mxu0 }
 0x1f8   : > { %v6788_v28 = vadd.f32 %v6787_v14, %v6786_v10  ;;  %v9110_v62 = vadd.f32 %v6858_v12, %v6782_v38 }
 0x1fa   : > { %v6859_v4 = vpop.f32.mrb[16].mxu1 }
 0x1fb   : > { %v6860_v45 = vpop.f32.mrb[17].mxu1 }
 0x1fc   : > { %v6789_v49 = vpop.f32.mrb[20].mxu0  ;;  %v6861_v35 = vadd.f32 %v6860_v45, %v6859_v4  ;;  %v6862_v39 = vpop.f32.mrb[18].mxu1 }
 0x1fd   : > { %v6790_v25 = vpop.f32.mrb[21].mxu0  ;;  %v6863_v26 = vpop.f32.mrb[19].mxu1 }
 0x1fe   : > { %v6791_v22 = vadd.f32 %v6790_v25, %v6789_v49  ;;  %v6792_v31 = vpop.f32.mrb[22].mxu0  ;;  %v9112_v44 = vadd.f32 %v6861_v35, %v6785_v7  ;;  %v6864_v23 = vadd.f32 %v6863_v26, %v6862_v39 }
 0x1ff   : > { %v6793_v58 = vpop.f32.mrb[23].mxu0 }
 0x200   : > { %v6794_v6 = vadd.f32 %v6793_v58, %v6792_v31  ;;  %v9114_v9 = vadd.f32 %v6864_v23, %v6788_v28 }
 0x202   : > { %v6865_v56 = vpop.f32.mrb[20].mxu1 }
 0x203   : > { %v6866_v40 = vpop.f32.mrb[21].mxu1 }
 0x204   : > { %v6795_v17 = vpop.f32.mrb[24].mxu0  ;;  %v6867_v8 = vadd.f32 %v6866_v40, %v6865_v56  ;;  %v6868_v19 = vpop.f32.mrb[22].mxu1 }
 0x205   : > { %v6796_v20 = vpop.f32.mrb[25].mxu0  ;;  %v6869_v21 = vpop.f32.mrb[23].mxu1 }
 0x206   : > { %v6797_v24 = vadd.f32 %v6796_v20, %v6795_v17  ;;  %v6798_v27 = vpop.f32.mrb[26].mxu0  ;;  %v9116_v29 = vadd.f32 %v6867_v8, %v6791_v22  ;;  %v6870_v30 = vadd.f32 %v6869_v21, %v6868_v19 }
 0x207   : > { %v6799_v33 = vpop.f32.mrb[27].mxu0 }
 0x208   : > { %v6800_v34 = vadd.f32 %v6799_v33, %v6798_v27  ;;  %v9118_v36 = vadd.f32 %v6870_v30, %v6794_v6 }
 0x20a   : > { %v6871_v37 = vpop.f32.mrb[24].mxu1 }
 0x20b   : > { %v6872_v41 = vpop.f32.mrb[25].mxu1 }
 0x20c   : > { %v6801_v43 = vpop.f32.mrb[28].mxu0  ;;  %v6873_v46 = vadd.f32 %v6872_v41, %v6871_v37  ;;  %v6874_v48 = vpop.f32.mrb[26].mxu1 }
 0x20d   : > { %v6802_v50 = vpop.f32.mrb[29].mxu0  ;;  %v6875_v63 = vpop.f32.mrb[27].mxu1 }
 0x20e   : > { %v6803_v47 = vadd.f32 %v6802_v50, %v6801_v43  ;;  %v6804_v51 = vpop.f32.mrb[30].mxu0  ;;  %v9120_v52 = vadd.f32 %v6873_v46, %v6797_v24  ;;  %v6876_v54 = vadd.f32 %v6875_v63, %v6874_v48 }
 0x20f   : > { %v6805_v55 = vpop.f32.mrb[31].mxu0 }
 0x210   : > { %v6806_v57 = vadd.f32 %v6805_v55, %v6804_v51  ;;  %v9122_v38 = vadd.f32 %v6876_v54, %v6800_v34 }
 0x212   : > { %v6877_v0 = vpop.f32.mrb[28].mxu1 }
 0x213   : > { %v6878_v1 = vpop.f32.mrb[29].mxu1 }
 0x214   : > { %v6807_v61 = vpop.f32.mrb[32].mxu0  ;;  %v6879_v5 = vadd.f32 %v6878_v1, %v6877_v0  ;;  %v6880_v7 = vpop.f32.mrb[30].mxu1 }
 0x215   : > { %v6808_v15 = vpop.f32.mrb[33].mxu0  ;;  %v6881_v12 = vpop.f32.mrb[31].mxu1 }
 0x216   : > { %v6809_v2 = vadd.f32 %v6808_v15, %v6807_v61  ;;  %v6810_v3 = vpop.f32.mrb[34].mxu0  ;;  %v9124_v28 = vadd.f32 %v6879_v5, %v6803_v47  ;;  %v6882_v4 = vadd.f32 %v6881_v12, %v6880_v7 }
 0x217   : > { %v6811_v10 = vpop.f32.mrb[35].mxu0 }
 0x218   : > { %v6812_v14 = vadd.f32 %v6811_v10, %v6810_v3  ;;  %v9126_v45 = vadd.f32 %v6882_v4, %v6806_v57 }
 0x21a   : > { %v6883_v26 = vpop.f32.mrb[32].mxu1 }
 0x21b   : > { %v6884_v31 = vpop.f32.mrb[33].mxu1 }
 0x21c   : > { %v6813_v49 = vpop.f32.mrb[36].mxu0  ;;  %v6885_v58 = vadd.f32 %v6884_v31, %v6883_v26  ;;  %v6886_v6 = vpop.f32.mrb[34].mxu1 }
 0x21d   : > { %v6814_v35 = vpop.f32.mrb[37].mxu0  ;;  %v6887_v56 = vpop.f32.mrb[35].mxu1 }
 0x21e   : > { %v6815_v39 = vadd.f32 %v6814_v35, %v6813_v49  ;;  %v6816_v25 = vpop.f32.mrb[38].mxu0  ;;  %v9128_v40 = vadd.f32 %v6885_v58, %v6809_v2  ;;  %v6888_v17 = vadd.f32 %v6887_v56, %v6886_v6 }
 0x21f   : > { %v6817_v22 = vpop.f32.mrb[39].mxu0 }
 0x220   : > { %v6818_v23 = vadd.f32 %v6817_v22, %v6816_v25  ;;  %v9130_v19 = vadd.f32 %v6888_v17, %v6812_v14 }
 0x222   : > { %v6889_v34 = vpop.f32.mrb[36].mxu1 }
 0x223   : > { %v6890_v41 = vpop.f32.mrb[37].mxu1 }
 0x224   : > { %v6911_v8 = vpop.f32.mrb[40].mxu0  ;;  %v6891_v43 = vadd.f32 %v6890_v41, %v6889_v34  ;;  %v6892_v46 = vpop.f32.mrb[38].mxu1 }
 0x225   : > { %v6912_v20 = vpop.f32.mrb[41].mxu0  ;;  %v6893_v50 = vpop.f32.mrb[39].mxu1 }
 0x226   : > { %v6913_v21 = vadd.f32 %v6912_v20, %v6911_v8  ;;  %v6914_v24 = vpop.f32.mrb[42].mxu0  ;;  %v9134_v47 = vadd.f32 %v6891_v43, %v6815_v39  ;;  %v6894_v51 = vadd.f32 %v6893_v50, %v6892_v46 }
 0x227   : > { %v6915_v27 = vpop.f32.mrb[43].mxu0 }
 0x228   : > { %v2490_v30 = vadd.f32 %v6913_v21, %v9096_v13  ;;  %v6916_v33 = vadd.f32 %v6915_v27, %v6914_v24  ;;  %v9136_v61 = vadd.f32 %v6894_v51, %v6818_v23 }
 0x22a   : > { %v2493_v37 = vadd.f32 %v6916_v33, %v9098_v18  ;;  %v6987_v15 = vpop.f32.mrb[40].mxu1 }
 0x22b   : > { %v6988_v1 = vpop.f32.mrb[41].mxu1 }
 0x22c   : > { %v6917_v48 = vpop.f32.mrb[44].mxu0  ;;  %v6989_v2 = vadd.f32 %v6988_v1, %v6987_v15  ;;  %v6990_v3 = vpop.f32.mrb[42].mxu1 }
 0x22d   : > { %v6918_v63 = vpop.f32.mrb[45].mxu0  ;;  %v6991_v7 = vpop.f32.mrb[43].mxu1 }
 0x22e   : > { %v6919_v54 = vadd.f32 %v6918_v63, %v6917_v48  ;;  %v6920_v55 = vpop.f32.mrb[46].mxu0  ;;  %v6992_v12 = vadd.f32 %v6991_v7, %v6990_v3  ;;  %v9140_v49 = vadd.f32 %v6989_v2, %v2490_v30 }
 0x22f   : > { %v6921_v57 = vpop.f32.mrb[47].mxu0 }
 0x230   : > { %v2498_v13 = vadd.f32 %v6919_v54, %v9100_v32  ;;  %v6922_v0 = vadd.f32 %v6921_v57, %v6920_v55  ;;  %v9143_v32 = vadd.f32 %v6992_v12, %v2493_v37 }
 0x232   : > { %v2501_v18 = vadd.f32 %v6922_v0, %v9102_v42  ;;  %v6993_v26 = vpop.f32.mrb[44].mxu1 }
 0x233   : > { %v6994_v22 = vpop.f32.mrb[45].mxu1 }
 0x234   : > { %v6923_v5 = vpop.f32.mrb[48].mxu0  ;;  %v6995_v31 = vadd.f32 %v6994_v22, %v6993_v26  ;;  %v6996_v23 = vpop.f32.mrb[46].mxu1 }
 0x235   : > { %v6924_v10 = vpop.f32.mrb[49].mxu0  ;;  %v6997_v6 = vpop.f32.mrb[47].mxu1 }
 0x236   : > { %v6925_v14 = vadd.f32 %v6924_v10, %v6923_v5  ;;  %v6926_v4 = vpop.f32.mrb[50].mxu0  ;;  %v6998_v17 = vadd.f32 %v6997_v6, %v6996_v23  ;;  %v9146_v21 = vadd.f32 %v6995_v31, %v2498_v13 }
 0x237   : > { %v6927_v35 = vpop.f32.mrb[51].mxu0 }
 0x238   : > { %v2506_v39 = vadd.f32 %v6925_v14, %v9104_v53  ;;  %v6928_v25 = vadd.f32 %v6927_v35, %v6926_v4  ;;  %v9149_v30 = vadd.f32 %v6998_v17, %v2501_v18 }
 0x23a   : > { %v2509_v42 = vadd.f32 %v6928_v25, %v9106_v60  ;;  %v6999_v33 = vpop.f32.mrb[48].mxu1 }
 0x23b   : > { %v7000_v34 = vpop.f32.mrb[49].mxu1 }
 0x23c   : > { %v6929_v58 = vpop.f32.mrb[52].mxu0  ;;  %v7001_v37 = vadd.f32 %v7000_v34, %v6999_v33  ;;  %v7002_v41 = vpop.f32.mrb[50].mxu1 }
 0x23d   : > { %v6930_v56 = vpop.f32.mrb[53].mxu0  ;;  %v7003_v46 = vpop.f32.mrb[51].mxu1 }
 0x23e   : > { %v6931_v8 = vadd.f32 %v6930_v56, %v6929_v58  ;;  %v6932_v20 = vpop.f32.mrb[54].mxu0  ;;  %v7004_v50 = vadd.f32 %v7003_v46, %v7002_v41  ;;  %v9152_v54 = vadd.f32 %v7001_v37, %v2506_v39 }
 0x23f   : > { %v6933_v24 = vpop.f32.mrb[55].mxu0 }
 0x240   : > { %v2514_v53 = vadd.f32 %v6931_v8, %v9108_v11  ;;  %v6934_v27 = vadd.f32 %v6933_v24, %v6932_v20  ;;  %v9155_v13 = vadd.f32 %v7004_v50, %v2509_v42 }
 0x242   : > { %v2517_v60 = vadd.f32 %v6934_v27, %v9110_v62  ;;  %v7005_v0 = vpop.f32.mrb[52].mxu1 }
 0x243   : > { %v7006_v15 = vpop.f32.mrb[53].mxu1 }
 0x244   : > { %v6935_v43 = vpop.f32.mrb[56].mxu0  ;;  %v7007_v18 = vadd.f32 %v7006_v15, %v7005_v0  ;;  %v7008_v1 = vpop.f32.mrb[54].mxu1 }
 0x245   : > { %v6936_v48 = vpop.f32.mrb[57].mxu0  ;;  %v7009_v3 = vpop.f32.mrb[55].mxu1 }
 0x246   : > { %v6937_v63 = vadd.f32 %v6936_v48, %v6935_v43  ;;  %v6938_v51 = vpop.f32.mrb[58].mxu0  ;;  %v7010_v7 = vadd.f32 %v7009_v3, %v7008_v1  ;;  %v9158_v14 = vadd.f32 %v7007_v18, %v2514_v53 }
 0x247   : > { %v6939_v55 = vpop.f32.mrb[59].mxu0 }
 0x248   : > { %v2522_v11 = vadd.f32 %v6937_v63, %v9112_v44  ;;  %v6940_v57 = vadd.f32 %v6939_v55, %v6938_v51  ;;  %v9161_v39 = vadd.f32 %v7010_v7, %v2517_v60 }
 0x24a   : > { %v2525_v62 = vadd.f32 %v6940_v57, %v9114_v9  ;;  %v7011_v25 = vpop.f32.mrb[56].mxu1 }
 0x24b   : > { %v7012_v26 = vpop.f32.mrb[57].mxu1 }
 0x24c   : > { %v6941_v2 = vpop.f32.mrb[60].mxu0  ;;  %v7013_v42 = vadd.f32 %v7012_v26, %v7011_v25  ;;  %v7014_v22 = vpop.f32.mrb[58].mxu1 }
 0x24d   : > { %v6942_v5 = vpop.f32.mrb[61].mxu0  ;;  %v7015_v23 = vpop.f32.mrb[59].mxu1 }
 0x24e   : > { %v6943_v10 = vadd.f32 %v6942_v5, %v6941_v2  ;;  %v6944_v12 = vpop.f32.mrb[62].mxu0  ;;  %v7016_v6 = vadd.f32 %v7015_v23, %v7014_v22  ;;  %v9164_v8 = vadd.f32 %v7013_v42, %v2522_v11 }
 0x24f   : > { %v6945_v4 = vpop.f32.mrb[63].mxu0 }
 0x250   : > { %v2530_v44 = vadd.f32 %v6943_v10, %v9116_v29  ;;  %v6946_v35 = vadd.f32 %v6945_v4, %v6944_v12  ;;  %v9167_v53 = vadd.f32 %v7016_v6, %v2525_v62 }
 0x252   : > { %v2533_v9 = vadd.f32 %v6946_v35, %v9118_v36  ;;  %v7017_v27 = vpop.f32.mrb[60].mxu1 }
 0x253   : > { %v7018_v33 = vpop.f32.mrb[61].mxu1 }
 0x254   : > { %v6947_v31 = vpop.f32.mrb[64].mxu0  ;;  %v7019_v60 = vadd.f32 %v7018_v33, %v7017_v27  ;;  %v7020_v34 = vpop.f32.mrb[62].mxu1 }
 0x255   : > { %v6948_v58 = vpop.f32.mrb[65].mxu0  ;;  %v7021_v41 = vpop.f32.mrb[63].mxu1 }
 0x256   : > { %v6949_v56 = vadd.f32 %v6948_v58, %v6947_v31  ;;  %v6950_v17 = vpop.f32.mrb[66].mxu0  ;;  %v7022_v46 = vadd.f32 %v7021_v41, %v7020_v34  ;;  %v9170_v63 = vadd.f32 %v7019_v60, %v2530_v44  ;;  %v9191_v34 = vld [vmem:[%s9972_s29] ss:$0 sm:$0xff] }
 0x257   : > { %v6951_v20 = vpop.f32.mrb[67].mxu0 }
 0x258   : > { %v2538_v29 = vadd.f32 %v6949_v56, %v9120_v52  ;;  %v6952_v24 = vadd.f32 %v6951_v20, %v6950_v17  ;;  %v9173_v11 = vadd.f32 %v7022_v46, %v2533_v9  ;;  %v9197_v46 = vld [vmem:[%s9973_s25] ss:$0 sm:$0xff] }
 0x25a   : > { %v2541_v36 = vadd.f32 %v6952_v24, %v9122_v38  ;;  %v7023_v57 = vpop.f32.mrb[64].mxu1 }
 0x25b   : > { %v7024_v0 = vpop.f32.mrb[65].mxu1 }
 0x25c   : > { %v6953_v37 = vpop.f32.mrb[68].mxu0  ;;  %v7025_v62 = vadd.f32 %v7024_v0, %v7023_v57  ;;  %v7026_v15 = vpop.f32.mrb[66].mxu1 }
 0x25d   : > { %v6954_v43 = vpop.f32.mrb[69].mxu0  ;;  %v7027_v1 = vpop.f32.mrb[67].mxu1 }
 0x25e   : > { %v6955_v48 = vadd.f32 %v6954_v43, %v6953_v37  ;;  %v6956_v50 = vpop.f32.mrb[70].mxu0  ;;  %v7028_v3 = vadd.f32 %v7027_v1, %v7026_v15  ;;  %v9176_v10 = vadd.f32 %v7025_v62, %v2538_v29 }
 0x25f   : > { %v6957_v51 = vpop.f32.mrb[71].mxu0 }
 0x260   : > { %v2546_v52 = vadd.f32 %v6955_v48, %v9124_v28  ;;  %v6958_v55 = vadd.f32 %v6957_v51, %v6956_v50  ;;  %v9179_v44 = vadd.f32 %v7028_v3, %v2541_v36 }
 0x262   : > { %v2549_v38 = vadd.f32 %v6958_v55, %v9126_v45  ;;  %v7029_v35 = vpop.f32.mrb[68].mxu1 }
 0x263   : > { %v7030_v25 = vpop.f32.mrb[69].mxu1 }
 0x264   : > { %v6959_v18 = vpop.f32.mrb[72].mxu0  ;;  %v7031_v9 = vadd.f32 %v7030_v25, %v7029_v35  ;;  %v7032_v26 = vpop.f32.mrb[70].mxu1 }
 0x265   : > { %v6960_v2 = vpop.f32.mrb[73].mxu0  ;;  %v7033_v22 = vpop.f32.mrb[71].mxu1 }
 0x266   : > { %v6961_v5 = vadd.f32 %v6960_v2, %v6959_v18  ;;  %v6962_v7 = vpop.f32.mrb[74].mxu0  ;;  %v7034_v23 = vadd.f32 %v7033_v22, %v7032_v26  ;;  %v9182_v56 = vadd.f32 %v7031_v9, %v2546_v52 }
 0x267   : > { %v6963_v12 = vpop.f32.mrb[75].mxu0 }
 0x268   : > { %v2554_v28 = vadd.f32 %v6961_v5, %v9128_v40  ;;  %v6964_v4 = vadd.f32 %v6963_v12, %v6962_v7  ;;  %v9185_v29 = vadd.f32 %v7034_v23, %v2549_v38 }
 0x26a   : > { %v2557_v45 = vadd.f32 %v6964_v4, %v9130_v19  ;;  %v7035_v24 = vpop.f32.mrb[72].mxu1 }
 0x26b   : > { %v7036_v27 = vpop.f32.mrb[73].mxu1 }
 0x26c   : > { %v6965_v42 = vpop.f32.mrb[76].mxu0  ;;  %v7037_v36 = vadd.f32 %v7036_v27, %v7035_v24  ;;  %v7038_v33 = vpop.f32.mrb[74].mxu1 }
 0x26d   : > { %v6966_v31 = vpop.f32.mrb[77].mxu0  ;;  %v7039_v37 = vpop.f32.mrb[75].mxu1 }
 0x26e   : > { %v6967_v58 = vadd.f32 %v6966_v31, %v6965_v42  ;;  %v6968_v6 = vpop.f32.mrb[78].mxu0  ;;  %v9200_v50 = vadd.f32 %v7037_v36, %v2554_v28 }
 0x26f   : > { %v6969_v17 = vpop.f32.mrb[79].mxu0 }
 0x270   : > { %v2562_v40 = vadd.f32 %v6967_v58, %v9134_v47  ;;  %v6970_v20 = vadd.f32 %v6969_v17, %v6968_v6  ;;  %v7040_v47 = vadd.f32 %v7039_v37, %v7038_v33 }
 0x272   : > { %v2565_v19 = vadd.f32 %v6970_v20, %v9136_v61  ;;  %v9206_v38 = vadd.f32 %v7040_v47, %v2557_v45  ;;  %v7041_v15 = vpop.f32.mrb[76].mxu1 }
 0x273   : > { %v7042_v1 = vpop.f32.mrb[77].mxu1 }
 0x274   : > { %v7627_v60 = vpop.f32.mrb[80].mxu0  ;;  %v7043_v3 = vadd.f32 %v7042_v1, %v7041_v15  ;;  %v7044_v5 = vpop.f32.mrb[78].mxu1 }
 0x275   : > { %v2724_v41 = vadd.f32 %v7627_v60, %v9146_v21  ;;  %v2715_v43 = vpop.f32.mrb[81].mxu0  ;;  %v7045_v12 = vpop.f32.mrb[79].mxu1 }
 0x276   : > { %v2716_v61 = vadd.f32 %v2715_v43, %v9140_v49  ;;  %v7628_v48 = vpop.f32.mrb[82].mxu0  ;;  %v7046_v9 = vadd.f32 %v7045_v12, %v7044_v5  ;;  %v9216_v31 = vadd.f32 %v7043_v3, %v2562_v40 }
 0x277   : > { %v2803_v51 = vmul.f32 %v9191_v34, %v2724_v41  ;;  %v2727_v52 = vadd.f32 %v7628_v48, %v9149_v30  ;;  %v2718_v55 = vpop.f32.mrb[83].mxu0 }
 0x278   : > { %v2801_v57 = vmul.f32 %v9191_v34, %v2716_v61  ;;  %v2719_v21 = vadd.f32 %v2718_v55, %v9143_v32  ;;  %v9222_v27 = vadd.f32 %v7046_v9, %v2565_v19 }
 0x279   : > { %v2830_v0 = vadd.f32 %v9197_v46, %v2803_v51  ;;  %v2804_v62 = vmul.f32 %v9191_v34, %v2727_v52 }
 0x27a   : > { %v2828_v49 = vadd.f32 %v9197_v46, %v2801_v57  ;;  %v2802_v18 = vmul.f32 %v9191_v34, %v2719_v21 }
 0x27b   : > { %v2850_v2 = vmax.f32 %v2830_v0, 0.0  ;;  %v2831_v30 = vadd.f32 %v9197_v46, %v2804_v62 }
 0x27c   : > { %v2829_v7 = vadd.f32 %v9197_v46, %v2802_v18  ;;  %v7631_v32 = vpop.f32.mrb[84].mxu0  ;;  %v2848_v4 = vmax.f32 %v2828_v49, 0.0 }
 0x27d   : > { %v6694_v28 = vpack.c.bf16 %v2850_v2, %v2850_v2  ;;  %v2851_v35 = vmax.f32 %v2831_v30, 0.0  ;;  %v2740_v45 = vadd.f32 %v7631_v32, %v9158_v14  ;;  %v2731_v25 = vpop.f32.mrb[85].mxu0 }
 0x27e   : > { %v2849_v26 = vmax.f32 %v2829_v7, 0.0  ;;  %v2732_v42 = vadd.f32 %v2731_v25, %v9152_v54  ;;  %v7632_v22 = vpop.f32.mrb[86].mxu0 }
 0x27f   : > { %3000 = vst [vmem:[#allocation4 + $0x1c] sm:$0xf] %v6694_v28  ;;  %v6695_v23 = vpack.c.bf16 %v2851_v35, %v2851_v35  ;;  %v2807_v58 = vmul.f32 %v9191_v34, %v2740_v45  ;;  %v2743_v6 = vadd.f32 %v7632_v22, %v9161_v39  ;;  %v2734_v17 = vpop.f32.mrb[87].mxu0 }
 0x280   : > { %v6716_v20 = vpack.c.bf16 %v2849_v26, %v2848_v4  ;;  %v2805_v24 = vmul.f32 %v9191_v34, %v2732_v42  ;;  %v2735_v14 = vadd.f32 %v2734_v17, %v9155_v13 }
 0x281   : > { %3001 = vst [vmem:[#allocation4 + $0x20] sm:$0xf] %v6695_v23  ;;  %v2834_v54 = vadd.f32 %v9197_v46, %v2807_v58  ;;  %v2808_v40 = vmul.f32 %v9191_v34, %v2743_v6 }
 0x282   : > { %6738 = vst [vmem:[#allocation4 + $0x8] sm:$0xff] %v6716_v20   ;;  %v2832_v36 = vadd.f32 %v9197_v46, %v2805_v24  ;;  %v2806_v33 = vmul.f32 %v9191_v34, %v2735_v14 }
 0x283   : > { %v2854_v60 = vmax.f32 %v2834_v54, 0.0  ;;  %v2835_v39 = vadd.f32 %v9197_v46, %v2808_v40 }
 0x284   : > { %v2833_v37 = vadd.f32 %v9197_v46, %v2806_v33  ;;  %v7635_v41 = vpop.f32.mrb[88].mxu0  ;;  %v2852_v61 = vmax.f32 %v2832_v36, 0.0 }
 0x285   : > { %v6698_v43 = vpack.c.bf16 %v2854_v60, %v2854_v60  ;;  %v2855_v13 = vmax.f32 %v2835_v39, 0.0  ;;  %v2756_v19 = vadd.f32 %v7635_v41, %v9170_v63  ;;  %v2747_v47 = vpop.f32.mrb[89].mxu0 }
 0x286   : > { %v2853_v48 = vmax.f32 %v2833_v37, 0.0  ;;  %v2748_v51 = vadd.f32 %v2747_v47, %v9164_v8  ;;  %v7636_v52 = vpop.f32.mrb[90].mxu0 }
 0x287   : > { %3004 = vst [vmem:[#allocation4 + $0x44] sm:$0xf] %v6698_v43  ;;  %v6699_v55 = vpack.c.bf16 %v2855_v13, %v2855_v13  ;;  %v2811_v57 = vmul.f32 %v9191_v34, %v2756_v19  ;;  %v2759_v21 = vadd.f32 %v7636_v52, %v9173_v11  ;;  %v2750_v0 = vpop.f32.mrb[91].mxu0 }
 0x288   : > { %v6721_v62 = vpack.c.bf16 %v2853_v48, %v2852_v61  ;;  %v2809_v15 = vmul.f32 %v9191_v34, %v2748_v51  ;;  %v2751_v49 = vadd.f32 %v2750_v0, %v9167_v53 }
 0x289   : > { %3005 = vst [vmem:[#allocation4 + $0x48] sm:$0xf] %v6699_v55  ;;  %v2838_v63 = vadd.f32 %v9197_v46, %v2811_v57  ;;  %v2812_v18 = vmul.f32 %v9191_v34, %v2759_v21 }
 0x28a   : > { %6739 = vst [vmem:[#allocation4 + $0x30] sm:$0xff] %v6721_v62   ;;  %v2836_v8 = vadd.f32 %v9197_v46, %v2809_v15  ;;  %v2810_v1 = vmul.f32 %v9191_v34, %v2751_v49  ;;  %v8359_v49 = vmov (!%p6340_p10), 0  }
 0x28b   : > { %v2858_v2 = vmax.f32 %v2838_v63, 0.0  ;;  %v2839_v30 = vadd.f32 %v9197_v46, %v2812_v18  ;;  %3021 = vst [vmem:[#allocation4 + $0x8] sm:$0xf] (!%p6340_p10), %v8359_v49  ;;  %3022 = vst [vmem:[#allocation4 + $0xc] sm:$0xf] (!%p6340_p10), %v8359_v49 }
 0x28c   : > { %v2837_v11 = vadd.f32 %v9197_v46, %v2810_v1  ;;  %v7639_v3 = vpop.f32.mrb[92].mxu0  ;;  %v2856_v12 = vmax.f32 %v2836_v8, 0.0 }
 0x28d   : > { %v6702_v5 = vpack.c.bf16 %v2858_v2, %v2858_v2  ;;  %v2859_v7 = vmax.f32 %v2839_v30, 0.0  ;;  %v2772_v53 = vadd.f32 %v7639_v3, %v9182_v56  ;;  %v2763_v32 = vpop.f32.mrb[93].mxu0 }
 0x28e   : > { %v2857_v28 = vmax.f32 %v2837_v11, 0.0  ;;  %v2764_v4 = vadd.f32 %v2763_v32, %v9176_v10  ;;  %v7640_v35 = vpop.f32.mrb[94].mxu0 }
 0x28f   : > { %3008 = vst [vmem:[#allocation4 + $0x6c] sm:$0xf] %v6702_v5  ;;  %v6703_v45 = vpack.c.bf16 %v2859_v7, %v2859_v7  ;;  %v2815_v25 = vmul.f32 %v9191_v34, %v2772_v53  ;;  %v2775_v9 = vadd.f32 %v7640_v35, %v9185_v29  ;;  %v2766_v26 = vpop.f32.mrb[95].mxu0 }
 0x290   : > { %v6726_v42 = vpack.c.bf16 %v2857_v28, %v2856_v12  ;;  %v2813_v22 = vmul.f32 %v9191_v34, %v2764_v4  ;;  %v2767_v23 = vadd.f32 %v2766_v26, %v9179_v44 }
 0x291   : > { %3009 = vst [vmem:[#allocation4 + $0x70] sm:$0xf] %v6703_v45  ;;  %v2842_v56 = vadd.f32 %v9197_v46, %v2815_v25  ;;  %v2816_v58 = vmul.f32 %v9191_v34, %v2775_v9 }
 0x292   : > { %6740 = vst [vmem:[#allocation4 + $0x58] sm:$0xff] %v6726_v42   ;;  %v2840_v10 = vadd.f32 %v9197_v46, %v2813_v22  ;;  %v2814_v6 = vmul.f32 %v9191_v34, %v2767_v23 }
 0x293   : > { %v2862_v17 = vmax.f32 %v2842_v56, 0.0  ;;  %v2843_v20 = vadd.f32 %v9197_v46, %v2816_v58 }
 0x294   : > { %v2841_v29 = vadd.f32 %v9197_v46, %v2814_v6  ;;  %v7643_v24 = vpop.f32.mrb[96].mxu0  ;;  %v2860_v36 = vmax.f32 %v2840_v10, 0.0 }
 0x295   : > { %v6706_v14 = vpack.c.bf16 %v2862_v17, %v2862_v17  ;;  %v2863_v54 = vmax.f32 %v2843_v20, 0.0  ;;  %v2788_v44 = vadd.f32 %v7643_v24, %v9216_v31  ;;  %v2779_v40 = vpop.f32.mrb[97].mxu0 }
 0x296   : > { %v2861_v33 = vmax.f32 %v2841_v29, 0.0  ;;  %v2780_v60 = vadd.f32 %v2779_v40, %v9200_v50  ;;  %v7644_v39 = vpop.f32.mrb[98].mxu0 }
 0x297   : > { %3012 = vst [vmem:[#allocation4 + $0x94] sm:$0xf] %v6706_v14  ;;  %v6707_v37 = vpack.c.bf16 %v2863_v54, %v2863_v54  ;;  %v2819_v41 = vmul.f32 %v9191_v34, %v2788_v44  ;;  %v2791_v43 = vadd.f32 %v7644_v39, %v9222_v27  ;;  %v2782_v13 = vpop.f32.mrb[99].mxu0 }
 0x298   : > { %v6731_v19 = vpack.c.bf16 %v2861_v33, %v2860_v36  ;;  %v2817_v47 = vmul.f32 %v9191_v34, %v2780_v60  ;;  %v2783_v61 = vadd.f32 %v2782_v13, %v9206_v38 }
 0x299   : > { %3013 = vst [vmem:[#allocation4 + $0x98] sm:$0xf] %v6707_v37  ;;  %v2846_v31 = vadd.f32 %v9197_v46, %v2819_v41  ;;  %v2820_v48 = vmul.f32 %v9191_v34, %v2791_v43 }
 0x29a   : > { %6741 = vst [vmem:[#allocation4 + $0x80] sm:$0xff] %v6731_v19   ;;  %v2844_v50 = vadd.f32 %v9197_v46, %v2817_v47  ;;  %v2818_v51 = vmul.f32 %v9191_v34, %v2783_v61 }
 0x29b   : > { %v2866_v52 = vmax.f32 %v2846_v31, 0.0  ;;  %v2847_v55 = vadd.f32 %v9197_v46, %v2820_v48 }
 0x29c   : > { %v2845_v27 = vadd.f32 %v9197_v46, %v2818_v51  ;;  %v2864_v0 = vmax.f32 %v2844_v50, 0.0  ;;  %3020 = sbr.rel (%p6340_p10) target bundleno = 675 (0x2a3), region = 92 }
 0x29d   : > { %v6710_v57 = vpack.c.bf16 %v2866_v52, %v2866_v52  ;;  %v2867_v21 = vmax.f32 %v2847_v55, 0.0 }
 0x29e   : > { %v2865_v62 = vmax.f32 %v2845_v27, 0.0 }
 0x29f   : > { %3016 = vst [vmem:[#allocation4 + $0xbc] sm:$0xf] %v6710_v57  ;;  %v6711_v38 = vpack.c.bf16 %v2867_v21, %v2867_v21 }
 0x2a0   : > { %v6736_v15 = vpack.c.bf16 %v2865_v62, %v2864_v0 }
 0x2a1   : > { %3017 = vst [vmem:[#allocation4 + $0xc0] sm:$0xf] %v6711_v38 }
 0x2a2   : > { %6742 = vst [vmem:[#allocation4 + $0xa8] sm:$0xff] %v6736_v15  }
 0x2a3 PF: > { %3025 = sbr.rel (%p6341_p2) target bundleno = 682 (0x2aa), region = 96  ;;  %v8360_v34 = vmov (!%p6341_p2), 0  }
 0x2a4   : > { %3027 = vst [vmem:[#allocation4 + $0xbc] sm:$0xf] (!%p6341_p2), %v8360_v34  ;;  %3028 = vst [vmem:[#allocation4 + $0xc0] sm:$0xf] (!%p6341_p2), %v8360_v34 }
 0x2aa PF: > { %v7952_v46 = vld [vmem:[#allocation11 + $0x40] sm:$0xff]   ;;  %v7956_v1 = vld [vmem:[#allocation11 + $0x48] sm:$0xff]   ;;  %v7960_v3 = vld [vmem:[#allocation11 + $0x50] sm:$0xff]   ;;  %s9974_s20 = sld [smem:[#allocation27_spill]]  ;;  %s9975_s8 = sld [smem:[#allocation29_spill]] }
 0x2ab   : > { %v7953_v63 = vld [vmem:[#allocation11 + $0xc0] sm:$0xff]   ;;  %7065 = vmatprep.subr.bf16.mxu1 %v7952_v46  ;;  %v7957_v2 = vld [vmem:[#allocation11 + $0xc8] sm:$0xff]   ;;  %v7961_v5 = vld [vmem:[#allocation11 + $0xd0] sm:$0xff]   ;;  %s9976_s2 = sld [smem:[#allocation28_spill]]  ;;  %s9977_s29 = sld [smem:[#allocation30_spill]] }
 0x2ac   : > { %v7954_v18 = vld [vmem:[#allocation11] sm:$0xff]   ;;  %7129 = vmatprep.subr.bf16.mxu0 %v7953_v63  ;;  %v7958_v30 = vld [vmem:[#allocation11 + $0x8] sm:$0xff]   ;;  %v7962_v7 = vld [vmem:[#allocation11 + $0x10] sm:$0xff]   ;;  %s9978_s13 = sld [smem:[#allocation20_spill]]  ;;  %s6712_s12 = sshll.u32 %s8334_s19, 4 }
 0x2ad   : > { %v7955_v8 = vld [vmem:[#allocation11 + $0x80] sm:$0xff]   ;;  %7066 = vmatpush3.bf16.msra.mxu1 %v7954_v18  ;;  %v7959_v11 = vld [vmem:[#allocation11 + $0x88] sm:$0xff]   ;;  %v7963_v53 = vld [vmem:[#allocation11 + $0x90] sm:$0xff]   ;;  %s6204_s11 = sshll.u32 %s8745_s26, 4  ;;  %s9979_s28 = sld [smem:[#allocation21_spill]]  ;;  %s9842_s11 = int_to_ptr.vmem [resolvable:$true] %s6204_s11 }
 0x2ae   : > { %7130 = vmatpush3.bf16.msra.mxu0 %v7955_v8  ;;  %7067 = vmatprep.subr.bf16.mxu1 %v7956_v1  ;;  %v7964_v32 = vld [vmem:[#allocation11 + $0x58] sm:$0xff]   ;;  %v7968_v35 = vld [vmem:[#allocation11 + $0x60] sm:$0xff]   ;;  %v7972_v26 = vld [vmem:[#allocation11 + $0x68] sm:$0xff]   ;;  %s9854_s16 = scalar_lea.sflag [#allocation8], %s433_s4  ;;  %s8361_s10 = smov [#allocation14]  }
 0x2af   : > { %7131 = vmatprep.subr.bf16.mxu0 %v7957_v2  ;;  %v7965_v12 = vld [vmem:[#allocation11 + $0xd8] sm:$0xff]   ;;  %v7969_v45 = vld [vmem:[#allocation11 + $0xe0] sm:$0xff]   ;;  %v7973_v42 = vld [vmem:[#allocation11 + $0xe8] sm:$0xff]   ;;  %s8224_s1 = sshll.u32 %s8361_s10, 4  ;;  %s8225_s1 = int_to_ptr.vmem [resolvable:$false] %s8224_s1 }
 0x2b0   : > { %v7966_v28 = vld [vmem:[#allocation11 + $0x18] sm:$0xff]   ;;  %v7970_v25 = vld [vmem:[#allocation11 + $0x20] sm:$0xff]   ;;  %v7974_v22 = vld [vmem:[#allocation11 + $0x28] sm:$0xff]   ;;  %p8227_p7 = scmp.lt.s32.totalorder %s9842_s11, %s8225_s1 }
 0x2b1   : > { %7068 = vmatpush3.bf16.msra.mxu1 %v7958_v30  ;;  %v7967_v4 = vld [vmem:[#allocation11 + $0x98] sm:$0xff]   ;;  %v7971_v9 = vld [vmem:[#allocation11 + $0xa0] sm:$0xff]   ;;  %v7975_v23 = vld [vmem:[#allocation11 + $0xa8] sm:$0xff]  }
 0x2b2   : > { %7132 = vmatpush3.bf16.msra.mxu0 %v7959_v11  ;;  %7069 = vmatprep.subr.bf16.mxu1 %v7960_v3  ;;  %v7976_v56 = vld [vmem:[#allocation11 + $0x70] sm:$0xff]   ;;  %v7980_v17 = vld [vmem:[#allocation11 + $0x78] sm:$0xff]   ;;  %v7984_v14 = vld [vmem:[#allocation4 + $0x8] sm:$0xff]   ;;  %s6685_s25 = sshll.u32 %s9978_s13, 5 }
 0x2b3   : > { %7133 = vmatprep.subr.bf16.mxu0 %v7961_v5  ;;  %v7977_v58 = vld [vmem:[#allocation11 + $0xf0] sm:$0xff]   ;;  %v7981_v20 = vld [vmem:[#allocation11 + $0xf8] sm:$0xff]   ;;  %4461 = vmatprep.mubr.bf16.mxu1 %v7984_v14  ;;  %v3030_v43 = vld [vmem:[#allocation4 + $0x8] sm:$0xf]  ;;  %s6201_s19 = sadd.s32 %s6712_s12, %s6685_s25  ;;  %p9981_p8 = scmp.ne.s32.totalorder %s9979_s28, 0 }
 0x2b4   : > { %v7978_v10 = vld [vmem:[#allocation11 + $0x30] sm:$0xff]   ;;  %v7982_v29 = vld [vmem:[#allocation11 + $0x38] sm:$0xff]   ;;  %v3031_v13 = vld [vmem:[#allocation4 + $0xc] sm:$0xf]  ;;  %v3065_v48 = vshrl.u32 %v3030_v43, 16  ;;  %v3068_v52 = vshll.u32 %v3030_v43, 16 }
 0x2b5   : > { %7070 = vmatpush3.bf16.msra.mxu1 %v7962_v7  ;;  %v7979_v6 = vld [vmem:[#allocation11 + $0xb0] sm:$0xff]   ;;  %v7983_v24 = vld [vmem:[#allocation11 + $0xb8] sm:$0xff]   ;;  %v3447_v50 = vld [vmem:[#allocation4 + $0x8] sm:$0xf]  ;;  %v3074_v55 = vshrl.u32 %v3031_v13, 16  ;;  %v3077_v27 = vshll.u32 %v3031_v13, 16 }
 0x2b6   : > { %7134 = vmatpush3.bf16.msra.mxu0 %v7963_v53  ;;  %7071 = vmatprep.subr.bf16.mxu1 %v7964_v32  ;;  %v3032_v54 = vld [vmem:[#allocation4 + $0x18] sm:$0x8]  ;;  %v3033_v44 = vld [vmem:[#allocation4 + $0x1c] sm:$0xf]  ;;  %v3034_v40 = vld [vmem:[#allocation4 + $0x20] sm:$0xf] }
 0x2b7   : > { %7135 = vmatprep.subr.bf16.mxu0 %v7965_v12  ;;  %v3082_v36 = vshrl.u32 %v3032_v54, 16  ;;  %v3087_v33 = vshrl.u32 %v3033_v44, 16  ;;  %v3090_v60 = vshll.u32 %v3033_v44, 16  ;;  %v3096_v39 = vshrl.u32 %v3034_v40, 16  ;;  %v3029_v37 = vld [vmem:[#allocation4 + $0x4] sm:$0x8] }
 0x2b8   : > { %v3099_v41 = vshll.u32 %v3034_v40, 16  ;;  %v3060_v19 = vshrl.u32 %v3029_v37, 16  ;;  %v3448_v57 = vld [vmem:[#allocation4 + $0xc] sm:$0xf]  ;;  %v3067_v38 = vrot.slane %v3065_v48, 7  ;;  %v3076_v49 = vrot.slane %v3074_v55, 7 }
 0x2b9   : > { %7072 = vmatpush3.bf16.msra.mxu1 %v7966_v28  ;;  %v6495_v47 = vrot.slane %v3082_v36, 11  ;;  %v3089_v61 = vrot.slane %v3087_v33, 7  ;;  %v3098_v31 = vrot.slane %v3096_v39, 7  ;;  %v3449_v15 = vld [vmem:[#allocation4 + $0x10] sm:$0x1]  ;;  %v3478_v34 = vshrl.u32 %v3447_v50, 16 }
 0x2ba   : > { %7136 = vmatpush3.bf16.msra.mxu0 %v7967_v4  ;;  %7073 = vmatprep.subr.bf16.mxu1 %v7968_v35  ;;  %v6494_v51 = vrot.slane %v3060_v19, 11  ;;  %v3481_v46 = vshll.u32 %v3447_v50, 16  ;;  %v3487_v63 = vshll.u32 %v3448_v57, 16  ;;  %v3070_v1 = vor.u32 %v3068_v52, %v3067_v38  ;;  %v7985_v30 = vld [vmem:[#allocation11 + $0x140] sm:$0xff]   ;;  %v9278_v35 = vld [vmem:[#allocation4 + $0x1c] sm:$0xff]   ;;  %v9286_v55 = vld [vmem:[#allocation4 + $0x30] sm:$0xff]  }
 0x2bb   : > { %7137 = vmatprep.subr.bf16.mxu0 %v7969_v45  ;;  %v3092_v21 = vor.u32 %v3090_v60, %v3089_v61  ;;  %v3094_v0 = vrot.slane %v3089_v61, 4  ;;  %v3101_v62 = vor.u32 %v3099_v41, %v3098_v31  ;;  %v3072_v2 = vrot.slane %v3067_v38, 4  ;;  %v7986_v53 = vld [vmem:[#allocation11 + $0x100] sm:$0xff]   ;;  %v3451_v14 = vld [vmem:[#allocation4 + $0x20] sm:$0xf]  ;;  %v7989_v60 = vld [vmem:[#allocation11 + $0x108] sm:$0xff]  }
 0x2bc   : > { %v3079_v3 = vor.u32 %v3077_v27, %v3076_v49  ;;  %v3480_v5 = vrot.slane %v3478_v34, 4  ;;  %v3483_v7 = vrot.slane %v3481_v46, 5  ;;  %v3071_v32 = vsel %vm8809_vm2, %v6494_v51, %v3070_v1  ;;  %v3452_v36 = vld [vmem:[#allocation4 + $0x24] sm:$0x1]  ;;  %v7991_v13 = vld [vmem:[#allocation11 + $0x150] sm:$0xff]   ;;  %v8081_v59 = vld [vmem:[#allocation12 + $0x1a0] sm:$0xff]  }
 0x2bd   : > { %7074 = vmatpush3.bf16.msra.mxu1 %v7970_v25  ;;  %v3093_v18 = vsel %vm8809_vm2, %v6495_v47, %v3092_v21  ;;  %v3102_v8 = vsel %vm8809_vm2, %v3094_v0, %v3101_v62  ;;  %v3489_v12 = vrot.slane %v3487_v63, 5  ;;  %v3491_v28 = vshrl.u32 %v3448_v57, 16  ;;  %v7992_v62 = vld [vmem:[#allocation11 + $0x110] sm:$0xff]   ;;  %v3038_v46 = vld [vmem:[#allocation4 + $0x40] sm:$0x8] }
 0x2be   : > { %7138 = vmatpush3.bf16.msra.mxu0 %v7971_v9  ;;  %7075 = vmatprep.subr.bf16.mxu1 %v7972_v26  ;;  %v9274_v11 = vcombine.low %v3093_v18, %v3102_v8  ;;  %v3497_v4 = vshll.u32 %v3449_v15, 16  ;;  %v3080_v45 = vsel %vm8809_vm2, %v3072_v2, %v3079_v3  ;;  %v3484_v25 = vor.u32 %v3483_v7, %v3480_v5  ;;  %v3035_v9 = vld [vmem:[#allocation4 + $0x2c] sm:$0x8]  ;;  %v3036_v26 = vld [vmem:[#allocation4 + $0x30] sm:$0xf]  ;;  %v8055_v16 = vld [vmem:[#allocation12 + $0x10] sm:$0xff]  }
 0x2bf   : > { %7139 = vmatprep.subr.bf16.mxu0 %v7973_v42  ;;  %v3037_v42 = vld [vmem:[#allocation4 + $0x34] sm:$0xf]  ;;  %v3511_v61 = vshll.u32 %v3451_v14, 16  ;;  %v3515_v31 = vshrl.u32 %v3451_v14, 16  ;;  %v3521_v0 = vshll.u32 %v3452_v36, 16  ;;  %v9305_v14 = vld [vmem:[#allocation4 + $0x44] sm:$0xff]  }
 0x2c0   : > { %4558 = vmatprep.mubr.bf16.mxu0 %v9274_v11  ;;  %v3121_v40 = vshll.u32 %v3037_v42, 16  ;;  %v3039_v63 = vld [vmem:[#allocation4 + $0x44] sm:$0xf]  ;;  %v3040_v2 = vld [vmem:[#allocation4 + $0x48] sm:$0xf] }
 0x2c1   : > { %7076 = vmatpush3.bf16.msra.mxu1 %v7974_v22  ;;  %v6502_v22 = vcombine.low %v3071_v32, %v3080_v45  ;;  %v3513_v57 = vrot.slane %v3511_v61, 5  ;;  %v3517_v21 = vrot.slane %v3515_v31, 4  ;;  %v3523_v1 = vrot.slane %v3521_v0, 5  ;;  %v3453_v3 = vld [vmem:[#allocation4 + $0x30] sm:$0xf] }
 0x2c2   : > { %7140 = vmatpush3.bf16.msra.mxu0 %v7975_v23  ;;  %7077 = vmatprep.subr.bf16.mxu1 %v7976_v56  ;;  %v3493_v23 = vrot.slane %v3491_v28, 4  ;;  %v3499_v56 = vrot.slane %v3497_v4, 5  ;;  %v3131_v7 = vshrl.u32 %v3039_v63, 16  ;;  %v3140_v32 = vshrl.u32 %v3040_v2, 16  ;;  %v3043_v61 = vld [vmem:[#allocation4 + $0x5c] sm:$0xf] }
 0x2c3   : > { %7141 = vmatprep.subr.bf16.mxu0 %v7977_v58  ;;  %v3104_v58 = vshrl.u32 %v3035_v9, 16  ;;  %v3518_v8 = vor.u32 %v3517_v21, %v3513_v57  ;;  %v3143_v45 = vshll.u32 %v3040_v2, 16  ;;  %v3526_v9 = vshrl.u32 %v3453_v3, 16  ;;  %v3456_v31 = vld [vmem:[#allocation4 + $0x44] sm:$0xf] }
 0x2c4   : > { %v3494_v54 = vor.u32 %v3493_v23, %v3489_v12  ;;  %v3529_v23 = vshll.u32 %v3453_v3, 16  ;;  %v3165_v0 = vshll.u32 %v3043_v61, 16 }
 0x2c5   : > { %7078 = vmatpush3.bf16.msra.mxu1 %v7978_v10  ;;  %v3450_v10 = vld [vmem:[#allocation4 + $0x1c] sm:$0xf]  ;;  %v6496_v44 = vrot.slane %v3104_v58, 11  ;;  %v3519_v28 = vrot.slane %v3518_v8, 4  ;;  %v3528_v58 = vrot.slane %v3526_v9, 4 }
 0x2c6   : > { %7142 = vmatpush3.bf16.msra.mxu0 %v7979_v6  ;;  %7079 = vmatprep.subr.bf16.mxu1 %v7980_v17  ;;  %v7988_v6 = vld [vmem:[#allocation11 + $0x148] sm:$0xff]   ;;  %v3485_v17 = vrot.slane %v3484_v25, 4  ;;  %v3502_v33 = vshrl.u32 %v3450_v10, 16  ;;  %v3505_v43 = vshll.u32 %v3450_v10, 16  ;;  %v3495_v19 = vrot.slane %v3494_v54, 4  ;;  %v7995_v54 = vld [vmem:[#allocation11 + $0x118] sm:$0xff]  }
 0x2c7   : > { %7143 = vmatprep.subr.bf16.mxu0 %v7981_v20  ;;  %v3109_v20 = vshrl.u32 %v3036_v26, 16  ;;  %v3455_v25 = vld [vmem:[#allocation4 + $0x38] sm:$0x1] }
 0x2c8   : > { %v3490_v39 = vsel %vm8827_vm5, %v3485_v17, %v3489_v12  ;;  %v3504_v47 = vrot.slane %v3502_v33, 4  ;;  %v3507_v52 = vrot.slane %v3505_v43, 5  ;;  %v3500_v27 = vsel %vm8827_vm5, %v3495_v19, %v3499_v56  ;;  %v3454_v12 = vld [vmem:[#allocation4 + $0x34] sm:$0xf] }
 0x2c9   : > { %7080 = vmatpush3.bf16.msra.mxu1 %v7982_v29  ;;  %v3112_v29 = vshll.u32 %v3036_v26, 16  ;;  %v3111_v37 = vrot.slane %v3109_v20, 7  ;;  %v6524_v38 = vcombine.low %v3490_v39, %v3500_v27  ;;  %v3524_v56 = vsel %vm8827_vm5, %v3519_v28, %v3523_v1  ;;  %v3457_v27 = vld [vmem:[#allocation4 + $0x48] sm:$0xf] }
 0x2ca   : > { %7144 = vmatpush3.bf16.msra.mxu0 %v7983_v24  ;;  %7193 = vmatprep.subr.bf16.mxu1 %v7985_v30  ;;  %v3118_v24 = vshrl.u32 %v3037_v42, 16  ;;  %v3508_v34 = vor.u32 %v3507_v52, %v3504_v47  ;;  %v3126_v30 = vshrl.u32 %v3038_v46, 16  ;;  %v3133_v42 = vrot.slane %v3131_v7, 7 }
 0x2cb   : > { %v3114_v48 = vor.u32 %v3112_v29, %v3111_v37  ;;  %v3116_v50 = vrot.slane %v3111_v37, 4  ;;  %v3535_v10 = vshll.u32 %v3454_v12, 16  ;;  %v3545_v33 = vshll.u32 %v3455_v25, 16  ;;  %v3041_v37 = vld [vmem:[#allocation4 + $0x54] sm:$0x8] }
 0x2cc   : > { %4462 = vmatmul.mubr.bf16.vlgmr.msra.gmra.mrb[80].mxu1 %v6502_v22  ;;  %v3120_v41 = vrot.slane %v3118_v24, 7  ;;  %v3509_v5 = vrot.slane %v3508_v34, 4  ;;  %v6497_v4 = vrot.slane %v3126_v30, 11  ;;  %v3142_v22 = vrot.slane %v3140_v32, 7  ;;  %v7997_v32 = vld [vmem:[#allocation11 + $0x160] sm:$0xff]  }
 0x2cd   : > { %7194 = vmatpush3.bf16.msra.mxu1 %v7986_v53  ;;  %4469 = vmatprep.mubr.bf16.mxu1 %v9278_v35  ;;  %v3115_v15 = vsel %vm8809_vm2, %v6496_v44, %v3114_v48  ;;  %v3134_v53 = vshll.u32 %v3039_v63, 16  ;;  %v3138_v29 = vrot.slane %v3133_v42, 4  ;;  %v3531_v44 = vrot.slane %v3529_v23, 5 }
 0x2ce   : > { %7195 = vmatprep.subr.bf16.mxu1 %v7988_v6  ;;  %v3123_v51 = vor.u32 %v3121_v40, %v3120_v41  ;;  %4559 = vmatmul.mubr.bf16.vlgmr.msra.gmra.mrb[100].mxu0 %v6524_v38  ;;  %v3514_v26 = vsel %vm8827_vm5, %v3509_v5, %v3513_v57  ;;  %v7994_v6 = vld [vmem:[#allocation11 + $0x158] sm:$0xff]   ;;  %v3145_v24 = vor.u32 %v3143_v45, %v3142_v22  ;;  %v3537_v40 = vrot.slane %v3535_v10, 5  ;;  %v3042_v41 = vld [vmem:[#allocation4 + $0x58] sm:$0xf]  ;;  %v3046_v22 = vld [vmem:[#allocation4 + $0x70] sm:$0xf] }
 0x2cf   : > { %v9303_v17 = vcombine.low %v3514_v26, %v3524_v56  ;;  %v3136_v20 = vor.u32 %v3134_v53, %v3133_v42  ;;  %v3547_v47 = vrot.slane %v3545_v33, 5  ;;  %v3148_v48 = vshrl.u32 %v3041_v37, 16  ;;  %v9323_v53 = vld [vmem:[#allocation4 + $0x58] sm:$0xff]   ;;  %v3044_v26 = vld [vmem:[#allocation4 + $0x68] sm:$0x8] }
 0x2d0   : > { %v3124_v49 = vsel %vm8809_vm2, %v3116_v50, %v3123_v51  ;;  %v3146_v39 = vsel %vm8809_vm2, %v3138_v29, %v3145_v24  ;;  %v3153_v50 = vshrl.u32 %v3042_v41, 16  ;;  %v3156_v51 = vshll.u32 %v3042_v41, 16  ;;  %v3045_v42 = vld [vmem:[#allocation4 + $0x6c] sm:$0xf] }
 0x2d1   : > { %7196 = vmatpush3.bf16.msra.mxu1 %v7989_v60  ;;  %v9294_v18 = vcombine.low %v3115_v15, %v3124_v49  ;;  %v3137_v60 = vsel %vm8809_vm2, %v6497_v4, %v3136_v20  ;;  %v3162_v52 = vshrl.u32 %v3043_v61, 16  ;;  %v3550_v38 = vshrl.u32 %v3456_v31, 16 }
 0x2d2   : > { %7197 = vmatprep.subr.bf16.mxu1 %v7991_v13  ;;  %v9311_v43 = vcombine.low %v3137_v60, %v3146_v39  ;;  %v3532_v13 = vor.u32 %v3531_v44, %v3528_v58  ;;  %v6498_v15 = vrot.slane %v3148_v48, 11  ;;  %v3155_v49 = vrot.slane %v3153_v50, 7  ;;  %v3461_v44 = vld [vmem:[#allocation4 + $0x60] sm:$0x1]  ;;  %v7998_v39 = vld [vmem:[#allocation11 + $0x1c0] sm:$0xff]  }
 0x2d3   : > { %4566 = vmatprep.mubr.bf16.mxu0 %v9294_v18  ;;  %v3164_v34 = vrot.slane %v3162_v52, 7  ;;  %v3553_v46 = vshll.u32 %v3456_v31, 16  ;;  %v3552_v1 = vrot.slane %v3550_v38, 4  ;;  %v3559_v2 = vshll.u32 %v3457_v27, 16  ;;  %7257 = vmatprep.subr.bf16.mxu0 %v7998_v39  ;;  %v7999_v50 = vld [vmem:[#allocation11 + $0x120] sm:$0xff]  }
 0x2d4   : > { %4470 = vmatmul.mubr.bf16.gmra.mrb[84].mxu1 %v9274_v11  ;;  %v3539_v11 = vshrl.u32 %v3454_v12, 16  ;;  %v3533_v57 = vrot.slane %v3532_v13, 4  ;;  %v3158_v3 = vor.u32 %v3156_v51, %v3155_v49  ;;  %v3160_v5 = vrot.slane %v3155_v49, 4 }
 0x2d5   : > { %4477 = vmatprep.mubr.bf16.mxu1 %v9286_v55  ;;  %7198 = vmatpush3.bf16.msra.mxu1 %v7992_v62  ;;  %v3458_v62 = vld [vmem:[#allocation4 + $0x4c] sm:$0x1]  ;;  %v3167_v7 = vor.u32 %v3165_v0, %v3164_v34  ;;  %v3555_v12 = vrot.slane %v3553_v46, 5  ;;  %v3561_v28 = vrot.slane %v3559_v2, 5  ;;  %v3563_v4 = vshrl.u32 %v3457_v27, 16 }
 0x2d6   : > { %v3541_v36 = vrot.slane %v3539_v11, 4  ;;  %7199 = vmatprep.subr.bf16.mxu1 %v7994_v6  ;;  %4567 = vmatmul.mubr.bf16.gmra.mrb[104].mxu0 %v9303_v17  ;;  %v3538_v63 = vsel %vm8827_vm5, %v3533_v57, %v3537_v40  ;;  %v3569_v45 = vshll.u32 %v3458_v62, 16  ;;  %v3159_v25 = vsel %vm8809_vm2, %v6498_v15, %v3158_v3  ;;  %v3459_v11 = vld [vmem:[#allocation4 + $0x58] sm:$0xf]  ;;  %v3460_v6 = vld [vmem:[#allocation4 + $0x5c] sm:$0xf] }
 0x2d7   : > { %4574 = vmatprep.mubr.bf16.mxu0 %v9311_v43  ;;  %v3168_v9 = vsel %vm8809_vm2, %v3160_v5, %v3167_v7  ;;  %v3556_v56 = vor.u32 %v3555_v12, %v3552_v1  ;;  %v3565_v58 = vrot.slane %v3563_v4, 4  ;;  %v3170_v20 = vshrl.u32 %v3044_v26, 16  ;;  %v8000_v15 = vld [vmem:[#allocation11 + $0x180] sm:$0xff]   ;;  %v8001_v3 = vld [vmem:[#allocation11 + $0x1c8] sm:$0xff]  }
 0x2d8   : > { %v3542_v19 = vor.u32 %v3541_v36, %v3537_v40  ;;  %v9329_v23 = vcombine.low %v3159_v25, %v3168_v9  ;;  %v3571_v10 = vrot.slane %v3569_v45, 5  ;;  %v3175_v29 = vshrl.u32 %v3045_v42, 16  ;;  %7258 = vmatpush3.bf16.msra.mxu0 %v8000_v15  ;;  %v8002_v5 = vld [vmem:[#allocation11 + $0x188] sm:$0xff]   ;;  %v3048_v45 = vld [vmem:[#allocation4 + $0x80] sm:$0xf] }
 0x2d9   : > { %7200 = vmatpush3.bf16.msra.mxu1 %v7995_v54  ;;  %v3178_v24 = vshll.u32 %v3045_v42, 16  ;;  %v3184_v54 = vshrl.u32 %v3046_v22, 16  ;;  %v3557_v40 = vrot.slane %v3556_v56, 4  ;;  %v3566_v36 = vor.u32 %v3565_v58, %v3561_v28  ;;  %7259 = vmatprep.subr.bf16.mxu0 %v8001_v3  ;;  %v3049_v25 = vld [vmem:[#allocation4 + $0x84] sm:$0xf]  ;;  %v8004_v26 = vld [vmem:[#allocation11 + $0x168] sm:$0xff]  }
 0x2da   : > { %v3543_v21 = vrot.slane %v3542_v19, 4  ;;  %7201 = vmatprep.subr.bf16.mxu1 %v7997_v32  ;;  %v3187_v33 = vshll.u32 %v3046_v22, 16  ;;  %v3574_v60 = vshrl.u32 %v3459_v11, 16  ;;  %v6499_v37 = vrot.slane %v3170_v20, 11  ;;  %v9348_v32 = vld [vmem:[#allocation4 + $0x6c] sm:$0xff]   ;;  %v8008_v15 = vld [vmem:[#allocation11 + $0x1d8] sm:$0xff]  }
 0x2db   : > { %v3177_v41 = vrot.slane %v3175_v29, 7  ;;  %v3186_v13 = vrot.slane %v3184_v54, 7  ;;  %v3577_v19 = vshll.u32 %v3459_v11, 16  ;;  %v3567_v61 = vrot.slane %v3566_v36, 4  ;;  %v3463_v20 = vld [vmem:[#allocation4 + $0x70] sm:$0xf] }
 0x2dc   : > { %4478 = vmatmul.mubr.bf16.gmra.mrb[88].mxu1 %v9294_v18  ;;  %v3548_v8 = vsel %vm8827_vm5, %v3543_v21, %v3547_v47  ;;  %v3562_v47 = vsel %vm8827_vm5, %v3557_v40, %v3561_v28  ;;  %v3576_v31 = vrot.slane %v3574_v60, 4  ;;  %v3583_v48 = vshll.u32 %v3460_v6, 16  ;;  %v3047_v28 = vld [vmem:[#allocation4 + $0x7c] sm:$0x8]  ;;  %7260 = vmatpush3.bf16.msra.mxu0 %v8002_v5  ;;  %v3464_v29 = vld [vmem:[#allocation4 + $0x74] sm:$0x1] }
 0x2dd   : > { %4485 = vmatprep.mubr.bf16.mxu1 %v9305_v14  ;;  %v9321_v30 = vcombine.low %v3538_v63, %v3548_v8  ;;  %v3180_v51 = vor.u32 %v3178_v24, %v3177_v41  ;;  %v3182_v52 = vrot.slane %v3177_v41, 4  ;;  %v3189_v27 = vor.u32 %v3187_v33, %v3186_v13  ;;  %7202 = vmatpush3.bf16.msra.mxu1 %v7999_v50  ;;  %v8005_v36 = vld [vmem:[#allocation11 + $0x1d0] sm:$0xff]   ;;  %v8006_v41 = vld [vmem:[#allocation11 + $0x128] sm:$0xff]  }
 0x2de   : > { %v3579_v57 = vrot.slane %v3577_v19, 5  ;;  %v3572_v21 = vsel %vm8827_vm5, %v3567_v61, %v3571_v10  ;;  %v3585_v0 = vrot.slane %v3583_v48, 5  ;;  %v3587_v62 = vshrl.u32 %v3460_v6, 16  ;;  %v3462_v10 = vld [vmem:[#allocation4 + $0x6c] sm:$0xf]  ;;  %7203 = vmatprep.subr.bf16.mxu1 %v8004_v26  ;;  %7261 = vmatprep.subr.bf16.mxu0 %v8005_v36 }
 0x2df   : > { %4575 = vmatmul.mubr.bf16.gmra.mrb[108].mxu0 %v9321_v30  ;;  %v3593_v38 = vshll.u32 %v3461_v44, 16  ;;  %v9339_v49 = vcombine.low %v3562_v47, %v3572_v21  ;;  %v3181_v34 = vsel %vm8809_vm2, %v6499_v37, %v3180_v51  ;;  %v3190_v46 = vsel %vm8809_vm2, %v3182_v52, %v3189_v27  ;;  %v3051_v3 = vld [vmem:[#allocation4 + $0x94] sm:$0xf] }
 0x2e0   : > { %4582 = vmatprep.mubr.bf16.mxu0 %v9329_v23  ;;  %v3580_v63 = vor.u32 %v3579_v57, %v3576_v31  ;;  %v9345_v8 = vcombine.low %v3181_v34, %v3190_v46  ;;  %v3589_v1 = vrot.slane %v3587_v62, 4  ;;  %v3192_v9 = vshrl.u32 %v3047_v28, 16 }
 0x2e1   : > { %v3595_v2 = vrot.slane %v3593_v38, 5  ;;  %v3197_v22 = vshrl.u32 %v3048_v45, 16  ;;  %v3200_v56 = vshll.u32 %v3048_v45, 16  ;;  %v3206_v58 = vshrl.u32 %v3049_v25, 16  ;;  %7204 = vmatpush3.bf16.msra.mxu1 %v8006_v41  ;;  %v8007_v38 = vld [vmem:[#allocation11 + $0x190] sm:$0xff]  }
 0x2e2   : > { %v3581_v7 = vrot.slane %v3580_v63, 4  ;;  %v3590_v12 = vor.u32 %v3589_v1, %v3585_v0  ;;  %v6500_v11 = vrot.slane %v3192_v9, 11  ;;  %v3209_v6 = vshll.u32 %v3049_v25, 16  ;;  %7262 = vmatpush3.bf16.msra.mxu0 %v8007_v38  ;;  %v8009_v63 = vld [vmem:[#allocation11 + $0x198] sm:$0xff]   ;;  %v8016_v38 = vld [vmem:[#allocation11 + $0x1a8] sm:$0xff]  }
 0x2e3   : > { %v3199_v54 = vrot.slane %v3197_v22, 7  ;;  %v3208_v44 = vrot.slane %v3206_v58, 7  ;;  %v3598_v40 = vshrl.u32 %v3462_v10, 16  ;;  %v3601_v60 = vshll.u32 %v3462_v10, 16  ;;  %v9368_v1 = vld [vmem:[#allocation4 + $0x80] sm:$0xff]   ;;  %7263 = vmatprep.subr.bf16.mxu0 %v8008_v15 }
 0x2e4   : > { %4486 = vmatmul.mubr.bf16.gmra.mrb[92].mxu1 %v9311_v43  ;;  %v3586_v4 = vsel %vm8827_vm5, %v3581_v7, %v3585_v0  ;;  %v3591_v42 = vrot.slane %v3590_v12, 4  ;;  %v3607_v39 = vshll.u32 %v3463_v20, 16  ;;  %v3611_v37 = vshrl.u32 %v3463_v20, 16  ;;  %v3052_v12 = vld [vmem:[#allocation4 + $0x98] sm:$0xf] }
 0x2e5   : > { %4493 = vmatprep.mubr.bf16.mxu1 %v9323_v53  ;;  %v3202_v13 = vor.u32 %v3200_v56, %v3199_v54  ;;  %v3204_v19 = vrot.slane %v3199_v54, 4  ;;  %v3211_v47 = vor.u32 %v3209_v6, %v3208_v44  ;;  %v3600_v61 = vrot.slane %v3598_v40, 4  ;;  %v3465_v45 = vld [vmem:[#allocation4 + $0x80] sm:$0xf]  ;;  %v3466_v22 = vld [vmem:[#allocation4 + $0x84] sm:$0xf] }
 0x2e6   : > { %v3596_v24 = vsel %vm8827_vm5, %v3591_v42, %v3595_v2  ;;  %v3603_v31 = vrot.slane %v3601_v60, 5  ;;  %v3609_v48 = vrot.slane %v3607_v39, 5  ;;  %v3613_v50 = vrot.slane %v3611_v37, 4  ;;  %v3050_v2 = vld [vmem:[#allocation4 + $0x90] sm:$0x8]  ;;  %v8011_v56 = vld [vmem:[#allocation11 + $0x170] sm:$0xff]   ;;  %7264 = vmatpush3.bf16.msra.mxu0 %v8009_v63 }
 0x2e7   : > { %4583 = vmatmul.mubr.bf16.gmra.mrb[112].mxu0 %v9339_v49  ;;  %v9357_v33 = vcombine.low %v3586_v4, %v3596_v24  ;;  %v3617_v51 = vshll.u32 %v3464_v29, 16  ;;  %v3203_v52 = vsel %vm8809_vm2, %v6500_v11, %v3202_v13  ;;  %v3212_v27 = vsel %vm8809_vm2, %v3204_v19, %v3211_v47  ;;  %v3467_v11 = vld [vmem:[#allocation4 + $0x88] sm:$0x1]  ;;  %7205 = vmatprep.subr.bf16.mxu1 %v8011_v56  ;;  %v8013_v47 = vld [vmem:[#allocation11 + $0x130] sm:$0xff]   ;;  %v3053_v63 = vld [vmem:[#allocation4 + $0xa4] sm:$0x8] }
 0x2e8   : > { %4590 = vmatprep.mubr.bf16.mxu0 %v9345_v8  ;;  %v9365_v57 = vcombine.low %v3203_v52, %v3212_v27  ;;  %v3604_v21 = vor.u32 %v3603_v31, %v3600_v61  ;;  %v3614_v0 = vor.u32 %v3613_v50, %v3609_v48  ;;  %v3214_v28 = vshrl.u32 %v3050_v2, 16  ;;  %v8012_v37 = vld [vmem:[#allocation11 + $0x1e0] sm:$0xff]   ;;  %7206 = vmatpush3.bf16.msra.mxu1 %v8013_v47 }
 0x2e9   : > { %v3619_v62 = vrot.slane %v3617_v51, 5  ;;  %v3219_v4 = vshrl.u32 %v3051_v3, 16  ;;  %v3222_v9 = vshll.u32 %v3051_v3, 16  ;;  %v3228_v26 = vshrl.u32 %v3052_v12, 16  ;;  %7265 = vmatprep.subr.bf16.mxu0 %v8012_v37  ;;  %v8014_v52 = vld [vmem:[#allocation11 + $0x1a0] sm:$0xff]  }
 0x2ea   : > { %v3605_v34 = vrot.slane %v3604_v21, 4  ;;  %v3615_v46 = vrot.slane %v3614_v0, 4  ;;  %v3231_v42 = vshll.u32 %v3052_v12, 16  ;;  %v6501_v58 = vrot.slane %v3214_v28, 11  ;;  %v8015_v0 = vld [vmem:[#allocation11 + $0x1e8] sm:$0xff]   ;;  %7266 = vmatpush3.bf16.msra.mxu0 %v8014_v52  ;;  %v8022_v52 = vld [vmem:[#allocation11 + $0x1f8] sm:$0xff]  }
 0x2eb   : > { %v3221_v10 = vrot.slane %v3219_v4, 7  ;;  %v3622_v6 = vshrl.u32 %v3465_v45, 16  ;;  %v3625_v20 = vshll.u32 %v3465_v45, 16  ;;  %v3230_v29 = vrot.slane %v3228_v26, 7  ;;  %7267 = vmatprep.subr.bf16.mxu0 %v8015_v0  ;;  %v3054_v2 = vld [vmem:[#allocation4 + $0xa8] sm:$0xf] }
 0x2ec   : > { %4494 = vmatmul.mubr.bf16.gmra.mrb[96].mxu1 %v9329_v23  ;;  %v3610_v5 = vsel %vm8827_vm5, %v3605_v34, %v3609_v48  ;;  %v3620_v7 = vsel %vm8827_vm5, %v3615_v46, %v3619_v62  ;;  %v3631_v24 = vshll.u32 %v3466_v22, 16  ;;  %v3635_v54 = vshrl.u32 %v3466_v22, 16  ;;  %v9388_v34 = vld [vmem:[#allocation4 + $0x94] sm:$0xff]   ;;  %v3055_v3 = vld [vmem:[#allocation4 + $0xac] sm:$0xf]  ;;  %v8018_v45 = vld [vmem:[#allocation11 + $0x178] sm:$0xff]  }
 0x2ed   : > { %4501 = vmatprep.mubr.bf16.mxu1 %v9348_v32  ;;  %v9375_v25 = vcombine.low %v3610_v5, %v3620_v7  ;;  %v3641_v44 = vshll.u32 %v3467_v11, 16  ;;  %v3224_v40 = vor.u32 %v3222_v9, %v3221_v10  ;;  %v3226_v36 = vrot.slane %v3221_v10, 4  ;;  %v3468_v4 = vld [vmem:[#allocation4 + $0x94] sm:$0xf]  ;;  %v3470_v22 = vld [vmem:[#allocation4 + $0x9c] sm:$0x1]  ;;  %7207 = vmatprep.subr.bf16.mxu1 %v8018_v45 }
 0x2ee   : > { %v3624_v60 = vrot.slane %v3622_v6, 4  ;;  %v3627_v39 = vrot.slane %v3625_v20, 5  ;;  %v3233_v41 = vor.u32 %v3231_v42, %v3230_v29  ;;  %v3633_v13 = vrot.slane %v3631_v24, 5  ;;  %7268 = vmatpush3.bf16.msra.mxu0 %v8016_v38  ;;  %v3469_v42 = vld [vmem:[#allocation4 + $0x98] sm:$0xf]  ;;  %v8023_v0 = vld [vmem:[#allocation11 + $0x1b8] sm:$0xff]  }
 0x2ef   : > { %4591 = vmatmul.mubr.bf16.gmra.mrb[116].mxu0 %v9357_v33  ;;  %v3637_v19 = vrot.slane %v3635_v54, 4  ;;  %v3225_v61 = vsel %vm8809_vm2, %v6501_v58, %v3224_v40  ;;  %v3643_v51 = vrot.slane %v3641_v44, 5  ;;  %v3276_v7 = vshrl.u32 %v3053_v63, 16  ;;  %v8024_v38 = vld [vmem:[#allocation11 + $0x200] sm:$0xff]   ;;  %v8034_v45 = vld [vmem:[#allocation12 + $0xd0] sm:$0xff]  }
 0x2f0   : > { %4598 = vmatprep.mubr.bf16.mxu0 %v9365_v57  ;;  %v3628_v31 = vor.u32 %v3627_v39, %v3624_v60  ;;  %v3234_v48 = vsel %vm8809_vm2, %v3226_v36, %v3233_v41  ;;  %v3281_v12 = vshrl.u32 %v3054_v2, 16  ;;  %v3284_v28 = vshll.u32 %v3054_v2, 16  ;;  %v8019_v60 = vld [vmem:[#allocation11 + $0x1f0] sm:$0xff]  }
 0x2f1   : > { %v3638_v50 = vor.u32 %v3637_v19, %v3633_v13  ;;  %v9383_v27 = vcombine.low %v3225_v61, %v3234_v48  ;;  %v3290_v9 = vshrl.u32 %v3055_v3, 16  ;;  %v3293_v26 = vshll.u32 %v3055_v3, 16  ;;  %7269 = vmatprep.subr.bf16.mxu0 %v8019_v60  ;;  %v8026_v2 = vld [vmem:[#allocation11 + $0x210] sm:$0xff]   ;;  %v8029_v3 = vld [vmem:[#allocation12 + $0xc0] sm:$0xff]  }
 0x2f2   : > { %v3629_v21 = vrot.slane %v3628_v31, 4  ;;  %v6510_v56 = vrot.slane %v3276_v7, 11  ;;  %v3283_v58 = vrot.slane %v3281_v12, 7  ;;  %v3646_v10 = vshrl.u32 %v3468_v4, 16  ;;  %v8027_v7 = vld [vmem:[#allocation11 + $0x218] sm:$0xff]   ;;  %v8031_v12 = vld [vmem:[#allocation12 + $0xc8] sm:$0xff]  }
 0x2f3   : > { %v3639_v62 = vrot.slane %v3638_v50, 4  ;;  %v3649_v11 = vshll.u32 %v3468_v4, 16  ;;  %v3292_v6 = vrot.slane %v3290_v9, 7  ;;  %v3655_v20 = vshll.u32 %v3469_v42, 16  ;;  %v8032_v4 = vld [vmem:[#allocation12 + $0x88] sm:$0xff]   ;;  %v8050_v60 = vld [vmem:[#allocation12 + $0x40] sm:$0xff]  }
 0x2f4   : > { %4502 = vmatmul.mubr.bf16.gmra.mrb[100].mxu1 %v9345_v8  ;;  %v3634_v15 = vsel %vm8827_vm5, %v3629_v21, %v3633_v13  ;;  %v3659_v29 = vshrl.u32 %v3469_v42, 16  ;;  %v3665_v24 = vshll.u32 %v3470_v22, 16  ;;  %v3286_v54 = vor.u32 %v3284_v28, %v3283_v58  ;;  %v8020_v13 = vld [vmem:[#allocation11 + $0x138] sm:$0xff]   ;;  %v8028_v28 = vld [vmem:[#allocation11 + $0x220] sm:$0xff]   ;;  %v8033_v9 = vld [vmem:[#allocation11 + $0x228] sm:$0xff]  }
 0x2f5   : > { %4509 = vmatprep.mubr.bf16.mxu1 %v9368_v1  ;;  %v3644_v46 = vsel %vm8827_vm5, %v3639_v62, %v3643_v51  ;;  %v3288_v44 = vrot.slane %v3283_v58, 4  ;;  %v3648_v40 = vrot.slane %v3646_v10, 4  ;;  %v3651_v36 = vrot.slane %v3649_v11, 5  ;;  %7208 = vmatpush3.bf16.msra.mxu1 %v8020_v13  ;;  %v8037_v42 = vld [vmem:[#allocation12 + $0x98] sm:$0xff]   ;;  %v8040_v22 = vld [vmem:[#allocation12 + $0xe0] sm:$0xff]  }
 0x2f6   : > { %v9392_v5 = vcombine.low %v3634_v15, %v3644_v46  ;;  %v3295_v39 = vor.u32 %v3293_v26, %v3292_v6  ;;  %v3657_v37 = vrot.slane %v3655_v20, 5  ;;  %v3661_v41 = vrot.slane %v3659_v29, 4  ;;  %v8025_v46 = vld [vmem:[#allocation11 + $0x208] sm:$0xff]   ;;  %7645 = vmatprep.subr.bf16.mxu1 %v8024_v38  ;;  %v8036_v26 = vld [vmem:[#allocation12 + $0xd8] sm:$0xff]   ;;  %v8041_v58 = vld [vmem:[#allocation12 + $0xa0] sm:$0xff]  }
 0x2f7   : > { %4599 = vmatmul.mubr.bf16.gmra.mrb[120].mxu0 %v9375_v25  ;;  %v3287_v19 = vsel %vm8809_vm2, %v6510_v56, %v3286_v54  ;;  %v3652_v47 = vor.u32 %v3651_v36, %v3648_v40  ;;  %v3667_v48 = vrot.slane %v3665_v24, 5  ;;  %v3471_v56 = vld [vmem:[#allocation4 + $0xa8] sm:$0xf]  ;;  %v8045_v10 = vld [vmem:[#allocation11 + $0x238] sm:$0xff]   ;;  %v8043_v24 = vld [vmem:[#allocation12 + $0xa8] sm:$0xff]  }
 0x2f8   : > { %4606 = vmatprep.mubr.bf16.mxu0 %v9383_v27  ;;  %v3296_v61 = vsel %vm8809_vm2, %v3288_v44, %v3295_v39  ;;  %v3662_v31 = vor.u32 %v3661_v41, %v3657_v37  ;;  %v3710_v11 = vshrl.u32 %v3471_v56, 16  ;;  %v3713_v6 = vshll.u32 %v3471_v56, 16  ;;  %v8046_v54 = vld [vmem:[#allocation12 + $0xf0] sm:$0xff]   ;;  %v3473_v39 = vld [vmem:[#allocation4 + $0xb0] sm:$0x1] }
 0x2f9   : > { %v9402_v50 = vcombine.low %v3287_v19, %v3296_v61  ;;  %v3653_v51 = vrot.slane %v3652_v47, 4  ;;  %v3729_v19 = vshll.u32 %v3473_v39, 16  ;;  %v8049_v47 = vld [vmem:[#allocation12 + $0xb8] sm:$0xff]   ;;  %v4963_v56 = vld [vmem:[#allocation3 + $0x60] sm:$0xff]  ;;  %v8059_v39 = vld [vmem:[#allocation12 + $0x20] sm:$0xff]  }
 0x2fa   : > { %v3663_v21 = vrot.slane %v3662_v31, 4  ;;  %v3715_v44 = vrot.slane %v3713_v6, 5 }
 0x2fb   : > { %v3658_v62 = vsel %vm8827_vm5, %v3653_v51, %v3657_v37  ;;  %v8047_v37 = vld [vmem:[#allocation12 + $0xb0] sm:$0xff]   ;;  %v3058_v51 = vld [vmem:[#allocation4 + $0xc0] sm:$0xf] }
 0x2fc   : > { %4510 = vmatmul.mubr.bf16.gmra.mrb[104].mxu1 %v9365_v57  ;;  %v3668_v15 = vsel %vm8827_vm5, %v3663_v21, %v3667_v48  ;;  %v8038_v21 = vld [vmem:[#allocation4 + $0xa8] sm:$0xff]  }
 0x2fd   : > { %4517 = vmatprep.mubr.bf16.mxu1 %v9388_v34  ;;  %v9410_v63 = vcombine.low %v3658_v62, %v3668_v15  ;;  %v3324_v62 = vshrl.u32 %v3058_v51, 16 }
 0x2ff   : > { %4607 = vmatmul.mubr.bf16.gmra.mrb[124].mxu0 %v9392_v5 }
 0x300   : > { %4614 = vmatprep.mubr.bf16.mxu0 %v9402_v50 }
 0x304   : > { %4518 = vmatmul.mubr.bf16.gmra.mrb[108].mxu1 %v9383_v27 }
 0x305   : > { %4655 = vmatprep.mubr.bf16.mxu1 %v9303_v17  ;;  %v8021_v17 = vld [vmem:[#allocation11 + $0x1b0] sm:$0xff]  }
 0x306   : > { %7270 = vmatpush3.bf16.msra.mxu0 %v8021_v17 }
 0x307   : > { %7271 = vmatprep.subr.bf16.mxu0 %v8022_v52  ;;  %4615 = vmatmul.mubr.bf16.gmra.mrb[128].mxu0 %v9410_v63 }
 0x308   : > { %4752 = vmatprep.mubr.bf16.mxu0 %v9286_v55 }
 0x30a   : > { %7272 = vmatpush3.bf16.msra.mxu0 %v8023_v0  ;;  %v3056_v0 = vld [vmem:[#allocation4 + $0xb8] sm:$0x8] }
 0x30b   : > { %7401 = vmatprep.subr.bf16.mxu0 %v8029_v3  ;;  %v8067_v3 = vld [vmem:[#allocation12 + $0x1c0] sm:$0xff]  }
 0x30c   : > { %4656 = vmatmul.mubr.bf16.vlgmr.msra.gmra.mrb[112].mxu1 %v9278_v35  ;;  %v8030_v35 = vld [vmem:[#allocation12 + $0x80] sm:$0xff]  }
 0x30d   : > { %4663 = vmatprep.mubr.bf16.mxu1 %v9321_v30  ;;  %7646 = vmatpush3.bf16.msra.mxu1 %v8024_v38  ;;  %v3310_v38 = vshrl.u32 %v3056_v0, 16  ;;  %v4961_v0 = vld [vmem:[#allocation3 + $0x50] sm:$0xff] }
 0x30e   : > { %7647 = vmatprep.subr.bf16.mxu1 %v8025_v46 }
 0x30f   : > { %4753 = vmatmul.mubr.bf16.vlgmr.msra.gmra.mrb[132].mxu0 %v9294_v18  ;;  %v8039_v18 = vld [vmem:[#allocation11 + $0x230] sm:$0xff]  }
 0x310   : > { %4760 = vmatprep.mubr.bf16.mxu0 %v9305_v14  ;;  %7402 = vmatpush3.bf16.msra.mxu0 %v8030_v35  ;;  %v6512_v35 = vrot.slane %v3310_v38, 11  ;;  %v4990_v38 = vld [vmem:[#allocation3 + $0x138] sm:$0xff] }
 0x311   : > { %7648 = vmatpush3.bf16.msra.mxu1 %v8025_v46  ;;  %7403 = vmatprep.subr.bf16.mxu0 %v8031_v12  ;;  %v3327_v46 = vshll.u32 %v3058_v51, 16 }
 0x312   : > { %7649 = vmatprep.subr.bf16.mxu1 %v8026_v2 }
 0x314   : > { %4664 = vmatmul.mubr.bf16.gmra.mrb[116].mxu1 %v9286_v55  ;;  %7404 = vmatpush3.bf16.msra.mxu0 %v8032_v4  ;;  %v8035_v55 = vld [vmem:[#allocation12 + $0x90] sm:$0xff]  }
 0x315   : > { %4671 = vmatprep.mubr.bf16.mxu1 %v9339_v49  ;;  %7650 = vmatpush3.bf16.msra.mxu1 %v8026_v2  ;;  %v3326_v2 = vrot.slane %v3324_v62, 7  ;;  %v4980_v62 = vld [vmem:[#allocation3 + $0xe8] sm:$0xff] }
 0x316   : > { %7651 = vmatprep.subr.bf16.mxu1 %v8027_v7  ;;  %7405 = vmatprep.subr.bf16.mxu0 %v8034_v45 }
 0x317   : > { %4761 = vmatmul.mubr.bf16.gmra.mrb[136].mxu0 %v9311_v43  ;;  %v8042_v43 = vld [vmem:[#allocation12 + $0xe8] sm:$0xff]   ;;  %v3329_v4 = vor.u32 %v3327_v46, %v3326_v2  ;;  %v4960_v2 = vld [vmem:[#allocation3 + $0x48] sm:$0xff] }
 0x318   : > { %4768 = vmatprep.mubr.bf16.mxu0 %v9323_v53  ;;  %7406 = vmatpush3.bf16.msra.mxu0 %v8035_v55  ;;  %v3474_v55 = vld [vmem:[#allocation4 + $0xbc] sm:$0xf]  ;;  %v8082_v46 = vld [vmem:[#allocation12 + $0x1e8] sm:$0xff]  }
 0x319   : > { %7652 = vmatpush3.bf16.msra.mxu1 %v8027_v7  ;;  %7407 = vmatprep.subr.bf16.mxu0 %v8036_v26  ;;  %v8044_v7 = vld [vmem:[#allocation4 + $0xbc] sm:$0xff]  }
 0x31a   : > { %7653 = vmatprep.subr.bf16.mxu1 %v8028_v28  ;;  %v3475_v26 = vld [vmem:[#allocation4 + $0xc0] sm:$0xf] }
 0x31c   : > { %4672 = vmatmul.mubr.bf16.gmra.mrb[120].mxu1 %v9305_v14  ;;  %v3472_v14 = vld [vmem:[#allocation4 + $0xac] sm:$0xf]  ;;  %7408 = vmatpush3.bf16.msra.mxu0 %v8037_v42  ;;  %v3746_v42 = vshrl.u32 %v3474_v55, 16 }
 0x31d   : > { %4679 = vmatprep.mubr.bf16.mxu1 %v9357_v33  ;;  %7654 = vmatpush3.bf16.msra.mxu1 %v8028_v28  ;;  %v3719_v20 = vshll.u32 %v3472_v14, 16  ;;  %v3723_v29 = vshrl.u32 %v3472_v14, 16  ;;  %v3759_v14 = vshrl.u32 %v3475_v26, 16 }
 0x31e   : > { %7655 = vmatprep.subr.bf16.mxu1 %v8033_v9  ;;  %7409 = vmatprep.subr.bf16.mxu0 %v8040_v22  ;;  %v3749_v22 = vshll.u32 %v3474_v55, 16  ;;  %v8078_v55 = vld [vmem:[#allocation12 + $0x150] sm:$0xff]  }
 0x31f   : > { %4769 = vmatmul.mubr.bf16.gmra.mrb[140].mxu0 %v9329_v23  ;;  %v3721_v40 = vrot.slane %v3719_v20, 5  ;;  %v3725_v36 = vrot.slane %v3723_v29, 4  ;;  %v8048_v23 = vld [vmem:[#allocation12 + $0xf8] sm:$0xff]   ;;  %v4962_v29 = vld [vmem:[#allocation3 + $0x58] sm:$0xff] }
 0x320   : > { %4776 = vmatprep.mubr.bf16.mxu0 %v9348_v32  ;;  %7410 = vmatpush3.bf16.msra.mxu0 %v8041_v58  ;;  %v8054_v58 = vld [vmem:[#allocation12 + $0x50] sm:$0xff]   ;;  %v8056_v20 = vld [vmem:[#allocation12 + $0x58] sm:$0xff]  }
 0x321   : > { %7656 = vmatpush3.bf16.msra.mxu1 %v8033_v9  ;;  %7411 = vmatprep.subr.bf16.mxu0 %v8042_v43  ;;  %v3726_v13 = vor.u32 %v3725_v36, %v3721_v40  ;;  %v8052_v9 = vld [vmem:[#allocation12 + $0x48] sm:$0xff]   ;;  %v3748_v43 = vrot.slane %v3746_v42, 4  ;;  %v8089_v42 = vld [vmem:[#allocation12 + $0x1b8] sm:$0xff]  }
 0x322   : > { %7657 = vmatprep.subr.bf16.mxu1 %v8039_v18  ;;  %v8070_v36 = vld [vmem:[#allocation12 + $0x1c8] sm:$0xff]  }
 0x323   : > { %v3727_v31 = vrot.slane %v3726_v13, 4 }
 0x324   : > { %4680 = vmatmul.mubr.bf16.gmra.mrb[124].mxu1 %v9323_v53  ;;  %v3712_v53 = vrot.slane %v3710_v11, 4  ;;  %7412 = vmatpush3.bf16.msra.mxu0 %v8043_v24  ;;  %v3751_v11 = vrot.slane %v3749_v22, 5  ;;  %v4972_v24 = vld [vmem:[#allocation3 + $0xa8] sm:$0xff] }
 0x325   : > { %4687 = vmatprep.mubr.bf16.mxu1 %v9375_v25  ;;  %7658 = vmatpush3.bf16.msra.mxu1 %v8039_v18  ;;  %v8080_v22 = vld [vmem:[#allocation12 + $0x110] sm:$0xff]  }
 0x326   : > { %7659 = vmatprep.subr.bf16.mxu1 %v8045_v10  ;;  %7413 = vmatprep.subr.bf16.mxu0 %v8046_v54  ;;  %v3716_v41 = vor.u32 %v3715_v44, %v3712_v53  ;;  %v8069_v54 = vld [vmem:[#allocation12 + $0x180] sm:$0xff]   ;;  %v3752_v44 = vor.u32 %v3751_v11, %v3748_v43  ;;  %v4988_v11 = vld [vmem:[#allocation3 + $0x128] sm:$0xff] }
 0x327   : > { %4777 = vmatmul.mubr.bf16.gmra.mrb[144].mxu0 %v9345_v8  ;;  %v3057_v8 = vld [vmem:[#allocation4 + $0xbc] sm:$0xf]  ;;  %v8091_v43 = vld [vmem:[#allocation12 + $0x120] sm:$0xff]  }
 0x328   : > { %4784 = vmatprep.mubr.bf16.mxu0 %v9368_v1  ;;  %7414 = vmatpush3.bf16.msra.mxu0 %v8047_v37  ;;  %v3717_v61 = vrot.slane %v3716_v41, 4  ;;  %v3318_v15 = vshll.u32 %v3057_v8, 16  ;;  %v8060_v37 = vld [vmem:[#allocation12 + $0x68] sm:$0xff]  }
 0x329   : > { %7660 = vmatpush3.bf16.msra.mxu1 %v8045_v10  ;;  %7415 = vmatprep.subr.bf16.mxu0 %v8048_v23  ;;  %v3476_v10 = vld [vmem:[#allocation4 + $0xc4] sm:$0x1]  ;;  %v8071_v41 = vld [vmem:[#allocation12 + $0x188] sm:$0xff]  }
 0x32a   : > { %7337 = vmatprep.subr.bf16.mxu1 %v8050_v60  ;;  %v3722_v48 = vsel %vm8827_vm5, %v3717_v61, %v3721_v40  ;;  %v3765_v53 = vshll.u32 %v3476_v10, 16  ;;  %v8058_v60 = vld [vmem:[#allocation12 + $0x60] sm:$0xff]   ;;  %v8075_v61 = vld [vmem:[#allocation12 + $0x190] sm:$0xff]  }
 0x32b   : > { %v4978_v10 = vld [vmem:[#allocation3 + $0xd8] sm:$0xff] }
 0x32c   : > { %4688 = vmatmul.mubr.bf16.gmra.mrb[128].mxu1 %v9348_v32  ;;  %v3731_v32 = vrot.slane %v3729_v19, 5  ;;  %7416 = vmatpush3.bf16.msra.mxu0 %v8049_v47  ;;  %v3767_v23 = vrot.slane %v3765_v53, 5  ;;  %v8073_v19 = vld [vmem:[#allocation12 + $0x1d0] sm:$0xff]   ;;  %v4971_v47 = vld [vmem:[#allocation3 + $0xa0] sm:$0xff] }
 0x32d   : > { %4695 = vmatprep.mubr.bf16.mxu1 %v9392_v5  ;;  %7529 = vmatprep.subr.bf16.mxu0 %v8067_v3  ;;  %v8083_v3 = vld [vmem:[#allocation12 + $0x1a8] sm:$0xff]   ;;  %v8095_v53 = vld [vmem:[#allocation12 + $0x130] sm:$0xff]  }
 0x32e   : > { %v3732_v17 = vsel %vm8827_vm5, %v3727_v31, %v3731_v32  ;;  %v8061_v31 = vld [vmem:[#allocation12 + $0x28] sm:$0xff]  }
 0x32f   : > { %4785 = vmatmul.mubr.bf16.gmra.mrb[148].mxu0 %v9365_v57  ;;  %v9439_v52 = vcombine.low %v3722_v48, %v3732_v17  ;;  %v8076_v17 = vld [vmem:[#allocation12 + $0x1d8] sm:$0xff]  }
 0x330   : > { %4792 = vmatprep.mubr.bf16.mxu0 %v9388_v34 }
 0x334   : > { %4696 = vmatmul.mubr.bf16.gmra.mrb[132].mxu1 %v9368_v1  ;;  %v3315_v1 = vshrl.u32 %v3057_v8, 16  ;;  %v8062_v8 = vld [vmem:[#allocation12 + $0x70] sm:$0xff]  }
 0x335   : > { %4703 = vmatprep.mubr.bf16.mxu1 %v9410_v63 }
 0x336   : > { %v3317_v57 = vrot.slane %v3315_v1, 7  ;;  %v8079_v1 = vld [vmem:[#allocation12 + $0x1e0] sm:$0xff]  }
 0x337   : > { %4793 = vmatmul.mubr.bf16.gmra.mrb[152].mxu0 %v9383_v27 }
 0x338   : > { %4800 = vmatprep.mubr.bf16.mxu0 %v8038_v21  ;;  %v3320_v12 = vor.u32 %v3318_v15, %v3317_v57  ;;  %v3322_v28 = vrot.slane %v3317_v57, 4  ;;  %v8065_v15 = vld [vmem:[#allocation12 + $0x38] sm:$0xff]   ;;  %v8066_v57 = vld [vmem:[#allocation12 + $0x140] sm:$0xff]  }
 0x33a   : > { %v3321_v27 = vsel %vm8809_vm2, %v6512_v35, %v3320_v12  ;;  %v3330_v45 = vsel %vm8809_vm2, %v3322_v28, %v3329_v4  ;;  %v4970_v35 = vld [vmem:[#allocation3 + $0x98] sm:$0xff]  ;;  %v8072_v12 = vld [vmem:[#allocation12 + $0x148] sm:$0xff]   ;;  %v8085_v28 = vld [vmem:[#allocation12 + $0x1f0] sm:$0xff]  }
 0x33b   : > { %v6513_v18 = vcombine.low %v3321_v27, %v3330_v45  ;;  %v4989_v4 = vld [vmem:[#allocation3 + $0x130] sm:$0xff]  ;;  %v8074_v27 = vld [vmem:[#allocation12 + $0x108] sm:$0xff]   ;;  %v8087_v45 = vld [vmem:[#allocation12 + $0x1b0] sm:$0xff]  }
 0x33c   : > { %4704 = vmatmul.mubr.bf16.gmra.mrb[136].mxu1 %v9388_v34  ;;  %v8051_v34 = vld [vmem:[#allocation12] sm:$0xff]  }
 0x33d   : > { %4711 = vmatprep.mubr.bf16.mxu1 %v9439_v52 }
 0x33f   : > { %4801 = vmatmul.mubr.bf16.gmra.mrb[156].mxu0 %v9402_v50  ;;  %v3755_v50 = vshll.u32 %v3475_v26, 16  ;;  %v4969_v26 = vld [vmem:[#allocation3 + $0x90] sm:$0xff] }
 0x340   : > { %4808 = vmatprep.mubr.bf16.mxu0 %v8044_v7  ;;  %v8068_v7 = vld [vmem:[#allocation12 + $0x100] sm:$0xff]  }
 0x341   : > { %v3757_v6 = vrot.slane %v3755_v50, 5  ;;  %v4998_v50 = vld [vmem:[#allocation3 + $0x178] sm:$0xff] }
 0x344   : > { %4712 = vmatmul.mubr.bf16.gmra.mrb[140].mxu1 %v8038_v21  ;;  %v8063_v21 = vld [vmem:[#allocation12 + $0x30] sm:$0xff]  }
 0x345   : > { %7661 = vmatprep.mubr.bf16.mxu1 %v9321_v30  ;;  %v8053_v30 = vld [vmem:[#allocation12 + $0x8] sm:$0xff]  }
 0x347   : > { %4809 = vmatmul.mubr.bf16.gmra.mrb[160].mxu0 %v6513_v18  ;;  %v4979_v18 = vld [vmem:[#allocation3 + $0xe0] sm:$0xff] }
 0x348   : > { %5737 = vmatprep.mubr.bf16.mxu0 %v4963_v56  ;;  %v8084_v56 = vld [vmem:[#allocation12 + $0x158] sm:$0xff]  }
 0x34c   : > { %7662 = vmatmul.mubr.bf16.vlgmr.msra.gmra.mrb[144].mxu1 %v9339_v49  ;;  %v3761_v49 = vrot.slane %v3759_v14, 4  ;;  %v5008_v14 = vld [vmem:[#allocation3 + $0x1c8] sm:$0xff] }
 0x34d   : > { %7338 = vmatpush3.bf16.msra.mxu1 %v8051_v34  ;;  %7665 = vmatprep.mubr.bf16.mxu1 %v9357_v33  ;;  %v8057_v33 = vld [vmem:[#allocation12 + $0x18] sm:$0xff]   ;;  %v4999_v34 = vld [vmem:[#allocation3 + $0x180] sm:$0xff] }
 0x34e   : > { %7339 = vmatprep.subr.bf16.mxu1 %v8052_v9  ;;  %v3762_v40 = vor.u32 %v3761_v49, %v3757_v6  ;;  %v8088_v9 = vld [vmem:[#allocation12 + $0x1f8] sm:$0xff]   ;;  %v5007_v49 = vld [vmem:[#allocation3 + $0x1c0] sm:$0xff] }
 0x34f   : > { %5738 = vmatmul.mubr.bf16.vlgmr.msra.gmra.mrb[164].mxu0 %v4962_v29  ;;  %v8093_v29 = vld [vmem:[#allocation12 + $0x128] sm:$0xff]  }
 0x350   : > { %5745 = vmatprep.mubr.bf16.mxu0 %v4972_v24  ;;  %7530 = vmatpush3.bf16.msra.mxu0 %v8069_v54  ;;  %v3763_v13 = vrot.slane %v3762_v40, 4  ;;  %v8094_v24 = vld [vmem:[#allocation12 + $0x170] sm:$0xff]   ;;  %v4997_v54 = vld [vmem:[#allocation3 + $0x170] sm:$0xff] }
 0x351   : > { %7340 = vmatpush3.bf16.msra.mxu1 %v8053_v30  ;;  %7531 = vmatprep.subr.bf16.mxu0 %v8070_v36  ;;  %v9460_v30 = vld [vmem:[#allocation12 + $0x200] sm:$0xff]   ;;  %v5016_v40 = vld [vmem:[#allocation3 + $0x208] sm:$0xff] }
 0x352   : > { %7341 = vmatprep.subr.bf16.mxu1 %v8054_v58  ;;  %v3768_v48 = vsel %vm8827_vm5, %v3763_v13, %v3767_v23  ;;  %v8086_v58 = vld [vmem:[#allocation12 + $0x118] sm:$0xff]   ;;  %v5026_v36 = vld [vmem:[#allocation3 + $0x258] sm:$0xff]  ;;  %v5015_v13 = vld [vmem:[#allocation3 + $0x200] sm:$0xff] }
 0x353   : > { %v5025_v23 = vld [vmem:[#allocation3 + $0x250] sm:$0xff] }
 0x354   : > { %7666 = vmatmul.mubr.bf16.gmra.mrb[148].mxu1 %v9375_v25  ;;  %v3753_v25 = vrot.slane %v3752_v44, 4  ;;  %7532 = vmatpush3.bf16.msra.mxu0 %v8071_v41  ;;  %v8096_v44 = vld [vmem:[#allocation12 + $0x178] sm:$0xff]   ;;  %v4967_v41 = vld [vmem:[#allocation3 + $0x80] sm:$0xff] }
 0x355   : > { %7342 = vmatpush3.bf16.msra.mxu1 %v8055_v16  ;;  %7669 = vmatprep.mubr.bf16.mxu1 %v9392_v5  ;;  %v4981_v5 = vld [vmem:[#allocation3 + $0xf0] sm:$0xff]  ;;  %v8090_v16 = vld [vmem:[#allocation12 + $0x160] sm:$0xff]  }
 0x356   : > { %7343 = vmatprep.subr.bf16.mxu1 %v8056_v20  ;;  %v3758_v32 = vsel %vm8827_vm5, %v3753_v25, %v3757_v6  ;;  %7533 = vmatprep.subr.bf16.mxu0 %v8073_v19  ;;  %v8092_v6 = vld [vmem:[#allocation12 + $0x168] sm:$0xff]   ;;  %v5017_v20 = vld [vmem:[#allocation3 + $0x210] sm:$0xff]  ;;  %v4966_v19 = vld [vmem:[#allocation3 + $0x78] sm:$0xff] }
 0x357   : > { %5746 = vmatmul.mubr.bf16.gmra.mrb[168].mxu0 %v4971_v47  ;;  %v6533_v51 = vcombine.low %v3758_v32, %v3768_v48  ;;  %v5005_v25 = vld [vmem:[#allocation3 + $0x1b0] sm:$0xff]  ;;  %v4976_v47 = vld [vmem:[#allocation3 + $0xc8] sm:$0xff] }
 0x358   : > { %5753 = vmatprep.mubr.bf16.mxu0 %v4981_v5  ;;  %7534 = vmatpush3.bf16.msra.mxu0 %v8075_v61  ;;  %v9464_v5 = vld [vmem:[#allocation12 + $0x208] sm:$0xff]   ;;  %v5014_v61 = vld [vmem:[#allocation3 + $0x1f8] sm:$0xff]  ;;  %v5024_v32 = vld [vmem:[#allocation3 + $0x248] sm:$0xff] }
 0x359   : > { %7344 = vmatpush3.bf16.msra.mxu1 %v8057_v33  ;;  %7535 = vmatprep.subr.bf16.mxu0 %v8076_v17  ;;  %v4987_v33 = vld [vmem:[#allocation3 + $0x120] sm:$0xff] }
 0x35a   : > { %7345 = vmatprep.subr.bf16.mxu1 %v8058_v60  ;;  %v8097_v60 = vld [vmem:[#allocation12 + $0x138] sm:$0xff]   ;;  %v4975_v17 = vld [vmem:[#allocation3 + $0xc0] sm:$0xff] }
 0x35c   : > { %7670 = vmatmul.mubr.bf16.gmra.mrb[152].mxu1 %v9410_v63  ;;  %v8077_v63 = vld [vmem:[#allocation12 + $0x198] sm:$0xff]  }
 0x35d   : > { %7346 = vmatpush3.bf16.msra.mxu1 %v8059_v39  ;;  %7673 = vmatprep.mubr.bf16.mxu1 %v9439_v52  ;;  %v8064_v52 = vld [vmem:[#allocation12 + $0x78] sm:$0xff]   ;;  %v4996_v39 = vld [vmem:[#allocation3 + $0x168] sm:$0xff] }
 0x35e   : > { %7347 = vmatprep.subr.bf16.mxu1 %v8060_v37  ;;  %7536 = vmatpush3.bf16.msra.mxu0 %v8077_v63  ;;  %v5006_v37 = vld [vmem:[#allocation3 + $0x1b8] sm:$0xff] }
 0x35f   : > { %7537 = vmatprep.subr.bf16.mxu0 %v8079_v1  ;;  %5754 = vmatmul.mubr.bf16.gmra.mrb[172].mxu0 %v4980_v62  ;;  %v5023_v62 = vld [vmem:[#allocation3 + $0x240] sm:$0xff] }
 0x360   : > { %5761 = vmatprep.mubr.bf16.mxu0 %v4990_v38 }
 0x361   : > { %7348 = vmatpush3.bf16.msra.mxu1 %v8061_v31  ;;  %v9468_v31 = vld [vmem:[#allocation12 + $0x210] sm:$0xff]  }
 0x362   : > { %7349 = vmatprep.subr.bf16.mxu1 %v8062_v8  ;;  %7538 = vmatpush3.bf16.msra.mxu0 %v8081_v59  ;;  %v9476_v59 = vld [vmem:[#allocation12 + $0x220] sm:$0xff]  }
 0x363   : > { %7539 = vmatprep.subr.bf16.mxu0 %v8082_v46 }
 0x364   : > { %7674 = vmatmul.mubr.bf16.gmra.mrb[156].mxu1 %v6533_v51  ;;  %v4985_v51 = vld [vmem:[#allocation3 + $0x110] sm:$0xff] }
 0x365   : > { %7350 = vmatpush3.bf16.msra.mxu1 %v8063_v21  ;;  %5640 = vmatprep.mubr.bf16.mxu1 %v4961_v0 }
 0x366   : > { %7351 = vmatprep.subr.bf16.mxu1 %v8064_v52  ;;  %7540 = vmatpush3.bf16.msra.mxu0 %v8083_v3  ;;  %v9472_v52 = vld [vmem:[#allocation12 + $0x218] sm:$0xff]  }
 0x367   : > { %7541 = vmatprep.subr.bf16.mxu0 %v8085_v28  ;;  %5762 = vmatmul.mubr.bf16.gmra.mrb[176].mxu0 %v4989_v4  ;;  %v4994_v28 = vld [vmem:[#allocation3 + $0x158] sm:$0xff] }
 0x368   : > { %5769 = vmatprep.mubr.bf16.mxu0 %v4999_v34 }
 0x369   : > { %7352 = vmatpush3.bf16.msra.mxu1 %v8065_v15  ;;  %v4965_v15 = vld [vmem:[#allocation3 + $0x70] sm:$0xff] }
 0x36a   : > { %7465 = vmatprep.subr.bf16.mxu1 %v8066_v57  ;;  %7542 = vmatpush3.bf16.msra.mxu0 %v8087_v45 }
 0x36b   : > { %7543 = vmatprep.subr.bf16.mxu0 %v8088_v9 }
 0x36c   : > { %5641 = vmatmul.mubr.bf16.vlgmr.msra.gmra.mrb[160].mxu1 %v4960_v2  ;;  %v4984_v2 = vld [vmem:[#allocation3 + $0x108] sm:$0xff] }
 0x36d   : > { %7466 = vmatpush3.bf16.msra.mxu1 %v8068_v7  ;;  %5648 = vmatprep.mubr.bf16.mxu1 %v4970_v35 }
 0x36e   : > { %7467 = vmatprep.subr.bf16.mxu1 %v8072_v12  ;;  %7544 = vmatpush3.bf16.msra.mxu0 %v8089_v42  ;;  %v4964_v42 = vld [vmem:[#allocation3 + $0x68] sm:$0xff] }
 0x36f   : > { %7677 = vmatprep.subr.bf16.mxu0 %v9460_v30  ;;  %5770 = vmatmul.mubr.bf16.gmra.mrb[180].mxu0 %v4998_v50  ;;  %v9488_v50 = vld [vmem:[#allocation12 + $0x230] sm:$0xff]  }
 0x370   : > { %5777 = vmatprep.mubr.bf16.mxu0 %v5008_v14 }
 0x371   : > { %7468 = vmatpush3.bf16.msra.mxu1 %v8074_v27  ;;  %v9480_v27 = vld [vmem:[#allocation12 + $0x228] sm:$0xff]  }
 0x372   : > { %7469 = vmatprep.subr.bf16.mxu1 %v8078_v55 }
 0x374   : > { %5649 = vmatmul.mubr.bf16.gmra.mrb[164].mxu1 %v4969_v26 }
 0x375   : > { %5656 = vmatprep.mubr.bf16.mxu1 %v4979_v18  ;;  %7470 = vmatpush3.bf16.msra.mxu1 %v8080_v22 }
 0x376   : > { %7471 = vmatprep.subr.bf16.mxu1 %v8084_v56  ;;  %v4974_v56 = vld [vmem:[#allocation3 + $0xb8] sm:$0xff] }
 0x377   : > { %5778 = vmatmul.mubr.bf16.gmra.mrb[184].mxu0 %v5007_v49  ;;  %v5003_v49 = vld [vmem:[#allocation3 + $0x1a0] sm:$0xff] }
 0x378   : > { %5785 = vmatprep.mubr.bf16.mxu0 %v5017_v20 }
 0x379   : > { %7472 = vmatpush3.bf16.msra.mxu1 %v8086_v58 }
 0x37a   : > { %7473 = vmatprep.subr.bf16.mxu1 %v8090_v16  ;;  %v4993_v16 = vld [vmem:[#allocation3 + $0x150] sm:$0xff] }
 0x37c   : > { %5657 = vmatmul.mubr.bf16.gmra.mrb[168].mxu1 %v4978_v10 }
 0x37d   : > { %5664 = vmatprep.mubr.bf16.mxu1 %v4988_v11  ;;  %7474 = vmatpush3.bf16.msra.mxu1 %v8091_v43 }
 0x37e   : > { %7475 = vmatprep.subr.bf16.mxu1 %v8092_v6 }
 0x37f   : > { %5786 = vmatmul.mubr.bf16.gmra.mrb[188].mxu0 %v5016_v40 }
 0x380   : > { %5793 = vmatprep.mubr.bf16.mxu0 %v5026_v36 }
 0x381   : > { %7476 = vmatpush3.bf16.msra.mxu1 %v8093_v29 }
 0x382   : > { %7477 = vmatprep.subr.bf16.mxu1 %v8094_v24  ;;  %v9492_v24 = vld [vmem:[#allocation12 + $0x238] sm:$0xff]  }
 0x384   : > { %5665 = vmatmul.mubr.bf16.gmra.mrb[172].mxu1 %v4987_v33 }
 0x385   : > { %5672 = vmatprep.mubr.bf16.mxu1 %v4997_v54  ;;  %7478 = vmatpush3.bf16.msra.mxu1 %v8095_v53 }
 0x386   : > { %7479 = vmatprep.subr.bf16.mxu1 %v8096_v44 }
 0x387   : > { %5794 = vmatmul.mubr.bf16.gmra.mrb[192].mxu0 %v5025_v23  ;;  %v5002_v23 = vld [vmem:[#allocation3 + $0x198] sm:$0xff] }
 0x388   : > { %5931 = vmatprep.mubr.bf16.mxu0 %v4967_v41 }
 0x389   : > { %7480 = vmatpush3.bf16.msra.mxu1 %v8097_v60  ;;  %v4983_v60 = vld [vmem:[#allocation3 + $0x100] sm:$0xff] }
 0x38a   : > { %7709 = vmatprep.subr.bf16.mxu1 %v9460_v30 }
 0x38c   : > { %5673 = vmatmul.mubr.bf16.gmra.mrb[176].mxu1 %v4996_v39 }
 0x38d   : > { %5680 = vmatprep.mubr.bf16.mxu1 %v5006_v37 }
 0x38f   : > { %5932 = vmatmul.mubr.bf16.vlgmr.msra.gmra.mrb[196].mxu0 %v4966_v19 }
 0x390   : > { %5939 = vmatprep.mubr.bf16.mxu0 %v4976_v47  ;;  %7678 = vmatpush3.bf16.msra.mxu0 %v9460_v30  ;;  %v5012_v47 = vld [vmem:[#allocation3 + $0x1e8] sm:$0xff] }
 0x391   : > { %7679 = vmatprep.subr.bf16.mxu0 %v9464_v5 }
 0x394   : > { %5681 = vmatmul.mubr.bf16.gmra.mrb[180].mxu1 %v5005_v25  ;;  %7680 = vmatpush3.bf16.msra.mxu0 %v9464_v5 }
 0x395   : > { %5688 = vmatprep.mubr.bf16.mxu1 %v5015_v13  ;;  %7681 = vmatprep.subr.bf16.mxu0 %v9468_v31 }
 0x397   : > { %5940 = vmatmul.mubr.bf16.gmra.mrb[200].mxu0 %v4975_v17 }
 0x398   : > { %5947 = vmatprep.mubr.bf16.mxu0 %v4985_v51  ;;  %7682 = vmatpush3.bf16.msra.mxu0 %v9468_v31 }
 0x399   : > { %7683 = vmatprep.subr.bf16.mxu0 %v9472_v52 }
 0x39c   : > { %5689 = vmatmul.mubr.bf16.gmra.mrb[184].mxu1 %v5014_v61  ;;  %7684 = vmatpush3.bf16.msra.mxu0 %v9472_v52 }
 0x39d   : > { %5696 = vmatprep.mubr.bf16.mxu1 %v5024_v32  ;;  %7685 = vmatprep.subr.bf16.mxu0 %v9476_v59 }
 0x39f   : > { %v7081_v48 = vpop.f32.mrb[80].mxu1  ;;  %5948 = vmatmul.mubr.bf16.gmra.mrb[204].mxu0 %v4984_v2  ;;  %v5021_v2 = vld [vmem:[#allocation3 + $0x230] sm:$0xff] }
 0x3a0   : > { %v7082_v8 = vpop.f32.mrb[81].mxu1  ;;  %5955 = vmatprep.mubr.bf16.mxu0 %v4994_v28  ;;  %7686 = vmatpush3.bf16.msra.mxu0 %v9476_v59 }
 0x3a1   : > { %v7083_v63 = vadd.f32 %v7082_v8, %v7081_v48  ;;  %v7084_v21 = vpop.f32.mrb[82].mxu1  ;;  %v7145_v38 = vpop.f32.mrb[100].mxu0  ;;  %7687 = vmatprep.subr.bf16.mxu0 %v9480_v27 }
 0x3a2   : > { %v7085_v0 = vpop.f32.mrb[83].mxu1  ;;  %v7146_v46 = vpop.f32.mrb[101].mxu0 }
 0x3a3   : > { %v7086_v1 = vadd.f32 %v7085_v0, %v7084_v21  ;;  %v7147_v3 = vadd.f32 %v7146_v46, %v7145_v38  ;;  %v7148_v7 = vpop.f32.mrb[102].mxu0  ;;  %v4992_v0 = vld [vmem:[#allocation3 + $0x148] sm:$0xff] }
 0x3a4   : > { %5697 = vmatmul.mubr.bf16.gmra.mrb[188].mxu1 %v5023_v62  ;;  %v7149_v12 = vpop.f32.mrb[103].mxu0  ;;  %7688 = vmatpush3.bf16.msra.mxu0 %v9480_v27  ;;  %v5011_v62 = vld [vmem:[#allocation3 + $0x1e0] sm:$0xff] }
 0x3a5   : > { %5834 = vmatprep.mubr.bf16.mxu1 %v4965_v15  ;;  %v9482_v45 = vadd.f32 %v7147_v3, %v7083_v63  ;;  %v7150_v9 = vadd.f32 %v7149_v12, %v7148_v7  ;;  %7689 = vmatprep.subr.bf16.mxu0 %v9488_v50  ;;  %v4982_v63 = vld [vmem:[#allocation3 + $0xf8] sm:$0xff] }
 0x3a7   : > { %v7087_v57 = vpop.f32.mrb[84].mxu1  ;;  %v9484_v18 = vadd.f32 %v7150_v9, %v7086_v1  ;;  %5956 = vmatmul.mubr.bf16.gmra.mrb[208].mxu0 %v4993_v16  ;;  %v5030_v16 = vld [vmem:[#allocation3 + $0x278] sm:$0xff] }
 0x3a8   : > { %v7088_v35 = vpop.f32.mrb[85].mxu1  ;;  %5963 = vmatprep.mubr.bf16.mxu0 %v5003_v49  ;;  %7690 = vmatpush3.bf16.msra.mxu0 %v9488_v50 }
 0x3a9   : > { %v7089_v4 = vadd.f32 %v7088_v35, %v7087_v57  ;;  %v7090_v34 = vpop.f32.mrb[86].mxu1  ;;  %v7151_v22 = vpop.f32.mrb[104].mxu0  ;;  %7691 = vmatprep.subr.bf16.mxu0 %v9492_v24 }
 0x3aa   : > { %v7091_v55 = vpop.f32.mrb[87].mxu1  ;;  %v7152_v14 = vpop.f32.mrb[105].mxu0 }
 0x3ab   : > { %v7092_v26 = vadd.f32 %v7091_v55, %v7090_v34  ;;  %v7153_v10 = vadd.f32 %v7152_v14, %v7151_v22  ;;  %v7154_v43 = vpop.f32.mrb[106].mxu0  ;;  %v4991_v34 = vld [vmem:[#allocation3 + $0x140] sm:$0xff]  ;;  %v5001_v55 = vld [vmem:[#allocation3 + $0x190] sm:$0xff] }
 0x3ac   : > { %5835 = vmatmul.mubr.bf16.vlgmr.msra.gmra.mrb[192].mxu1 %v4964_v42  ;;  %v7155_v6 = vpop.f32.mrb[107].mxu0  ;;  %7692 = vmatpush3.bf16.msra.mxu0 %v9492_v24  ;;  %v5020_v42 = vld [vmem:[#allocation3 + $0x228] sm:$0xff] }
 0x3ad   : > { %7717 = vmatpush3.bf16.msra.mxu1 %v9460_v30  ;;  %5842 = vmatprep.mubr.bf16.mxu1 %v4974_v56  ;;  %v9494_v33 = vadd.f32 %v7153_v10, %v7089_v4  ;;  %v7156_v53 = vadd.f32 %v7155_v6, %v7154_v43  ;;  %v4973_v30 = vld [vmem:[#allocation3 + $0xb0] sm:$0xff] }
 0x3ae   : > { %7710 = vmatprep.subr.bf16.mxu1 %v9464_v5 }
 0x3af   : > { %v7093_v58 = vpop.f32.mrb[88].mxu1  ;;  %v9498_v40 = vadd.f32 %v7156_v53, %v7092_v26  ;;  %5964 = vmatmul.mubr.bf16.gmra.mrb[212].mxu0 %v5002_v23  ;;  %v5010_v53 = vld [vmem:[#allocation3 + $0x1d8] sm:$0xff] }
 0x3b0   : > { %v7094_v11 = vpop.f32.mrb[89].mxu1  ;;  %5971 = vmatprep.mubr.bf16.mxu0 %v5012_v47 }
 0x3b1   : > { %v7095_v20 = vadd.f32 %v7094_v11, %v7093_v58  ;;  %v7096_v29 = vpop.f32.mrb[90].mxu1  ;;  %7718 = vmatpush3.bf16.msra.mxu1 %v9464_v5 }
 0x3b2   : > { %v7097_v54 = vpop.f32.mrb[91].mxu1  ;;  %v7157_v36 = vpop.f32.mrb[108].mxu0  ;;  %7711 = vmatprep.subr.bf16.mxu1 %v9468_v31 }
 0x3b3   : > { %v7098_v44 = vadd.f32 %v7097_v54, %v7096_v29  ;;  %v7158_v39 = vpop.f32.mrb[109].mxu0  ;;  %v5000_v29 = vld [vmem:[#allocation3 + $0x188] sm:$0xff] }
 0x3b4   : > { %v7159_v41 = vadd.f32 %v7158_v39, %v7157_v36  ;;  %v7160_v25 = vpop.f32.mrb[110].mxu0  ;;  %5843 = vmatmul.mubr.bf16.gmra.mrb[196].mxu1 %v4973_v30  ;;  %v5029_v30 = vld [vmem:[#allocation3 + $0x270] sm:$0xff] }
 0x3b5   : > { %v7161_v19 = vpop.f32.mrb[111].mxu0  ;;  %5850 = vmatprep.mubr.bf16.mxu1 %v4983_v60  ;;  %7719 = vmatpush3.bf16.msra.mxu1 %v9468_v31 }
 0x3b6   : > { %v9506_v5 = vadd.f32 %v7159_v41, %v7095_v20  ;;  %v7162_v48 = vadd.f32 %v7161_v19, %v7160_v25  ;;  %7712 = vmatprep.subr.bf16.mxu1 %v9472_v52 }
 0x3b7   : > { %v7099_v37 = vpop.f32.mrb[92].mxu1  ;;  %5972 = vmatmul.mubr.bf16.gmra.mrb[216].mxu0 %v5011_v62 }
 0x3b8   : > { %v7100_v13 = vpop.f32.mrb[93].mxu1  ;;  %v9509_v51 = vadd.f32 %v7162_v48, %v7098_v44  ;;  %5979 = vmatprep.mubr.bf16.mxu0 %v5021_v2  ;;  %v5019_v48 = vld [vmem:[#allocation3 + $0x220] sm:$0xff]  ;;  %v5018_v2 = vld [vmem:[#allocation3 + $0x218] sm:$0xff] }
 0x3b9   : > { %v7101_v61 = vadd.f32 %v7100_v13, %v7099_v37  ;;  %v7102_v32 = vpop.f32.mrb[94].mxu1  ;;  %7720 = vmatpush3.bf16.msra.mxu1 %v9472_v52  ;;  %v4968_v37 = vld [vmem:[#allocation3 + $0x88] sm:$0xff] }
 0x3ba   : > { %v7103_v17 = vpop.f32.mrb[95].mxu1  ;;  %v7163_v21 = vpop.f32.mrb[112].mxu0  ;;  %7713 = vmatprep.subr.bf16.mxu1 %v9476_v59 }
 0x3bb   : > { %v7104_v8 = vadd.f32 %v7103_v17, %v7102_v32  ;;  %v7164_v1 = vpop.f32.mrb[113].mxu0  ;;  %v5009_v32 = vld [vmem:[#allocation3 + $0x1d0] sm:$0xff] }
 0x3bc   : > { %v7165_v38 = vadd.f32 %v7164_v1, %v7163_v21  ;;  %v7166_v15 = vpop.f32.mrb[114].mxu0  ;;  %5851 = vmatmul.mubr.bf16.gmra.mrb[200].mxu1 %v4982_v63  ;;  %v4977_v17 = vld [vmem:[#allocation3 + $0xd0] sm:$0xff] }
 0x3bd   : > { %v7167_v57 = vpop.f32.mrb[115].mxu0  ;;  %5858 = vmatprep.mubr.bf16.mxu1 %v4992_v0  ;;  %7721 = vmatpush3.bf16.msra.mxu1 %v9476_v59 }
 0x3be   : > { %v9514_v35 = vadd.f32 %v7165_v38, %v7101_v61  ;;  %v7168_v52 = vadd.f32 %v7167_v57, %v7166_v15  ;;  %7714 = vmatprep.subr.bf16.mxu1 %v9480_v27 }
 0x3bf   : > { %v7105_v31 = vpop.f32.mrb[96].mxu1  ;;  %5980 = vmatmul.mubr.bf16.gmra.mrb[220].mxu0 %v5020_v42 }
 0x3c0   : > { %v7106_v46 = vpop.f32.mrb[97].mxu1  ;;  %v9517_v4 = vadd.f32 %v7168_v52, %v7104_v8  ;;  %5987 = vmatprep.mubr.bf16.mxu0 %v5030_v16  ;;  %v5028_v52 = vld [vmem:[#allocation3 + $0x268] sm:$0xff] }
 0x3c1   : > { %v7107_v3 = vadd.f32 %v7106_v46, %v7105_v31  ;;  %v7108_v7 = vpop.f32.mrb[98].mxu1  ;;  %7722 = vmatpush3.bf16.msra.mxu1 %v9480_v27 }
 0x3c2   : > { %v7109_v12 = vpop.f32.mrb[99].mxu1  ;;  %v7169_v9 = vpop.f32.mrb[116].mxu0  ;;  %7715 = vmatprep.subr.bf16.mxu1 %v9488_v50 }
 0x3c3   : > { %v7110_v28 = vadd.f32 %v7109_v12, %v7108_v7  ;;  %v7170_v26 = vpop.f32.mrb[117].mxu0 }
 0x3c4   : > { %v7171_v22 = vadd.f32 %v7170_v26, %v7169_v9  ;;  %v7172_v56 = vpop.f32.mrb[118].mxu0  ;;  %5859 = vmatmul.mubr.bf16.gmra.mrb[204].mxu1 %v4991_v34  ;;  %v5027_v26 = vld [vmem:[#allocation3 + $0x260] sm:$0xff] }
 0x3c5   : > { %v7173_v58 = vpop.f32.mrb[119].mxu0  ;;  %5866 = vmatprep.mubr.bf16.mxu1 %v5001_v55  ;;  %7723 = vmatpush3.bf16.msra.mxu1 %v9488_v50 }
 0x3c6   : > { %v9522_v11 = vadd.f32 %v7171_v22, %v7107_v3  ;;  %v7174_v27 = vadd.f32 %v7173_v58, %v7172_v56  ;;  %7716 = vmatprep.subr.bf16.mxu1 %v9492_v24  ;;  %v4986_v22 = vld [vmem:[#allocation3 + $0x118] sm:$0xff] }
 0x3c7   : > { %v7111_v59 = vpop.f32.mrb[100].mxu1  ;;  %5988 = vmatmul.mubr.bf16.gmra.mrb[224].mxu0 %v5029_v30 }
 0x3c8   : > { %v7112_v14 = vpop.f32.mrb[101].mxu1  ;;  %v9525_v20 = vadd.f32 %v7174_v27, %v7110_v28  ;;  %7693 = vmatprep.mubr.bf16.mxu0 %v4968_v37 }
 0x3c9   : > { %v7113_v10 = vadd.f32 %v7112_v14, %v7111_v59  ;;  %v7114_v43 = vpop.f32.mrb[102].mxu1  ;;  %7724 = vmatpush3.bf16.msra.mxu1 %v9492_v24 }
 0x3ca   : > { %v7115_v6 = vpop.f32.mrb[103].mxu1  ;;  %v7175_v54 = vpop.f32.mrb[120].mxu0 }
 0x3cb   : > { %v7116_v49 = vadd.f32 %v7115_v6, %v7114_v43  ;;  %v7176_v36 = vpop.f32.mrb[121].mxu0 }
 0x3cc   : > { %5867 = vmatmul.mubr.bf16.gmra.mrb[208].mxu1 %v5000_v29  ;;  %v7177_v60 = vadd.f32 %v7176_v36, %v7175_v54  ;;  %v7178_v39 = vpop.f32.mrb[122].mxu0  ;;  %v4995_v36 = vld [vmem:[#allocation3 + $0x160] sm:$0xff] }
 0x3cd   : > { %5874 = vmatprep.mubr.bf16.mxu1 %v5010_v53  ;;  %v7179_v25 = vpop.f32.mrb[123].mxu0 }
 0x3ce   : > { %v9528_v19 = vadd.f32 %v7177_v60, %v7113_v10  ;;  %v7180_v47 = vadd.f32 %v7179_v25, %v7178_v39  ;;  %v5004_v60 = vld [vmem:[#allocation3 + $0x1a8] sm:$0xff] }
 0x3cf   : > { %v7117_v44 = vpop.f32.mrb[104].mxu1  ;;  %7694 = vmatmul.mubr.bf16.vlgmr.msra.gmra.mrb[228].mxu0 %v4977_v17 }
 0x3d0   : > { %v7118_v50 = vpop.f32.mrb[105].mxu1  ;;  %v9530_v61 = vadd.f32 %v7180_v47, %v7116_v49 }
 0x3d1   : > { %v7119_v23 = vadd.f32 %v7118_v50, %v7117_v44  ;;  %v7120_v41 = vpop.f32.mrb[106].mxu1 }
 0x3d2   : > { %v7121_v13 = vpop.f32.mrb[107].mxu1  ;;  %v7181_v63 = vpop.f32.mrb[124].mxu0 }
 0x3d3   : > { %v7122_v24 = vadd.f32 %v7121_v13, %v7120_v41  ;;  %v7182_v0 = vpop.f32.mrb[125].mxu0 }
 0x3d4   : > { %5875 = vmatmul.mubr.bf16.gmra.mrb[212].mxu1 %v5009_v32  ;;  %v7183_v62 = vadd.f32 %v7182_v0, %v7181_v63  ;;  %v7184_v38 = vpop.f32.mrb[126].mxu0 }
 0x3d5   : > { %5882 = vmatprep.mubr.bf16.mxu1 %v5019_v48  ;;  %v7185_v46 = vpop.f32.mrb[127].mxu0 }
 0x3d6   : > { %v9532_v3 = vadd.f32 %v7183_v62, %v7119_v23  ;;  %v7186_v7 = vadd.f32 %v7185_v46, %v7184_v38 }
 0x3d7   : > { %v7123_v8 = vpop.f32.mrb[108].mxu1 }
 0x3d8   : > { %v7124_v21 = vpop.f32.mrb[109].mxu1  ;;  %v9534_v12 = vadd.f32 %v7186_v7, %v7122_v24 }
 0x3d9   : > { %v7125_v1 = vadd.f32 %v7124_v21, %v7123_v8  ;;  %v7126_v31 = vpop.f32.mrb[110].mxu1  ;;  %v5013_v21 = vld [vmem:[#allocation3 + $0x1f0] sm:$0xff] }
 0x3da   : > { %v7127_v15 = vpop.f32.mrb[111].mxu1  ;;  %v7187_v59 = vpop.f32.mrb[128].mxu0 }
 0x3db   : > { %v7128_v57 = vadd.f32 %v7127_v15, %v7126_v31  ;;  %v7188_v56 = vpop.f32.mrb[129].mxu0 }
 0x3dc   : > { %5883 = vmatmul.mubr.bf16.gmra.mrb[216].mxu1 %v5018_v2  ;;  %v7189_v16 = vadd.f32 %v7188_v56, %v7187_v59  ;;  %v7190_v10 = vpop.f32.mrb[130].mxu0 }
 0x3dd   : > { %5890 = vmatprep.mubr.bf16.mxu1 %v5028_v52  ;;  %v7191_v43 = vpop.f32.mrb[131].mxu0 }
 0x3de   : > { %v9538_v6 = vadd.f32 %v7189_v16, %v7125_v1  ;;  %v7192_v49 = vadd.f32 %v7191_v43, %v7190_v10  ;;  %v5022_v1 = vld [vmem:[#allocation3 + $0x238] sm:$0xff] }
 0x3df   : > { %v7209_v28 = vpop.f32.mrb[112].mxu1 }
 0x3e0   : > { %v7210_v34 = vpop.f32.mrb[113].mxu1  ;;  %v9540_v53 = vadd.f32 %v7192_v49, %v7128_v57 }
 0x3e1   : > { %v7211_v9 = vadd.f32 %v7210_v34, %v7209_v28  ;;  %v7212_v55 = vpop.f32.mrb[114].mxu1 }
 0x3e2   : > { %v7213_v42 = vpop.f32.mrb[115].mxu1  ;;  %v7273_v50 = vpop.f32.mrb[132].mxu0 }
 0x3e3   : > { %v4658_v14 = vadd.f32 %v7211_v9, %v9482_v45  ;;  %v7214_v58 = vadd.f32 %v7213_v42, %v7212_v55  ;;  %v7274_v39 = vpop.f32.mrb[133].mxu0 }
 0x3e4   : > { %5891 = vmatmul.mubr.bf16.gmra.mrb[220].mxu1 %v5027_v26  ;;  %v7275_v41 = vadd.f32 %v7274_v39, %v7273_v50  ;;  %v5031_v26 = vld [vmem:[#allocation3 + $0x280] sm:$0xff] }
 0x3e5   : > { %v4661_v27 = vadd.f32 %v7214_v58, %v9484_v18  ;;  %7697 = vmatprep.mubr.bf16.mxu1 %v4986_v22  ;;  %v7276_v18 = vpop.f32.mrb[134].mxu0 }
 0x3e6   : > { %v7277_v25 = vpop.f32.mrb[135].mxu0  ;;  %v9544_v24 = vadd.f32 %v7275_v41, %v4658_v14 }
 0x3e7   : > { %v7215_v29 = vpop.f32.mrb[116].mxu1  ;;  %v7278_v47 = vadd.f32 %v7277_v25, %v7276_v18 }
 0x3e8   : > { %v7216_v54 = vpop.f32.mrb[117].mxu1 }
 0x3e9   : > { %v7217_v44 = vadd.f32 %v7216_v54, %v7215_v29  ;;  %v7218_v30 = vpop.f32.mrb[118].mxu1  ;;  %v9546_v17 = vadd.f32 %v7278_v47, %v4661_v27 }
 0x3ea   : > { %v7219_v45 = vpop.f32.mrb[119].mxu1  ;;  %v7279_v0 = vpop.f32.mrb[136].mxu0 }
 0x3eb   : > { %v4666_v37 = vadd.f32 %v7217_v44, %v9494_v33  ;;  %v7220_v23 = vadd.f32 %v7219_v45, %v7218_v30  ;;  %v7280_v31 = vpop.f32.mrb[137].mxu0 }
 0x3ec   : > { %7698 = vmatmul.mubr.bf16.vlgmr.msra.gmra.mrb[224].mxu1 %v4995_v36  ;;  %v7281_v15 = vadd.f32 %v7280_v31, %v7279_v0 }
 0x3ed   : > { %v4669_v13 = vadd.f32 %v7220_v23, %v9498_v40  ;;  %7701 = vmatprep.mubr.bf16.mxu1 %v5004_v60  ;;  %v7282_v40 = vpop.f32.mrb[138].mxu0 }
 0x3ee   : > { %v7283_v46 = vpop.f32.mrb[139].mxu0  ;;  %v9550_v7 = vadd.f32 %v7281_v15, %v4666_v37 }
 0x3ef   : > { %v7221_v32 = vpop.f32.mrb[120].mxu1  ;;  %v7284_v2 = vadd.f32 %v7283_v46, %v7282_v40 }
 0x3f0   : > { %v7222_v48 = vpop.f32.mrb[121].mxu1 }
 0x3f1   : > { %v7223_v8 = vadd.f32 %v7222_v48, %v7221_v32  ;;  %v7224_v63 = vpop.f32.mrb[122].mxu1  ;;  %v9552_v34 = vadd.f32 %v7284_v2, %v4669_v13 }
 0x3f2   : > { %v7225_v33 = vpop.f32.mrb[123].mxu1  ;;  %v7285_v59 = vpop.f32.mrb[140].mxu0 }
 0x3f3   : > { %v4674_v62 = vadd.f32 %v7223_v8, %v9506_v5  ;;  %v7226_v38 = vadd.f32 %v7225_v33, %v7224_v63  ;;  %v7286_v42 = vpop.f32.mrb[141].mxu0 }
 0x3f4   : > { %7702 = vmatmul.mubr.bf16.gmra.mrb[228].mxu1 %v5013_v21  ;;  %v7287_v14 = vadd.f32 %v7286_v42, %v7285_v59  ;;  %v7288_v58 = vpop.f32.mrb[142].mxu0 }
 0x3f5   : > { %v4677_v57 = vadd.f32 %v7226_v38, %v9509_v51  ;;  %7705 = vmatprep.mubr.bf16.mxu1 %v5022_v1  ;;  %v7289_v51 = vpop.f32.mrb[143].mxu0 }
 0x3f6   : > { %v7290_v10 = vadd.f32 %v7289_v51, %v7288_v58  ;;  %v9556_v43 = vadd.f32 %v7287_v14, %v4674_v62 }
 0x3f7   : > { %v7227_v52 = vpop.f32.mrb[124].mxu1 }
 0x3f8   : > { %v7228_v28 = vpop.f32.mrb[125].mxu1  ;;  %v9558_v29 = vadd.f32 %v7290_v10, %v4677_v57 }
 0x3f9   : > { %v7229_v9 = vadd.f32 %v7228_v28, %v7227_v52  ;;  %v7230_v55 = vpop.f32.mrb[126].mxu1 }
 0x3fa   : > { %v7231_v5 = vpop.f32.mrb[127].mxu1  ;;  %v7291_v30 = vpop.f32.mrb[144].mxu0 }
 0x3fb   : > { %v4682_v22 = vadd.f32 %v7229_v9, %v9514_v35  ;;  %v7232_v56 = vadd.f32 %v7231_v5, %v7230_v55  ;;  %v7292_v50 = vpop.f32.mrb[145].mxu0 }
 0x3fc   : > { %7706 = vmatmul.mubr.bf16.gmra.mrb[232].mxu1 %v5031_v26  ;;  %v7293_v60 = vadd.f32 %v7292_v50, %v7291_v30  ;;  %v7294_v39 = vpop.f32.mrb[146].mxu0 }
 0x3fd   : > { %v4685_v16 = vadd.f32 %v7232_v56, %v9517_v4  ;;  %v7295_v37 = vpop.f32.mrb[147].mxu0 }
 0x3fe   : > { %v7296_v23 = vadd.f32 %v7295_v37, %v7294_v39  ;;  %v9562_v41 = vadd.f32 %v7293_v60, %v4682_v22 }
 0x3ff   : > { %v7233_v27 = vpop.f32.mrb[128].mxu1 }
 0x400   : > { %v7234_v49 = vpop.f32.mrb[129].mxu1  ;;  %v9564_v13 = vadd.f32 %v7296_v23, %v4685_v16 }
 0x401   : > { %v7235_v54 = vadd.f32 %v7234_v49, %v7233_v27  ;;  %v7236_v44 = vpop.f32.mrb[130].mxu1 }
 0x402   : > { %v7237_v36 = vpop.f32.mrb[131].mxu1  ;;  %v7297_v48 = vpop.f32.mrb[148].mxu0 }
 0x403   : > { %v4690_v35 = vadd.f32 %v7235_v54, %v9522_v11  ;;  %v7238_v45 = vadd.f32 %v7237_v36, %v7236_v44  ;;  %v7298_v63 = vpop.f32.mrb[149].mxu0 }
 0x404   : > { %v7299_v0 = vadd.f32 %v7298_v63, %v7297_v48  ;;  %v7300_v33 = vpop.f32.mrb[150].mxu0 }
 0x405   : > { %v4693_v4 = vadd.f32 %v7238_v45, %v9525_v20  ;;  %v7301_v1 = vpop.f32.mrb[151].mxu0 }
 0x406   : > { %v7302_v31 = vadd.f32 %v7301_v1, %v7300_v33  ;;  %v9568_v62 = vadd.f32 %v7299_v0, %v4690_v35 }
 0x407   : > { %v7239_v18 = vpop.f32.mrb[132].mxu1 }
 0x408   : > { %v7240_v25 = vpop.f32.mrb[133].mxu1  ;;  %v9570_v40 = vadd.f32 %v7302_v31, %v4693_v4 }
 0x409   : > { %v7241_v47 = vadd.f32 %v7240_v25, %v7239_v18  ;;  %v7242_v32 = vpop.f32.mrb[134].mxu1 }
 0x40a   : > { %v7243_v8 = vpop.f32.mrb[135].mxu1  ;;  %v7303_v2 = vpop.f32.mrb[152].mxu0 }
 0x40b   : > { %v4698_v11 = vadd.f32 %v7241_v47, %v9528_v19  ;;  %v7244_v21 = vadd.f32 %v7243_v8, %v7242_v32  ;;  %v7304_v28 = vpop.f32.mrb[153].mxu0 }
 0x40c   : > { %v7305_v55 = vadd.f32 %v7304_v28, %v7303_v2  ;;  %v7306_v26 = vpop.f32.mrb[154].mxu0 }
 0x40d   : > { %v4701_v20 = vadd.f32 %v7244_v21, %v9530_v61  ;;  %v7307_v59 = vpop.f32.mrb[155].mxu0 }
 0x40e   : > { %v7308_v5 = vadd.f32 %v7307_v59, %v7306_v26  ;;  %v4795_v42 = vadd.f32 %v7305_v55, %v4698_v11 }
 0x40f   : > { %v7245_v38 = vpop.f32.mrb[136].mxu1 }
 0x410   : > { %v7246_v15 = vpop.f32.mrb[137].mxu1  ;;  %v4798_v14 = vadd.f32 %v7308_v5, %v4701_v20 }
 0x411   : > { %v7247_v46 = vadd.f32 %v7246_v15, %v7245_v38  ;;  %v7248_v57 = vpop.f32.mrb[138].mxu1 }
 0x412   : > { %v7249_v52 = vpop.f32.mrb[139].mxu1  ;;  %v7309_v16 = vpop.f32.mrb[156].mxu0 }
 0x413   : > { %v4706_v19 = vadd.f32 %v7247_v46, %v9532_v3  ;;  %v7250_v9 = vadd.f32 %v7249_v52, %v7248_v57  ;;  %v7310_v27 = vpop.f32.mrb[157].mxu0 }
 0x414   : > { %v7311_v3 = vadd.f32 %v7310_v27, %v7309_v16  ;;  %v7312_v44 = vpop.f32.mrb[158].mxu0 }
 0x415   : > { %v4709_v61 = vadd.f32 %v7250_v9, %v9534_v12  ;;  %v7313_v30 = vpop.f32.mrb[159].mxu0 }
 0x416   : > { %v7314_v50 = vadd.f32 %v7313_v30, %v7312_v44  ;;  %v4803_v12 = vadd.f32 %v7311_v3, %v4706_v19 }
 0x417   : > { %v7251_v22 = vpop.f32.mrb[140].mxu1 }
 0x418   : > { %v7252_v56 = vpop.f32.mrb[141].mxu1  ;;  %v4806_v39 = vadd.f32 %v7314_v50, %v4709_v61 }
 0x419   : > { %v7253_v58 = vadd.f32 %v7252_v56, %v7251_v22  ;;  %v7254_v51 = vpop.f32.mrb[142].mxu1 }
 0x41a   : > { %v7255_v10 = vpop.f32.mrb[143].mxu1  ;;  %v7315_v23 = vpop.f32.mrb[160].mxu0 }
 0x41b   : > { %v4714_v49 = vadd.f32 %v7253_v58, %v9538_v6  ;;  %v7256_v54 = vadd.f32 %v7255_v10, %v7254_v51  ;;  %v7316_v25 = vpop.f32.mrb[161].mxu0 }
 0x41c   : > { %v7317_v47 = vadd.f32 %v7316_v25, %v7315_v23  ;;  %v7318_v32 = vpop.f32.mrb[162].mxu0 }
 0x41d   : > { %v4717_v36 = vadd.f32 %v7256_v54, %v9540_v53  ;;  %v7319_v48 = vpop.f32.mrb[163].mxu0 }
 0x41e   : > { %v4811_v8 = vadd.f32 %v7317_v47, %v4714_v49 }
 0x41f   : > { %v7663_v35 = vpop.f32.mrb[144].mxu1 }
 0x420   : > { %v9577_v45 = vadd.f32 %v7663_v35, %v9550_v7  ;;  %v4851_v60 = vpop.f32.mrb[145].mxu1  ;;  %v7320_v7 = vadd.f32 %v7319_v48, %v7318_v32 }
 0x421   : > { %v9580_v37 = vadd.f32 %v4851_v60, %v9544_v24  ;;  %v7664_v4 = vpop.f32.mrb[146].mxu1 }
 0x422   : > { %v9583_v6 = vadd.f32 %v7664_v4, %v9552_v34  ;;  %v4854_v18 = vpop.f32.mrb[147].mxu1  ;;  %v4814_v21 = vadd.f32 %v7320_v7, %v4717_v36  ;;  %v7417_v1 = vpop.f32.mrb[164].mxu0 }
 0x423   : > { %v9586_v53 = vadd.f32 %v4854_v18, %v9546_v17  ;;  %v7418_v31 = vpop.f32.mrb[165].mxu0 }
 0x424   : > { %v7419_v38 = vadd.f32 %v7418_v31, %v7417_v1  ;;  %v7420_v15 = vpop.f32.mrb[166].mxu0 }
 0x425   : > { %v7421_v46 = vpop.f32.mrb[167].mxu0 }
 0x427   : > { %v7667_v63 = vpop.f32.mrb[148].mxu1 }
 0x428   : > { %v9589_v11 = vadd.f32 %v7667_v63, %v9562_v41  ;;  %v4867_v24 = vpop.f32.mrb[149].mxu1  ;;  %v7422_v41 = vadd.f32 %v7421_v46, %v7420_v15 }
 0x429   : > { %v9592_v0 = vadd.f32 %v4867_v24, %v9556_v43  ;;  %v7668_v34 = vpop.f32.mrb[150].mxu1 }
 0x42a   : > { %v9595_v33 = vadd.f32 %v7668_v34, %v9564_v13  ;;  %v4870_v17 = vpop.f32.mrb[151].mxu1  ;;  %v7423_v9 = vpop.f32.mrb[168].mxu0 }
 0x42b   : > { %v9598_v20 = vadd.f32 %v4870_v17, %v9558_v29  ;;  %v7424_v55 = vpop.f32.mrb[169].mxu0 }
 0x42c   : > { %v7425_v26 = vadd.f32 %v7424_v55, %v7423_v9  ;;  %v7426_v59 = vpop.f32.mrb[170].mxu0 }
 0x42d   : > { %v7427_v61 = vpop.f32.mrb[171].mxu0 }
 0x42e   : > { %v7428_v5 = vadd.f32 %v7427_v61, %v7426_v59 }
 0x42f   : > { %v7671_v57 = vpop.f32.mrb[152].mxu1 }
 0x430   : > { %v9600_v2 = vadd.f32 %v7671_v57, %v4795_v42  ;;  %v4883_v52 = vpop.f32.mrb[153].mxu1 }
 0x431   : > { %v9603_v43 = vadd.f32 %v4883_v52, %v9568_v62  ;;  %v7672_v28 = vpop.f32.mrb[154].mxu1 }
 0x432   : > { %v9605_v13 = vadd.f32 %v7672_v28, %v4798_v14  ;;  %v4886_v19 = vpop.f32.mrb[155].mxu1  ;;  %v7429_v16 = vpop.f32.mrb[172].mxu0 }
 0x433   : > { %v9608_v29 = vadd.f32 %v4886_v19, %v9570_v40  ;;  %v7430_v40 = vpop.f32.mrb[173].mxu0 }
 0x434   : > { %v7431_v27 = vadd.f32 %v7430_v40, %v7429_v16  ;;  %v7432_v49 = vpop.f32.mrb[174].mxu0 }
 0x435   : > { %v7433_v54 = vpop.f32.mrb[175].mxu0 }
 0x436   : > { %v7434_v3 = vadd.f32 %v7433_v54, %v7432_v49 }
 0x437   : > { %v7675_v22 = vpop.f32.mrb[156].mxu1 }
 0x438   : > { %v9610_v42 = vadd.f32 %v7675_v22, %v4811_v8  ;;  %v4899_v56 = vpop.f32.mrb[157].mxu1 }
 0x439   : > { %v9612_v58 = vadd.f32 %v4899_v56, %v4803_v12  ;;  %v7676_v62 = vpop.f32.mrb[158].mxu1 }
 0x43a   : > { %v9614_v51 = vadd.f32 %v7676_v62, %v4814_v21  ;;  %v4902_v14 = vpop.f32.mrb[159].mxu1  ;;  %v7435_v60 = vpop.f32.mrb[176].mxu0 }
 0x43b   : > { %v9616_v10 = vadd.f32 %v4902_v14, %v4806_v39  ;;  %v7436_v23 = vpop.f32.mrb[177].mxu0 }
 0x43c   : > { %v7437_v18 = vadd.f32 %v7436_v23, %v7435_v60  ;;  %v7438_v25 = vpop.f32.mrb[178].mxu0 }
 0x43d   : > { %v7439_v39 = vpop.f32.mrb[179].mxu0 }
 0x43e   : > { %v7440_v32 = vadd.f32 %v7439_v39, %v7438_v25 }
 0x43f   : > { %v7353_v44 = vpop.f32.mrb[160].mxu1 }
 0x440   : > { %v7354_v30 = vpop.f32.mrb[161].mxu1 }
 0x441   : > { %v7355_v36 = vadd.f32 %v7354_v30, %v7353_v44  ;;  %v7356_v50 = vpop.f32.mrb[162].mxu1 }
 0x442   : > { %v7357_v35 = vpop.f32.mrb[163].mxu1  ;;  %v7441_v21 = vpop.f32.mrb[180].mxu0 }
 0x443   : > { %v9618_v12 = vadd.f32 %v7419_v38, %v7355_v36  ;;  %v7358_v4 = vadd.f32 %v7357_v35, %v7356_v50  ;;  %v7442_v1 = vpop.f32.mrb[181].mxu0 }
 0x444   : > { %v7443_v31 = vadd.f32 %v7442_v1, %v7441_v21  ;;  %v7444_v38 = vpop.f32.mrb[182].mxu0 }
 0x445   : > { %v9620_v47 = vadd.f32 %v7422_v41, %v7358_v4  ;;  %v7445_v46 = vpop.f32.mrb[183].mxu0 }
 0x446   : > { %v7446_v57 = vadd.f32 %v7445_v46, %v7444_v38 }
 0x447   : > { %v7359_v48 = vpop.f32.mrb[164].mxu1 }
 0x448   : > { %v7360_v7 = vpop.f32.mrb[165].mxu1 }
 0x449   : > { %v7361_v8 = vadd.f32 %v7360_v7, %v7359_v48  ;;  %v7362_v63 = vpop.f32.mrb[166].mxu1 }
 0x44a   : > { %v7363_v24 = vpop.f32.mrb[167].mxu1  ;;  %v7447_v55 = vpop.f32.mrb[184].mxu0 }
 0x44b   : > { %v9622_v34 = vadd.f32 %v7425_v26, %v7361_v8  ;;  %v7364_v17 = vadd.f32 %v7363_v24, %v7362_v63  ;;  %v7448_v22 = vpop.f32.mrb[185].mxu0 }
 0x44c   : > { %v7449_v26 = vadd.f32 %v7448_v22, %v7447_v55  ;;  %v7450_v56 = vpop.f32.mrb[186].mxu0 }
 0x44d   : > { %v9624_v15 = vadd.f32 %v7428_v5, %v7364_v17  ;;  %v7451_v14 = vpop.f32.mrb[187].mxu0 }
 0x44e   : > { %v7452_v16 = vadd.f32 %v7451_v14, %v7450_v56 }
 0x44f   : > { %v7365_v41 = vpop.f32.mrb[168].mxu1 }
 0x450   : > { %v7366_v52 = vpop.f32.mrb[169].mxu1 }
 0x451   : > { %v7367_v28 = vadd.f32 %v7366_v52, %v7365_v41  ;;  %v7368_v19 = vpop.f32.mrb[170].mxu1 }
 0x452   : > { %v7369_v9 = vpop.f32.mrb[171].mxu1  ;;  %v7453_v30 = vpop.f32.mrb[188].mxu0 }
 0x453   : > { %v9626_v59 = vadd.f32 %v7431_v27, %v7367_v28  ;;  %v7370_v61 = vadd.f32 %v7369_v9, %v7368_v19  ;;  %v7454_v35 = vpop.f32.mrb[189].mxu0 }
 0x454   : > { %v7455_v27 = vadd.f32 %v7454_v35, %v7453_v30  ;;  %v7456_v60 = vpop.f32.mrb[190].mxu0 }
 0x455   : > { %v9628_v62 = vadd.f32 %v7434_v3, %v7370_v61  ;;  %v7457_v23 = vpop.f32.mrb[191].mxu0 }
 0x456   : > { %v7458_v25 = vadd.f32 %v7457_v23, %v7456_v60 }
 0x457   : > { %v7371_v5 = vpop.f32.mrb[172].mxu1 }
 0x458   : > { %v7372_v40 = vpop.f32.mrb[173].mxu1 }
 0x459   : > { %v7373_v49 = vadd.f32 %v7372_v40, %v7371_v5  ;;  %v7374_v54 = vpop.f32.mrb[174].mxu1 }
 0x45a   : > { %v7375_v44 = vpop.f32.mrb[175].mxu1  ;;  %v7459_v63 = vpop.f32.mrb[192].mxu0 }
 0x45b   : > { %v9630_v36 = vadd.f32 %v7437_v18, %v7373_v49  ;;  %v7376_v50 = vadd.f32 %v7375_v44, %v7374_v54  ;;  %v7460_v17 = vpop.f32.mrb[193].mxu0 }
 0x45c   : > { %v7461_v18 = vadd.f32 %v7460_v17, %v7459_v63  ;;  %v7462_v1 = vpop.f32.mrb[194].mxu0 }
 0x45d   : > { %v9632_v4 = vadd.f32 %v7440_v32, %v7376_v50  ;;  %v7463_v46 = vpop.f32.mrb[195].mxu0 }
 0x45e   : > { %v7464_v41 = vadd.f32 %v7463_v46, %v7462_v1 }
 0x45f   : > { %v7377_v3 = vpop.f32.mrb[176].mxu1 }
 0x460   : > { %v7378_v39 = vpop.f32.mrb[177].mxu1 }
 0x461   : > { %v7379_v48 = vadd.f32 %v7378_v39, %v7377_v3  ;;  %v7380_v7 = vpop.f32.mrb[178].mxu1 }
 0x462   : > { %v7381_v8 = vpop.f32.mrb[179].mxu1  ;;  %v7545_v55 = vpop.f32.mrb[196].mxu0 }
 0x463   : > { %v9634_v24 = vadd.f32 %v7443_v31, %v7379_v48  ;;  %v7382_v21 = vadd.f32 %v7381_v8, %v7380_v7  ;;  %v7546_v56 = vpop.f32.mrb[197].mxu0 }
 0x464   : > { %v7547_v31 = vadd.f32 %v7546_v56, %v7545_v55  ;;  %v7548_v14 = vpop.f32.mrb[198].mxu0 }
 0x465   : > { %v9636_v38 = vadd.f32 %v7446_v57, %v7382_v21  ;;  %v7549_v40 = vpop.f32.mrb[199].mxu0 }
 0x466   : > { %v7550_v49 = vadd.f32 %v7549_v40, %v7548_v14 }
 0x467   : > { %v7383_v32 = vpop.f32.mrb[180].mxu1 }
 0x468   : > { %v7384_v52 = vpop.f32.mrb[181].mxu1 }
 0x469   : > { %v7385_v28 = vadd.f32 %v7384_v52, %v7383_v32  ;;  %v7386_v19 = vpop.f32.mrb[182].mxu1 }
 0x46a   : > { %v7387_v9 = vpop.f32.mrb[183].mxu1  ;;  %v7551_v35 = vpop.f32.mrb[200].mxu0 }
 0x46b   : > { %v9638_v61 = vadd.f32 %v7449_v26, %v7385_v28  ;;  %v7388_v22 = vadd.f32 %v7387_v9, %v7386_v19  ;;  %v7552_v3 = vpop.f32.mrb[201].mxu0 }
 0x46c   : > { %v7553_v26 = vadd.f32 %v7552_v3, %v7551_v35  ;;  %v7554_v39 = vpop.f32.mrb[202].mxu0 }
 0x46d   : > { %v9640_v5 = vadd.f32 %v7452_v16, %v7388_v22  ;;  %v7555_v7 = vpop.f32.mrb[203].mxu0 }
 0x46e   : > { %v7556_v8 = vadd.f32 %v7555_v7, %v7554_v39 }
 0x46f   : > { %v7389_v57 = vpop.f32.mrb[184].mxu1 }
 0x470   : > { %v7390_v54 = vpop.f32.mrb[185].mxu1 }
 0x471   : > { %v7391_v44 = vadd.f32 %v7390_v54, %v7389_v57  ;;  %v7392_v30 = vpop.f32.mrb[186].mxu1 }
 0x472   : > { %v7393_v50 = vpop.f32.mrb[187].mxu1  ;;  %v7557_v46 = vpop.f32.mrb[204].mxu0 }
 0x473   : > { %v9642_v60 = vadd.f32 %v7455_v27, %v7391_v44  ;;  %v7394_v23 = vadd.f32 %v7393_v50, %v7392_v30  ;;  %v7558_v28 = vpop.f32.mrb[205].mxu0 }
 0x474   : > { %v7559_v27 = vadd.f32 %v7558_v28, %v7557_v46  ;;  %v7560_v19 = vpop.f32.mrb[206].mxu0 }
 0x475   : > { %v9644_v48 = vadd.f32 %v7458_v25, %v7394_v23  ;;  %v7561_v55 = vpop.f32.mrb[207].mxu0 }
 0x476   : > { %v7562_v22 = vadd.f32 %v7561_v55, %v7560_v19 }
 0x477   : > { %v7395_v16 = vpop.f32.mrb[188].mxu1 }
 0x478   : > { %v7396_v63 = vpop.f32.mrb[189].mxu1 }
 0x479   : > { %v7397_v21 = vadd.f32 %v7396_v63, %v7395_v16  ;;  %v7398_v17 = vpop.f32.mrb[190].mxu1 }
 0x47a   : > { %v7399_v1 = vpop.f32.mrb[191].mxu1  ;;  %v7563_v54 = vpop.f32.mrb[208].mxu0 }
 0x47b   : > { %v9646_v32 = vadd.f32 %v7461_v18, %v7397_v21  ;;  %v7400_v52 = vadd.f32 %v7399_v1, %v7398_v17  ;;  %v7564_v50 = vpop.f32.mrb[209].mxu0 }
 0x47c   : > { %v7565_v18 = vadd.f32 %v7564_v50, %v7563_v54  ;;  %v7566_v35 = vpop.f32.mrb[210].mxu0 }
 0x47d   : > { %v9648_v9 = vadd.f32 %v7464_v41, %v7400_v52  ;;  %v7567_v3 = vpop.f32.mrb[211].mxu0 }
 0x47e   : > { %v7568_v41 = vadd.f32 %v7567_v3, %v7566_v35 }
 0x47f   : > { %v7481_v25 = vpop.f32.mrb[192].mxu1 }
 0x480   : > { %v7482_v56 = vpop.f32.mrb[193].mxu1 }
 0x481   : > { %v7483_v14 = vadd.f32 %v7482_v56, %v7481_v25  ;;  %v7484_v40 = vpop.f32.mrb[194].mxu1 }
 0x482   : > { %v7485_v57 = vpop.f32.mrb[195].mxu1  ;;  %v7569_v46 = vpop.f32.mrb[212].mxu0 }
 0x483   : > { %v5837_v44 = vadd.f32 %v7483_v14, %v9618_v12  ;;  %v7486_v30 = vadd.f32 %v7485_v57, %v7484_v40  ;;  %v7570_v28 = vpop.f32.mrb[213].mxu0 }
 0x484   : > { %v7571_v19 = vadd.f32 %v7570_v28, %v7569_v46  ;;  %v7572_v55 = vpop.f32.mrb[214].mxu0 }
 0x485   : > { %v5840_v23 = vadd.f32 %v7486_v30, %v9620_v47  ;;  %v9652_v39 = vadd.f32 %v7547_v31, %v5837_v44  ;;  %v7573_v25 = vpop.f32.mrb[215].mxu0 }
 0x486   : > { %v7574_v56 = vadd.f32 %v7573_v25, %v7572_v55 }
 0x487   : > { %v7487_v7 = vpop.f32.mrb[196].mxu1  ;;  %v9654_v16 = vadd.f32 %v7550_v49, %v5840_v23 }
 0x488   : > { %v7488_v63 = vpop.f32.mrb[197].mxu1 }
 0x489   : > { %v7489_v21 = vadd.f32 %v7488_v63, %v7487_v7  ;;  %v7490_v17 = vpop.f32.mrb[198].mxu1 }
 0x48a   : > { %v7491_v1 = vpop.f32.mrb[199].mxu1  ;;  %v7575_v30 = vpop.f32.mrb[216].mxu0 }
 0x48b   : > { %v5845_v12 = vadd.f32 %v7489_v21, %v9622_v34  ;;  %v7492_v52 = vadd.f32 %v7491_v1, %v7490_v17  ;;  %v7576_v35 = vpop.f32.mrb[217].mxu0 }
 0x48c   : > { %v7577_v23 = vadd.f32 %v7576_v35, %v7575_v30  ;;  %v7578_v3 = vpop.f32.mrb[218].mxu0 }
 0x48d   : > { %v5848_v47 = vadd.f32 %v7492_v52, %v9624_v15  ;;  %v5942_v31 = vadd.f32 %v7553_v26, %v5845_v12  ;;  %v7579_v15 = vpop.f32.mrb[219].mxu0 }
 0x48e   : > { %v9664_v26 = vadd.f32 %v7579_v15, %v7578_v3 }
 0x48f   : > { %v7493_v14 = vpop.f32.mrb[200].mxu1  ;;  %v9658_v40 = vadd.f32 %v7556_v8, %v5848_v47 }
 0x490   : > { %v7494_v49 = vpop.f32.mrb[201].mxu1 }
 0x491   : > { %v7495_v57 = vadd.f32 %v7494_v49, %v7493_v14  ;;  %v7496_v54 = vpop.f32.mrb[202].mxu1 }
 0x492   : > { %v7497_v44 = vpop.f32.mrb[203].mxu1  ;;  %v7581_v12 = vpop.f32.mrb[220].mxu0 }
 0x493   : > { %v5853_v50 = vadd.f32 %v7495_v57, %v9626_v59  ;;  %v7498_v34 = vadd.f32 %v7497_v44, %v7496_v54  ;;  %v7582_v28 = vpop.f32.mrb[221].mxu0 }
 0x494   : > { %v9669_v47 = vadd.f32 %v7582_v28, %v7581_v12 }
 0x495   : > { %v5856_v7 = vadd.f32 %v7498_v34, %v9628_v62  ;;  %v9662_v63 = vadd.f32 %v7559_v27, %v5853_v50  ;;  %v7584_v62 = vpop.f32.mrb[222].mxu0 }
 0x496   : > { %v7585_v25 = vpop.f32.mrb[223].mxu0 }
 0x497   : > { %v7499_v8 = vpop.f32.mrb[204].mxu1  ;;  %v9666_v21 = vadd.f32 %v7562_v22, %v5856_v7  ;;  %v9674_v49 = vadd.f32 %v7585_v25, %v7584_v62  ;;  %v9704_v25 = vld [vmem:[%s9976_s2] ss:$0 sm:$0xff]  ;;  %s8220_s2 = scalar_lea.vmem %s9842_s11, 2048 }
 0x498   : > { %v7500_v17 = vpop.f32.mrb[205].mxu1  ;;  %p8221_p6 = scmp.ne.s32.totalorder %s9842_s11, %s8220_s2 }
 0x499   : > { %v7501_v1 = vadd.f32 %v7500_v17, %v7499_v8  ;;  %v7502_v46 = vpop.f32.mrb[206].mxu1 }
 0x49a   : > { %v7503_v52 = vpop.f32.mrb[207].mxu1  ;;  %v7587_v50 = vpop.f32.mrb[224].mxu0  ;;  %p8222_p12 = pnand %p8221_p6, %p9981_p8 }
 0x49b   : > { %v5861_v59 = vadd.f32 %v7501_v1, %v9630_v36  ;;  %v7504_v55 = vadd.f32 %v7503_v52, %v7502_v46  ;;  %v7588_v34 = vpop.f32.mrb[225].mxu0  ;;  %v9691_v46 = vld [vmem:[%s9974_s20] ss:$0 sm:$0xff]  ;;  %s6686_s20 = sshll.u32 %s6201_s19, 7 }
 0x49c   : > { %v9679_v7 = vadd.f32 %v7588_v34, %v7587_v50  ;;  %v4923_v28 = vmul.f32 %v9691_v46, %v9577_v45  ;;  %v9713_v45 = vld [vmem:[%s9977_s29] ss:$0 sm:$0xff]  ;;  %p8223_p4 = pneg %p8222_p12  ;;  %s8226_s29 = scalar_lea.vmem %s8225_s1, 4096 }
 0x49d   : > { %v5864_v27 = vadd.f32 %v7504_v55, %v9632_v4  ;;  %v9672_v14 = vadd.f32 %v7565_v18, %v5861_v59  ;;  %v7590_v4 = vpop.f32.mrb[226].mxu0  ;;  %p8228_p3 = scmp.lt.s32.totalorder %s8226_s29, %s8220_s2 }
 0x49e   : > { %v7591_v15 = vpop.f32.mrb[227].mxu0 }
 0x49f   : > { %v7505_v22 = vpop.f32.mrb[208].mxu1  ;;  %v9676_v57 = vadd.f32 %v7568_v41, %v5864_v27  ;;  %v9684_v17 = vadd.f32 %v7591_v15, %v7590_v4  ;;  %p8229_p0 = por %p8228_p3, %p8227_p7 }
 0x4a0   : > { %v7506_v54 = vpop.f32.mrb[209].mxu1 }
 0x4a1   : > { %v7507_v44 = vadd.f32 %v7506_v54, %v7505_v22  ;;  %v7508_v30 = vpop.f32.mrb[210].mxu1  ;;  %v4921_v22 = vmul.f32 %v9691_v46, %v9580_v37  ;;  %v4924_v54 = vmul.f32 %v9691_v46, %v9583_v6  ;;  %v4922_v37 = vmul.f32 %v9691_v46, %v9586_v53  ;;  %p8230_p1 = pnand %p8229_p0, %p8223_p4 }
 0x4a2   : > { %v7509_v36 = vpop.f32.mrb[211].mxu1  ;;  %v7695_v59 = vpop.f32.mrb[228].mxu0 }
 0x4a3   : > { %v5869_v35 = vadd.f32 %v7507_v44, %v9634_v24  ;;  %v7510_v3 = vadd.f32 %v7509_v36, %v7508_v30  ;;  %v6030_v55 = vpop.f32.mrb[229].mxu0 }
 0x4a5   : > { %v5872_v18 = vadd.f32 %v7510_v3, %v9636_v38  ;;  %v9682_v8 = vadd.f32 %v7571_v19, %v5869_v35  ;;  %v9696_v38 = vld [vmem:[%s9975_s8] ss:$0 sm:$0xff]  ;;  %v4946_v3 = vadd.f32 %v9704_v25, %v4923_v28  ;;  %s9980_s8 = sld [smem:[#allocation31_spill]] }
 0x4a7   : > { %v7511_v41 = vpop.f32.mrb[212].mxu1  ;;  %v9686_v1 = vadd.f32 %v7574_v56, %v5872_v18  ;;  %v6039_v56 = vadd.f32 %v7695_v59, %v5942_v31  ;;  %v6031_v31 = vadd.f32 %v6030_v55, %v9652_v39  ;;  %v4945_v59 = vadd.f32 %v9704_v25, %v4922_v37 }
 0x4a8   : > { %v7512_v24 = vpop.f32.mrb[213].mxu1 }
 0x4a9   : > { %v7513_v12 = vadd.f32 %v7512_v24, %v7511_v41  ;;  %v7514_v52 = vpop.f32.mrb[214].mxu1  ;;  %v6102_v44 = vmul.f32 %v9696_v38, %v6039_v56  ;;  %v6100_v6 = vmul.f32 %v9696_v38, %v6031_v31 }
 0x4aa   : > { %v7515_v19 = vpop.f32.mrb[215].mxu1 }
 0x4ab   : > { %v5877_v62 = vadd.f32 %v7513_v12, %v9638_v61  ;;  %v7516_v27 = vadd.f32 %v7515_v19, %v7514_v52  ;;  %v7696_v61 = vpop.f32.mrb[230].mxu0  ;;  %v6125_v39 = vadd.f32 %v9713_v45, %v6102_v44  ;;  %s9848_s30 = scalar_lea.hbm %s9980_s8, %s6686_s20 }
 0x4ac   : > { %v6042_v30 = vadd.f32 %v7696_v61, %v9658_v40  ;;  %v6033_v50 = vpop.f32.mrb[231].mxu0 }
 0x4ad   : > { %v5880_v36 = vadd.f32 %v7516_v27, %v9640_v5  ;;  %v9719_v34 = vadd.f32 %v7577_v23, %v5877_v62  ;;  %v6034_v35 = vadd.f32 %v6033_v50, %v9654_v16  ;;  %v4944_v5 = vadd.f32 %v9704_v25, %v4921_v22 }
 0x4ae   : > { %v6103_v4 = vmul.f32 %v9696_v38, %v6042_v30  ;;  %v6123_v23 = vadd.f32 %v9713_v45, %v6100_v6  ;;  %v4947_v16 = vadd.f32 %v9704_v25, %v4924_v54  ;;  %v6141_v41 = vadd.f32 %v6125_v39, %v4946_v3 }
 0x4af   : > { %v7517_v15 = vpop.f32.mrb[216].mxu1  ;;  %v9729_v40 = vadd.f32 %v9664_v26, %v5880_v36  ;;  %v6101_v53 = vmul.f32 %v9696_v38, %v6034_v35 }
 0x4b0   : > { %v7518_v18 = vpop.f32.mrb[217].mxu1  ;;  %v6126_v24 = vadd.f32 %v9713_v45, %v6103_v4  ;;  %v6139_v26 = vadd.f32 %v6123_v23, %v4944_v5  ;;  %v6157_v56 = vmax.f32 %v6141_v41, 0.0 }
 0x4b1   : > { %v7519_v12 = vadd.f32 %v7518_v18, %v7517_v15  ;;  %v7520_v52 = vpop.f32.mrb[218].mxu1  ;;  %v6124_v19 = vadd.f32 %v9713_v45, %v6101_v53  ;;  %v4925_v53 = vmul.f32 %v9691_v46, %v9592_v0 }
 0x4b2   : > { %v7521_v28 = vpop.f32.mrb[219].mxu1  ;;  %v6142_v55 = vadd.f32 %v6126_v24, %v4947_v16  ;;  %v6155_v22 = vmax.f32 %v6139_v26, 0.0  ;;  %6173 = vst [vmem:[%s8745_s26 + $0x10] sm:$0xff] %v6157_v56  ;;  %v4931_v56 = vmul.f32 %v9691_v46, %v9600_v2 }
 0x4b3   : > { %v5885_v62 = vadd.f32 %v7519_v12, %v9642_v60  ;;  %v7522_v27 = vadd.f32 %v7521_v28, %v7520_v52  ;;  %v6140_v54 = vadd.f32 %v6124_v19, %v4945_v59 }
 0x4b4   : > { %v6158_v31 = vmax.f32 %v6142_v55, 0.0  ;;  %6171 = vst [vmem:[%s8745_s26] sm:$0xff] %v6155_v22 }
 0x4b5   : > { %v5888_v61 = vadd.f32 %v7522_v27, %v9644_v48  ;;  %v9742_v44 = vadd.f32 %v9669_v47, %v5885_v62  ;;  %v6156_v30 = vmax.f32 %v6140_v54, 0.0  ;;  %v4929_v54 = vmul.f32 %v9691_v46, %v9603_v43 }
 0x4b6   : > { %6174 = vst [vmem:[%s8745_s26 + $0x18] sm:$0xff] %v6158_v31  ;;  %v4930_v43 = vmul.f32 %v9691_v46, %v9608_v29 }
 0x4b7   : > { %v7523_v50 = vpop.f32.mrb[220].mxu1  ;;  %v9747_v36 = vadd.f32 %v9674_v49, %v5888_v61  ;;  %6172 = vst [vmem:[%s8745_s26 + $0x8] sm:$0xff] %v6156_v30  ;;  %v4927_v49 = vmul.f32 %v9691_v46, %v9589_v11  ;;  %v4926_v11 = vmul.f32 %v9691_v46, %v9598_v20 }
 0x4b8   : > { %v7524_v37 = vpop.f32.mrb[221].mxu1 }
 0x4b9   : > { %v7525_v60 = vadd.f32 %v7524_v37, %v7523_v50  ;;  %v7526_v6 = vpop.f32.mrb[222].mxu1  ;;  %v4950_v0 = vadd.f32 %v9704_v25, %v4927_v49  ;;  %v4932_v37 = vmul.f32 %v9691_v46, %v9605_v13 }
 0x4ba   : > { %v7527_v35 = vpop.f32.mrb[223].mxu1 }
 0x4bb   : > { %v5893_v3 = vadd.f32 %v7525_v60, %v9646_v32  ;;  %v7528_v39 = vadd.f32 %v7527_v35, %v7526_v6  ;;  %v4955_v49 = vadd.f32 %v9704_v25, %v4932_v37 }
 0x4bd   : > { %v5896_v48 = vadd.f32 %v7528_v39, %v9648_v9  ;;  %v9753_v47 = vadd.f32 %v9679_v7, %v5893_v3  ;;  %v4928_v9 = vmul.f32 %v9691_v46, %v9595_v33  ;;  %v4948_v33 = vadd.f32 %v9704_v25, %v4925_v53 }
 0x4be   : > { %v4954_v39 = vadd.f32 %v9704_v25, %v4931_v56 }
 0x4bf   : > { %v7699_v4 = vpop.f32.mrb[224].mxu1  ;;  %v9756_v15 = vadd.f32 %v9684_v17, %v5896_v48  ;;  %v4951_v52 = vadd.f32 %v9704_v25, %v4928_v9  ;;  %v4935_v9 = vmul.f32 %v9691_v46, %v9610_v42  ;;  %v4936_v42 = vmul.f32 %v9691_v46, %v9614_v51 }
 0x4c0   : > { %v6055_v5 = vadd.f32 %v7699_v4, %v9672_v14  ;;  %v6046_v23 = vpop.f32.mrb[225].mxu1  ;;  %v4952_v4 = vadd.f32 %v9704_v25, %v4929_v54 }
 0x4c1   : > { %v6047_v32 = vadd.f32 %v6046_v23, %v9662_v63  ;;  %v7700_v18 = vpop.f32.mrb[226].mxu1  ;;  %v4958_v51 = vadd.f32 %v9704_v25, %v4935_v9 }
 0x4c2   : > { %v6106_v7 = vmul.f32 %v9696_v38, %v6055_v5  ;;  %v6058_v17 = vadd.f32 %v7700_v18, %v9676_v57  ;;  %v6049_v16 = vpop.f32.mrb[227].mxu1 }
 0x4c3   : > { %v6104_v14 = vmul.f32 %v9696_v38, %v6047_v32  ;;  %v6050_v41 = vadd.f32 %v6049_v16, %v9666_v21  ;;  %v4949_v21 = vadd.f32 %v9704_v25, %v4926_v11 }
 0x4c4   : > { %v6129_v63 = vadd.f32 %v9713_v45, %v6106_v7  ;;  %v6107_v24 = vmul.f32 %v9696_v38, %v6058_v17 }
 0x4c5   : > { %v6127_v12 = vadd.f32 %v9713_v45, %v6104_v14  ;;  %v6105_v57 = vmul.f32 %v9696_v38, %v6050_v41  ;;  %v4933_v14 = vmul.f32 %v9691_v46, %v9612_v58  ;;  %v4934_v58 = vmul.f32 %v9691_v46, %v9616_v10 }
 0x4c6   : > { %v6145_v59 = vadd.f32 %v6129_v63, %v4950_v0  ;;  %v6130_v20 = vadd.f32 %v9713_v45, %v6107_v24 }
 0x4c7   : > { %v6143_v26 = vadd.f32 %v6127_v12, %v4948_v33  ;;  %v6128_v19 = vadd.f32 %v9713_v45, %v6105_v57  ;;  %v7703_v28 = vpop.f32.mrb[228].mxu1 }
 0x4c8   : > { %v6161_v55 = vmax.f32 %v6145_v59, 0.0  ;;  %v6146_v62 = vadd.f32 %v6130_v20, %v4951_v52  ;;  %v6071_v27 = vadd.f32 %v7703_v28, %v9719_v34  ;;  %v6062_v22 = vpop.f32.mrb[229].mxu1  ;;  %v4957_v28 = vadd.f32 %v9704_v25, %v4934_v58 }
 0x4c9   : > { %v6159_v31 = vmax.f32 %v6143_v26, 0.0  ;;  %v6144_v61 = vadd.f32 %v6128_v19, %v4949_v21  ;;  %v6063_v30 = vadd.f32 %v6062_v22, %v9682_v8  ;;  %v7704_v50 = vpop.f32.mrb[230].mxu1  ;;  %v4956_v21 = vadd.f32 %v9704_v25, %v4933_v14 }
 0x4ca   : > { %6177 = vst [vmem:[%s8745_s26 + $0x30] sm:$0xff] %v6161_v55  ;;  %v6162_v2 = vmax.f32 %v6146_v62, 0.0  ;;  %v6110_v60 = vmul.f32 %v9696_v38, %v6071_v27  ;;  %v6074_v34 = vadd.f32 %v7704_v50, %v9729_v40  ;;  %v6065_v6 = vpop.f32.mrb[231].mxu1 }
 0x4cb   : > { %6175 = vst [vmem:[%s8745_s26 + $0x20] sm:$0xff] %v6159_v31  ;;  %v6160_v35 = vmax.f32 %v6144_v61, 0.0  ;;  %v6108_v3 = vmul.f32 %v9696_v38, %v6063_v30  ;;  %v6066_v8 = vadd.f32 %v6065_v6, %v9686_v1  ;;  %v4953_v1 = vadd.f32 %v9704_v25, %v4930_v43 }
 0x4cc   : > { %6178 = vst [vmem:[%s8745_s26 + $0x38] sm:$0xff] %v6162_v2  ;;  %v6133_v13 = vadd.f32 %v9713_v45, %v6110_v60  ;;  %v6111_v48 = vmul.f32 %v9696_v38, %v6074_v34 }
 0x4cd   : > { %6176 = vst [vmem:[%s8745_s26 + $0x28] sm:$0xff] %v6160_v35  ;;  %v6131_v40 = vadd.f32 %v9713_v45, %v6108_v3  ;;  %v6109_v29 = vmul.f32 %v9696_v38, %v6066_v8 }
 0x4ce   : > { %v6149_v5 = vadd.f32 %v6133_v13, %v4954_v39  ;;  %v6134_v23 = vadd.f32 %v9713_v45, %v6111_v48 }
 0x4cf   : > { %v6147_v53 = vadd.f32 %v6131_v40, %v4952_v4  ;;  %v6132_v32 = vadd.f32 %v9713_v45, %v6109_v29  ;;  %v7707_v18 = vpop.f32.mrb[232].mxu1 }
 0x4d0   : > { %v6165_v7 = vmax.f32 %v6149_v5, 0.0  ;;  %v6150_v17 = vadd.f32 %v6134_v23, %v4955_v49  ;;  %v6087_v16 = vadd.f32 %v7707_v18, %v9753_v47  ;;  %v6078_v11 = vpop.f32.mrb[233].mxu1 }
 0x4d1   : > { %v6163_v41 = vmax.f32 %v6147_v53, 0.0  ;;  %v6148_v0 = vadd.f32 %v6132_v32, %v4953_v1  ;;  %v6079_v63 = vadd.f32 %v6078_v11, %v9742_v44  ;;  %v7708_v24 = vpop.f32.mrb[234].mxu1 }
 0x4d2   : > { %6181 = vst [vmem:[%s8745_s26 + $0x50] sm:$0xff] %v6165_v7  ;;  %v6166_v33 = vmax.f32 %v6150_v17, 0.0  ;;  %v6114_v12 = vmul.f32 %v9696_v38, %v6087_v16  ;;  %v6090_v47 = vadd.f32 %v7708_v24, %v9756_v15  ;;  %v6081_v57 = vpop.f32.mrb[235].mxu1 }
 0x4d3   : > { %6179 = vst [vmem:[%s8745_s26 + $0x40] sm:$0xff] %v6163_v41  ;;  %v6164_v44 = vmax.f32 %v6148_v0, 0.0  ;;  %v6112_v52 = vmul.f32 %v9696_v38, %v6079_v63  ;;  %v6082_v59 = vadd.f32 %v6081_v57, %v9747_v36  ;;  %v4959_v36 = vadd.f32 %v9704_v25, %v4936_v42 }
 0x4d4   : > { %6182 = vst [vmem:[%s8745_s26 + $0x58] sm:$0xff] %v6166_v33  ;;  %v6137_v20 = vadd.f32 %v9713_v45, %v6114_v12  ;;  %v6115_v15 = vmul.f32 %v9696_v38, %v6090_v47 }
 0x4d5   : > { %6180 = vst [vmem:[%s8745_s26 + $0x48] sm:$0xff] %v6164_v44  ;;  %v6135_v10 = vadd.f32 %v9713_v45, %v6112_v52  ;;  %v6113_v46 = vmul.f32 %v9696_v38, %v6082_v59 }
 0x4d6   : > { %v6153_v26 = vadd.f32 %v6137_v20, %v4958_v51  ;;  %v6138_v19 = vadd.f32 %v9713_v45, %v6115_v15 }
 0x4d7   : > { %v6151_v56 = vadd.f32 %v6135_v10, %v4956_v21  ;;  %v6136_v55 = vadd.f32 %v9713_v45, %v6113_v46 }
 0x4d8   : > { %v6169_v62 = vmax.f32 %v6153_v26, 0.0  ;;  %v6154_v27 = vadd.f32 %v6138_v19, %v4959_v36 }
 0x4d9   : > { %v6167_v38 = vmax.f32 %v6151_v56, 0.0  ;;  %v6152_v22 = vadd.f32 %v6136_v55, %v4957_v28 }
 0x4da   : > { %6185 = vst [vmem:[%s8745_s26 + $0x70] sm:$0xff] %v6169_v62  ;;  %v6170_v54 = vmax.f32 %v6154_v27, 0.0 }
 0x4db   : > { %6183 = vst [vmem:[%s8745_s26 + $0x60] sm:$0xff] %v6167_v38  ;;  %v6168_v25 = vmax.f32 %v6152_v22, 0.0 }
 0x4dc   : > { %6186 = vst [vmem:[%s8745_s26 + $0x78] sm:$0xff] %v6170_v54 }
 0x4dd   : > { %6184 = vst [vmem:[%s8745_s26 + $0x68] sm:$0xff] %v6168_v25 }
 0x4de   : > { %8233 = shalt.err (!%p8230_p1)
}
 0x4df   : > { %s8234_s4 = scalar_lea.hbm %s9848_s30, 2048  ;;  %s8238_s12 = scalar_lea.hbm %s9980_s8, 8192 }
 0x4e0   : > { %p8235_p11 = scmp.ne.s32.totalorder %s9848_s30, %s8234_s4  ;;  %p8239_p9 = scmp.lt.u32.totalorder %s9848_s30, %s9980_s8 }
 0x4e1   : > { %p8240_p5 = scmp.lt.u32.totalorder %s8238_s12, %s8234_s4  ;;  %p8242_p6 = scmp.lt.u32.totalorder %s8234_s4, %s9848_s30 }
 0x4e2   : > { %p8236_p10 = pnand %p8235_p11, %p9981_p8 }
 0x4e3   : > { %p8241_p13 = por %p8240_p5, %p8239_p9 }
 0x4e4   : > { %p8237_p2 = pneg %p8236_p10 }
 0x4e5   : > { %p8243_p12 = por %p8242_p6, %p8241_p13 }
 0x4e7   : > { %p8244_p4 = pnand %p8243_p12, %p8237_p2 }
 0x4e9   : > { %8247 = shalt.err (!%p8244_p4)
}
 0x4ea   : > { %s8362_s20 = smov 128   ;;  %s8363_s3 = smov 8  }
 0x4eb   : > { %7739 = dma.vmem_to_hbm [thread:$0]  (%p9981_p8), %s9842_s11, 2048, %s9848_s30, %s9854_s16, %s8362_s20, %s8362_s20, %s8363_s3  }
 0x4ec PF: > { %s9982_s5 = sld [smem:[#allocation19_spill]]  ;;  %s9983_s2 = sld [smem:[#allocation22_spill]] }
 0x4ed   : > { %p7766_p7 = scmp.ge.s32.totalorder %s8350_s23, 2 }
 0x4f2   : > { %s6219_s10 = sand.u32 1, %s9982_s5   ;;  %p9984_p3 = scmp.ne.s32.totalorder %s9983_s2, 0 }
 0x4f3   : > { %s6220_s1 = scalar_lea.sflag [#allocation8], %s6219_s10 }
 0x4f4   : > { %p7756_p0 = pnand %p7766_p7, %p9984_p3 }
 0x4f6   : > { %8305 = dma.done.wait (!%p7756_p0), %s6220_s1, 2048  }
 0x4f7   : > { %8307 = vsyncadd (!%p7756_p0), %s6220_s1, 4294965248  ;;  %s28_s23 = sadd.s32 1, %s8350_s23   ;;  %s9985_s13 = smov %s8314_s14 }
 0x4f8   : > { %p25_p1 = scmp.ge.s32.totalorder %s28_s23, 6   ;;  %s9986_s14 = smov %s8318_s15 }
 0x4f9   : > { %s9987_s15 = smov %s8626_s27  ;;  %s9988_s16 = smov %s8326_s17 }
 0x4fa   : > { %s9989_s17 = smov %s8330_s18  ;;  %s9990_s18 = smov %s8621_s9 }
 0x4fb   : > { %s9991_s19 = smov %s8342_s21  ;;  %s9992_s20 = smov %s8346_s22 }
 0x4fc   : > { %s9993_s21 = smov %s9996_s6  ;;  %s9994_s22 = smov %s10000_s24 }
 0x4fd   :  { %27 = sbr.rel (!%p25_p1) target bundleno = 21 (0x15), region = 141 }
 0x504   :  { %6225 = vsyncpa [#allocation7], 1 }
 0x505   :  { %6227 = vsyncpa [#allocation7 + $0x1], 1 }
 0x506   :  { %6228 = vsyncpa [#allocation10], 1 }
 0x507   :  { %6229 = vsyncpa [#allocation13], 1 }
 0x508   :  { %6230 = vsyncpa [#allocation8], 1 }
 0x509   :  { %6232 = vsyncpa [#allocation8 + $0x1], 1 }

</bundles_post_ra>
